<compile_context>
chip_gen: v7x
topology: tpu7x:2x2x1
jax: 0.10.0
libtpu: 0.0.40
codegen_flags: <defaults>
</compile_context>

<pallas_src>
import functools

import jax
import jax.numpy as jnp
from jax.experimental import pallas as pl
from jax.experimental.pallas import tpu as pltpu


STEM_CH = 48        # EfficientNet-B4 stem width
HEAD_CH = 1792      # EfficientNet-B4 final feature width
OUT_SIZE = 14       # CheXNet classes
K_STEM = 32         # im2col width 3*3*3 = 27, padded to 32 (sublane friendly)
CLS_PAD = 128       # classifier output padded to one full lane register
TM_DEFAULT = 256    # rows per grid step (fits comfortably in 64 MiB v7x VMEM)


def _round_up(x, m):
    return ((x + m - 1) // m) * m


# ---------------------------------------------------------------------------
# Fused Pallas kernel: stem conv + head conv + global-avg-pool + classifier
# ---------------------------------------------------------------------------
def _fused_forward_kernel(patches_ref, stem_w_ref, stem_b_ref,
                          head_w_ref, head_b_ref, cls_w_ref, cls_b_ref,
                          o_ref, pooled_acc, *, hw, m_real, b_pad, inv_hw):
    i = pl.program_id(0)
    tm = patches_ref.shape[0]

    @pl.when(i == 0)
    def _():
        pooled_acc[...] = jnp.zeros_like(pooled_acc)

    # ---- stem conv (3x3 s2 as im2col matmul) + folded BN + SiLU (bf16 MXU, f32 acc)
    stem = jnp.dot(patches_ref[...], stem_w_ref[...],
                   preferred_element_type=jnp.float32) + stem_b_ref[...]
    stem = stem * jax.nn.sigmoid(stem)                          # [tm, 48] f32

    # ---- head 1x1 conv + folded BN + SiLU; never written to HBM ----------------
    head = jnp.dot(stem.astype(jnp.bfloat16), head_w_ref[...],
                   preferred_element_type=jnp.float32) + head_b_ref[...]
    head = head * jax.nn.sigmoid(head)                          # [tm, 1792] f32

    # ---- fused global average pool: segment-sum rows into per-image slots via a
    # small one-hot matmul (handles m-tiles that straddle image boundaries and
    # masks padded rows).
    row = i * tm + jax.lax.broadcasted_iota(jnp.int32, (b_pad, tm), 1)
    start = hw * jax.lax.broadcasted_iota(jnp.int32, (b_pad, tm), 0)
    onehot = ((row >= start) & (row < start + hw) & (row < m_real)
              ).astype(jnp.float32)                             # [b_pad, tm]
    pooled_acc[...] += jnp.dot(onehot, head,
                               preferred_element_type=jnp.float32)

    # ---- last m-tile: finish the mean and apply the classifier Linear ----------
    @pl.when(i == pl.num_programs(0) - 1)
    def _():
        pooled = pooled_acc[...] * inv_hw                       # [b_pad, 1792]
        logits = jnp.dot(pooled, cls_w_ref[...],
                         preferred_element_type=jnp.float32) + cls_b_ref[...]
        o_ref[...] = logits.astype(o_ref.dtype)


def fused_stem_head_pool_classify(patches, stem_w, stem_b, head_w, head_b,
                                  cls_w, cls_b, *, hw, batch, tm=TM_DEFAULT):
    """patches: [M, K_STEM] bf16 (M = batch*hw) -> padded logits [b_pad, CLS_PAD] f32."""
    m_real, k = patches.shape
    n_stem = stem_w.shape[1]
    n_head = head_w.shape[1]
    n_cls = cls_w.shape[1]

    b_pad = _round_up(max(batch, 8), 8)
    tm_eff = min(tm, _round_up(m_real, 8))
    m_pad = _round_up(m_real, tm_eff)
    if m_pad != m_real:
        patches = jnp.pad(patches, ((0, m_pad - m_real), (0, 0)))

    grid = (m_pad // tm_eff,)

    kernel = functools.partial(
        _fused_forward_kernel,
        hw=hw, m_real=m_real, b_pad=b_pad, inv_hw=1.0 / float(hw))

    flops = int(2 * m_pad * (k * n_stem + n_stem * n_head + b_pad * n_head)
                + 2 * b_pad * n_head * n_cls)
    transcendentals = int(m_pad * (n_stem + n_head))
    bytes_accessed = int(
        m_pad * k * 2                               # bf16 patches
        + (k * n_stem + n_stem * n_head) * 2        # bf16 conv weights
        + (n_stem + n_head + n_cls) * 4             # biases
        + n_head * n_cls * 4                        # classifier weights
        + b_pad * n_cls * 4)                        # logits

    return pl.pallas_call(
        kernel,
        out_shape=jax.ShapeDtypeStruct((b_pad, n_cls), jnp.float32),
        grid=grid,
        in_specs=[
            pl.BlockSpec((tm_eff, k), lambda i: (i, 0)),     # patches (M-tiled)
            pl.BlockSpec((k, n_stem), lambda i: (0, 0)),     # stem_w (resident)
            pl.BlockSpec((1, n_stem), lambda i: (0, 0)),     # stem_b
            pl.BlockSpec((n_stem, n_head), lambda i: (0, 0)),  # head_w (resident)
            pl.BlockSpec((1, n_head), lambda i: (0, 0)),     # head_b
            pl.BlockSpec((n_head, n_cls), lambda i: (0, 0)),  # cls_w (resident)
            pl.BlockSpec((1, n_cls), lambda i: (0, 0)),      # cls_b
        ],
        out_specs=pl.BlockSpec((b_pad, n_cls), lambda i: (0, 0)),
        scratch_shapes=[pltpu.VMEM((b_pad, n_head), jnp.float32)],
        compiler_params=pltpu.CompilerParams(
            dimension_semantics=("arbitrary",),      # M is the pooling reduction axis
            vmem_limit_bytes=48 * 1024 * 1024),
        cost_estimate=pl.CostEstimate(
            flops=flops,
            transcendentals=transcendentals,
            bytes_accessed=bytes_accessed),
    )(patches, stem_w, stem_b, head_w, head_b, cls_w, cls_b)


# ---------------------------------------------------------------------------
# Glue (layout / im2col / parameters) — plain JAX
# ---------------------------------------------------------------------------
def _im2col_3x3_s2_same(x_nhwc):
    """3x3 stride-2 patches with EfficientNet static 'same' padding (odd/even safe)."""
    bsz, h, w, c = x_nhwc.shape
    ho, wo = -(-h // 2), -(-w // 2)
    pad_h = max((ho - 1) * 2 + 3 - h, 0)
    pad_w = max((wo - 1) * 2 + 3 - w, 0)
    xp = jnp.pad(x_nhwc, ((0, 0),
                          (pad_h // 2, pad_h - pad_h // 2),
                          (pad_w // 2, pad_w - pad_w // 2),
                          (0, 0)))
    cols = []
    for kh in range(3):
        for kw in range(3):
            cols.append(xp[:, kh:kh + 2 * ho - 1:2, kw:kw + 2 * wo - 1:2, :])
    patches = jnp.concatenate(cols, axis=-1)                    # [B, ho, wo, 9*C]
    # NOTE: patches are only 27-wide (tiny vs. the eliminated 1792-wide head feats),
    # so the host-side im2col expansion is a negligible HBM cost.
    return patches.reshape(bsz * ho * wo, 9 * c), (bsz, ho, wo)


def init_params(key, out_size=OUT_SIZE):
    ks = jax.random.split(key, 6)
    stem_w = 0.05 * jax.random.normal(ks[0], (27, STEM_CH), jnp.float32)
    cls_w = 0.05 * jax.random.normal(ks[4], (HEAD_CH, out_size), jnp.float32)
    cls_b = 0.05 * jax.random.normal(ks[5], (1, out_size), jnp.float32)
    return {
        # stem conv 3x3 (im2col layout, K padded 27 -> 32), BN folded into bias
        "stem_w": jnp.pad(stem_w, ((0, K_STEM - 27), (0, 0))),          # [32, 48]
        "stem_b": 0.05 * jax.random.normal(ks[1], (1, STEM_CH), jnp.float32),
        # head 1x1 conv 48 -> 1792, BN folded into bias
        "head_w": 0.05 * jax.random.normal(ks[2], (STEM_CH, HEAD_CH), jnp.float32),
        "head_b": 0.05 * jax.random.normal(ks[3], (1, HEAD_CH), jnp.float32),
        # classifier Linear(1792, out_size), output padded to 128 lanes
        "cls_w": jnp.pad(cls_w, ((0, 0), (0, CLS_PAD - out_size))),     # [1792, 128]
        "cls_b": jnp.pad(cls_b, ((0, 0), (0, CLS_PAD - out_size))),     # [1, 128]
    }


@jax.jit
def efficientnet4_forward(params, x_nchw):
    """x_nchw: [B, 3, H, W] float32  ->  logits [B, 14]."""
    x = jnp.transpose(x_nchw, (0, 2, 3, 1))                     # NCHW -> NHWC
    patches, (bsz, ho, wo) = _im2col_3x3_s2_same(x)             # [B*ho*wo, 27]
    patches = jnp.pad(patches, ((0, 0), (0, K_STEM - patches.shape[1])))
    logits_pad = fused_stem_head_pool_classify(
        patches.astype(jnp.bfloat16),
        params["stem_w"].astype(jnp.bfloat16), params["stem_b"],
        params["head_w"].astype(jnp.bfloat16), params["head_b"],
        params["cls_w"], params["cls_b"],
        hw=ho * wo, batch=bsz)                                  # [b_pad, 128]
    return logits_pad[:bsz, :OUT_SIZE]


def _reference_forward(params, x_nchw):
    """Pure-JAX reference with identical bf16 matmul casts (kernel correctness check)."""
    x = jnp.transpose(x_nchw, (0, 2, 3, 1))
    patches, (bsz, ho, wo) = _im2col_3x3_s2_same(x)
    patches = jnp.pad(patches, ((0, 0), (0, K_STEM - patches.shape[1])))

    def silu(v):
        return v * jax.nn.sigmoid(v)

    stem = silu(jnp.dot(patches.astype(jnp.bfloat16),
                        params["stem_w"].astype(jnp.bfloat16),
                        preferred_element_type=jnp.float32) + params["stem_b"])
    head = silu(jnp.dot(stem.astype(jnp.bfloat16),
                        params["head_w"].astype(jnp.bfloat16),
                        preferred_element_type=jnp.float32) + params["head_b"])
    pooled = head.reshape(bsz, ho * wo, HEAD_CH).mean(axis=1)
    logits = jnp.dot(pooled, params["cls_w"],
                     preferred_element_type=jnp.float32) + params["cls_b"]
    return logits[:, :OUT_SIZE]


# ---------------------------------------------------------------------------
if __name__ == "__main__":
    key = jax.random.PRNGKey(0)
    k_x, k_p = jax.random.split(key)

    B, C_IN, H, W = 2, 3, 16, 16
    x = jax.random.normal(k_x, (B, C_IN, H, W), dtype=jnp.float32)
    params = init_params(k_p, out_size=OUT_SIZE)

    logits = efficientnet4_forward(params, x)
    jax.block_until_ready(logits)

    ref = _reference_forward(params, x)

    assert logits.shape == (B, OUT_SIZE), logits.shape
    assert logits.dtype == jnp.float32
    assert bool(jnp.all(jnp.isfinite(logits)))
    assert bool(jnp.allclose(logits, ref, rtol=2e-2, atol=2e-2)), (
        float(jnp.max(jnp.abs(logits - ref))))
    print("KERNEL_OK")
</pallas_src>

<mosaic_0001>
module attributes {stable_mosaic.version = 11 : i64} {
  func.func @_fused_forward_kernel(%arg0: i32, %arg1: memref<128x32xbf16, #tpu.memory_space<vmem>>, %arg2: memref<32x48xbf16, #tpu.memory_space<vmem>>, %arg3: memref<1x48xf32, #tpu.memory_space<vmem>>, %arg4: memref<48x1792xbf16, #tpu.memory_space<vmem>>, %arg5: memref<1x1792xf32, #tpu.memory_space<vmem>>, %arg6: memref<1792x128xf32, #tpu.memory_space<vmem>>, %arg7: memref<1x128xf32, #tpu.memory_space<vmem>>, %arg8: memref<8x128xf32, #tpu.memory_space<vmem>>, %arg9: memref<8x1792xf32, #tpu.memory_space<vmem>>) attributes {dimension_semantics = [#tpu.dimension_semantics<arbitrary>], iteration_bounds = array<i64: 1>, scalar_prefetch = 0 : i64, scratch_operands = 1 : i64, tpu.core_type = #tpu.core_type<tc>, window_params = [{transform_indices = @transform_0, window_bounds = array<i64: 128, 32>}, {pipeline_mode = #tpu.pipeline_mode<synchronous>, transform_indices = @transform_1, window_bounds = array<i64: 32, 48>}, {pipeline_mode = #tpu.pipeline_mode<synchronous>, transform_indices = @transform_2, window_bounds = array<i64: 1, 48>}, {pipeline_mode = #tpu.pipeline_mode<synchronous>, transform_indices = @transform_3, window_bounds = array<i64: 48, 1792>}, {pipeline_mode = #tpu.pipeline_mode<synchronous>, transform_indices = @transform_4, window_bounds = array<i64: 1, 1792>}, {pipeline_mode = #tpu.pipeline_mode<synchronous>, transform_indices = @transform_5, window_bounds = array<i64: 1792, 128>}, {pipeline_mode = #tpu.pipeline_mode<synchronous>, transform_indices = @transform_6, window_bounds = array<i64: 1, 128>}, {pipeline_mode = #tpu.pipeline_mode<synchronous>, transform_indices = @transform_7, window_bounds = array<i64: 8, 128>}]} {
    %c0_i32 = arith.constant 0 : i32
    %0 = arith.cmpi eq, %arg0, %c0_i32 : i32
    %1 = arith.extui %0 : i1 to i32
    %c0_i32_0 = arith.constant 0 : i32
    %2 = arith.cmpi ne, %1, %c0_i32_0 : i32
    scf.if %2 {
      %cst_22 = arith.constant 0.000000e+00 : f32
      %51 = vector.broadcast %cst_22 : f32 to vector<8x1792xf32>
      %c0_23 = arith.constant 0 : index
      %c0_24 = arith.constant 0 : index
      %52 = vector.load %arg9[%c0_23, %c0_24] : memref<8x1792xf32, #tpu.memory_space<vmem>>, vector<8x1792xf32>
      tpu.vector_store %arg9[%c0_23, %c0_24], %51 {strides = array<i32>} : memref<8x1792xf32, #tpu.memory_space<vmem>>, vector<8x1792xf32>,
    } else {
    }
    %c0 = arith.constant 0 : index
    %c0_1 = arith.constant 0 : index
    %3 = vector.load %arg1[%c0, %c0_1] : memref<128x32xbf16, #tpu.memory_space<vmem>>, vector<128x32xbf16>
    %c0_2 = arith.constant 0 : index
    %c0_3 = arith.constant 0 : index
    %4 = vector.load %arg2[%c0_2, %c0_3] : memref<32x48xbf16, #tpu.memory_space<vmem>>, vector<32x48xbf16>
    %cst = arith.constant dense<0.000000e+00> : vector<128x48xf32>
    %5 = tpu.matmul %3, %4, %cst {dimension_numbers = #tpu.dot_dimension_numbers<[1], [0], [0], [1], [0, 0, 1, 1], [], []>} : vector<128x32xbf16>, vector<32x48xbf16>, vector<128x48xf32> -> vector<128x48xf32>
    %c0_4 = arith.constant 0 : index
    %c0_5 = arith.constant 0 : index
    %6 = vector.load %arg3[%c0_4, %c0_5] : memref<1x48xf32, #tpu.memory_space<vmem>>, vector<1x48xf32>
    %7 = vector.broadcast %6 : vector<1x48xf32> to vector<128x48xf32>
    %8 = arith.addf %5, %7 : vector<128x48xf32>
    %9 = arith.negf %8 : vector<128x48xf32>
    %10 = math.exp %9 : vector<128x48xf32>
    %cst_6 = arith.constant 1.000000e+00 : f32
    %11 = vector.broadcast %cst_6 : f32 to vector<128x48xf32>
    %12 = arith.addf %11, %10 : vector<128x48xf32>
    %13 = arith.divf %11, %12 : vector<128x48xf32>
    %14 = arith.mulf %8, %13 : vector<128x48xf32>
    %15 = arith.truncf %14 : vector<128x48xf32> to vector<128x48xbf16>
    %c0_7 = arith.constant 0 : index
    %c0_8 = arith.constant 0 : index
    %16 = vector.load %arg4[%c0_7, %c0_8] : memref<48x1792xbf16, #tpu.memory_space<vmem>>, vector<48x1792xbf16>
    %cst_9 = arith.constant dense<0.000000e+00> : vector<128x1792xf32>
    %17 = tpu.matmul %15, %16, %cst_9 {dimension_numbers = #tpu.dot_dimension_numbers<[1], [0], [0], [1], [0, 0, 1, 1], [], []>} : vector<128x48xbf16>, vector<48x1792xbf16>, vector<128x1792xf32> -> vector<128x1792xf32>
    %c0_10 = arith.constant 0 : index
    %c0_11 = arith.constant 0 : index
    %18 = vector.load %arg5[%c0_10, %c0_11] : memref<1x1792xf32, #tpu.memory_space<vmem>>, vector<1x1792xf32>
    %19 = vector.broadcast %18 : vector<1x1792xf32> to vector<128x1792xf32>
    %20 = arith.addf %17, %19 : vector<128x1792xf32>
    %21 = arith.negf %20 : vector<128x1792xf32>
    %22 = math.exp %21 : vector<128x1792xf32>
    %cst_12 = arith.constant 1.000000e+00 : f32
    %23 = vector.broadcast %cst_12 : f32 to vector<128x1792xf32>
    %24 = arith.addf %23, %22 : vector<128x1792xf32>
    %25 = arith.divf %23, %24 : vector<128x1792xf32>
    %26 = arith.mulf %20, %25 : vector<128x1792xf32>
    %c128_i32 = arith.constant 128 : i32
    %27 = arith.muli %arg0, %c128_i32 : i32
    %28 = tpu.iota {dimensions = array<i32: 1>} : vector<8x128xi32>
    %29 = vector.broadcast %27 : i32 to vector<8x128xi32>
    %30 = arith.addi %29, %28 : vector<8x128xi32>
    %31 = tpu.iota {dimensions = array<i32: 0>} : vector<8x128xi32>
    %c64_i32 = arith.constant 64 : i32
    %32 = vector.broadcast %c64_i32 : i32 to vector<8x128xi32>
    %33 = arith.muli %32, %31 : vector<8x128xi32>
    %34 = arith.cmpi sge, %30, %33 : vector<8x128xi32>
    %c64_i32_13 = arith.constant 64 : i32
    %35 = vector.broadcast %c64_i32_13 : i32 to vector<8x128xi32>
    %36 = arith.addi %33, %35 : vector<8x128xi32>
    %37 = arith.cmpi slt, %30, %36 : vector<8x128xi32>
    %38 = arith.andi %34, %37 : vector<8x128xi1>
    %c128_i32_14 = arith.constant 128 : i32
    %39 = vector.broadcast %c128_i32_14 : i32 to vector<8x128xi32>
    %40 = arith.cmpi slt, %30, %39 : vector<8x128xi32>
    %41 = arith.andi %38, %40 : vector<8x128xi1>
    %42 = arith.extui %41 : vector<8x128xi1> to vector<8x128xi32>
    %43 = arith.sitofp %42 : vector<8x128xi32> to vector<8x128xf32>
    %c0_15 = arith.constant 0 : index
    %c0_16 = arith.constant 0 : index
    %44 = vector.load %arg9[%c0_15, %c0_16] : memref<8x1792xf32, #tpu.memory_space<vmem>>, vector<8x1792xf32>
    %cst_17 = arith.constant dense<0.000000e+00> : vector<8x1792xf32>
    %45 = tpu.matmul %43, %26, %cst_17 {dimension_numbers = #tpu.dot_dimension_numbers<[1], [0], [0], [1], [0, 0, 1, 1], [], []>} : vector<8x128xf32>, vector<128x1792xf32>, vector<8x1792xf32> -> vector<8x1792xf32>
    %46 = arith.addf %44, %45 : vector<8x1792xf32>
    %c0_18 = arith.constant 0 : index
    %c0_19 = arith.constant 0 : index
    %47 = vector.load %arg9[%c0_18, %c0_19] : memref<8x1792xf32, #tpu.memory_space<vmem>>, vector<8x1792xf32>
    tpu.vector_store %arg9[%c0_18, %c0_19], %46 {strides = array<i32>} : memref<8x1792xf32, #tpu.memory_space<vmem>>, vector<8x1792xf32>,
    %c0_i32_20 = arith.constant 0 : i32
    %48 = arith.cmpi eq, %arg0, %c0_i32_20 : i32
    %49 = arith.extui %48 : i1 to i32
    %c0_i32_21 = arith.constant 0 : i32
    %50 = arith.cmpi ne, %49, %c0_i32_21 : i32
    scf.if %50 {
      %c0_22 = arith.constant 0 : index
      %c0_23 = arith.constant 0 : index
      %51 = vector.load %arg9[%c0_22, %c0_23] : memref<8x1792xf32, #tpu.memory_space<vmem>>, vector<8x1792xf32>
      %cst_24 = arith.constant 1.562500e-02 : f32
      %52 = vector.broadcast %cst_24 : f32 to vector<8x1792xf32>
      %53 = arith.mulf %51, %52 : vector<8x1792xf32>
      %c0_25 = arith.constant 0 : index
      %c0_26 = arith.constant 0 : index
      %54 = vector.load %arg6[%c0_25, %c0_26] : memref<1792x128xf32, #tpu.memory_space<vmem>>, vector<1792x128xf32>
      %cst_27 = arith.constant dense<0.000000e+00> : vector<8x128xf32>
      %55 = tpu.matmul %53, %54, %cst_27 {dimension_numbers = #tpu.dot_dimension_numbers<[1], [0], [0], [1], [0, 0, 1, 1], [], []>} : vector<8x1792xf32>, vector<1792x128xf32>, vector<8x128xf32> -> vector<8x128xf32>
      %c0_28 = arith.constant 0 : index
      %c0_29 = arith.constant 0 : index
      %56 = vector.load %arg7[%c0_28, %c0_29] : memref<1x128xf32, #tpu.memory_space<vmem>>, vector<1x128xf32>
      %57 = vector.broadcast %56 : vector<1x128xf32> to vector<8x128xf32>
      %58 = arith.addf %55, %57 : vector<8x128xf32>
      %c0_30 = arith.constant 0 : index
      %c0_31 = arith.constant 0 : index
      %59 = vector.load %arg8[%c0_30, %c0_31] : memref<8x128xf32, #tpu.memory_space<vmem>>, vector<8x128xf32>
      tpu.vector_store %arg8[%c0_30, %c0_31], %58 {strides = array<i32>} : memref<8x128xf32, #tpu.memory_space<vmem>>, vector<8x128xf32>,
    } else {
    }
    return
  }
  func.func @transform_0(%arg0: i32) -> (i32, i32) {
    %c0_i32 = arith.constant 0 : i32
    %c0_i32_0 = arith.constant 0 : i32
    return %arg0, %c0_i32 : i32, i32
  }
  func.func @transform_1(%arg0: i32) -> (i32, i32) {
    %c0_i32 = arith.constant 0 : i32
    %c0_i32_0 = arith.constant 0 : i32
    %c0_i32_1 = arith.constant 0 : i32
    return %c0_i32, %c0_i32_0 : i32, i32
  }
  func.func @transform_2(%arg0: i32) -> (i32, i32) {
    %c0_i32 = arith.constant 0 : i32
    %c0_i32_0 = arith.constant 0 : i32
    %c0_i32_1 = arith.constant 0 : i32
    return %c0_i32, %c0_i32_0 : i32, i32
  }
  func.func @transform_3(%arg0: i32) -> (i32, i32) {
    %c0_i32 = arith.constant 0 : i32
    %c0_i32_0 = arith.constant 0 : i32
    %c0_i32_1 = arith.constant 0 : i32
    return %c0_i32, %c0_i32_0 : i32, i32
  }
  func.func @transform_4(%arg0: i32) -> (i32, i32) {
    %c0_i32 = arith.constant 0 : i32
    %c0_i32_0 = arith.constant 0 : i32
    %c0_i32_1 = arith.constant 0 : i32
    return %c0_i32, %c0_i32_0 : i32, i32
  }
  func.func @transform_5(%arg0: i32) -> (i32, i32) {
    %c0_i32 = arith.constant 0 : i32
    %c0_i32_0 = arith.constant 0 : i32
    %c0_i32_1 = arith.constant 0 : i32
    return %c0_i32, %c0_i32_0 : i32, i32
  }
  func.func @transform_6(%arg0: i32) -> (i32, i32) {
    %c0_i32 = arith.constant 0 : i32
    %c0_i32_0 = arith.constant 0 : i32
    %c0_i32_1 = arith.constant 0 : i32
    return %c0_i32, %c0_i32_0 : i32, i32
  }
  func.func @transform_7(%arg0: i32) -> (i32, i32) {
    %c0_i32 = arith.constant 0 : i32
    %c0_i32_0 = arith.constant 0 : i32
    %c0_i32_1 = arith.constant 0 : i32
    return %c0_i32, %c0_i32_0 : i32, i32
  }
}

</mosaic_0001>

<bundles_post_ra>
// kernel: efficientnet4_forward.1
= control target key start
LH: loop header
LB: loop body
LE: loop exit
PB: predicated region body
PF: predicated region fallthrough
CT: control target
= control target key end

     0   :  { %vm124_vm0 = vcmask 261120   ;;  %v6519_v22 = vmov 0   ;;  %vm692_vm1 = vcmask 392192   ;;  %s9901_s1 = inlined_call_operand.vmem [shape: bf16[32,48], index: 1, kind: input, shape index: {}]   ;;  %s9902_s0 = inlined_call_operand.vmem [shape: bf16[128,32], index: 0, kind: input, shape index: {}]   ;;  %s9903_s3 = inlined_call_operand.vmem [shape: bf16[48,1792], index: 3, kind: input, shape index: {}]   ;;  %s9904_s2 = inlined_call_operand.vmem [shape: f32[1,48], index: 2, kind: input, shape index: {}]   ;;  %s9905_s4 = inlined_call_operand.vmem [shape: f32[1,1792], index: 4, kind: input, shape index: {}]   ;;  %s9906_s5 = inlined_call_operand.vmem [shape: f32[1792,128], index: 5, kind: input, shape index: {}]   ;;  %s9907_s6 = inlined_call_operand.vmem [shape: f32[1,128], index: 6, kind: input, shape index: {}]   ;;  %s9908_s7 = inlined_call_operand.vmem [shape: f32[8,128], index: 7, kind: output, shape index: {}]  }
   0x1   :  { %v5484_v0 = vld [vmem:[%s9901_s1] sm:$0xff]   ;;  %v5485_v1 = vld [vmem:[%s9901_s1 + $0x8] sm:$0xff]   ;;  %v5490_v6 = vld [vmem:[%s9902_s0 + $0x10] sm:$0xff]  }
   0x2   :  { %5009 = vmatprep.subr.bf16.mxu0 %v5484_v0  ;;  %5477 = vmatprep.subr.bf16.mxu1 %v5484_v0  ;;  %v5486_v2 = vld [vmem:[%s9902_s0] sm:$0xff]   ;;  %v5487_v4 = vld [vmem:[%s9902_s0 + $0x8] sm:$0xff]   ;;  %v5492_v7 = vld [vmem:[%s9902_s0 + $0x30] sm:$0xff]  }
   0x3   :  { %5010 = vmatpush3.bf16.msra.mxu0 %v5484_v0  ;;  %5479 = vmatpush3.bf16.msra.mxu1 %v5484_v0  ;;  %v5488_v3 = vld [vmem:[%s9902_s0 + $0x20] sm:$0xff]   ;;  %v5489_v5 = vld [vmem:[%s9902_s0 + $0x28] sm:$0xff]   ;;  %v5491_v8 = vld [vmem:[%s9902_s0 + $0x18] sm:$0xff]  }
   0x4   :  { %5011 = vmatprep.subr.bf16.mxu0 %v5485_v1  ;;  %5478 = vmatprep.subr.bf16.mxu1 %v5485_v1  ;;  %v5493_v9 = vld [vmem:[%s9902_s0 + $0x38] sm:$0xff]   ;;  %v5499_v12 = vld [vmem:[%s9903_s3 + $0xc] ss:$56 sps:$4 sm:$0xff]   ;;  %v5497_v13 = vld [vmem:[%s9903_s3 + $0x8] ss:$56 sps:$4 sm:$0xff]  }
   0x5   :  { %5013 = vmatprep.mubr.msk.bf16.mxu0 %vm124_vm0, %v5486_v2  ;;  %5021 = vmatprep.mubr.msk.bf16.mxu1 %vm124_vm0, %v5488_v3  ;;  %v5496_v10 = vld [vmem:[%s9903_s3 + $0x4] ss:$56 sps:$4 sm:$0xff]   ;;  %v5494_v11 = vld [vmem:[%s9903_s3] ss:$56 sps:$4 sm:$0xff]   ;;  %v5502_v14 = vld [vmem:[%s9903_s3 + $0x74] ss:$56 sps:$4 sm:$0xff]  }
   0x6   :  { %v5505_v15 = vld [vmem:[%s9903_s3 + $0x7c] ss:$56 sps:$4 sm:$0xff]   ;;  %v5500_v16 = vld [vmem:[%s9903_s3 + $0x70] ss:$56 sps:$4 sm:$0xff]   ;;  %v5511_v19 = vld [vmem:[%s9903_s3 + $0xec] ss:$56 sps:$4 sm:$0xff]  }
   0x7   :  { %5012 = vmatpush3.bf16.msra.mxu0 %v5485_v1  ;;  %5480 = vmatpush3.bf16.msra.mxu1 %v5485_v1  ;;  %v5503_v17 = vld [vmem:[%s9903_s3 + $0x78] ss:$56 sps:$4 sm:$0xff]   ;;  %v5508_v18 = vld [vmem:[%s9903_s3 + $0xe4] ss:$56 sps:$4 sm:$0xff]   ;;  %v5509_v21 = vld [vmem:[%s9903_s3 + $0xe8] ss:$56 sps:$4 sm:$0xff]  }
   0x8   :  { %717 = vmatprep.subr.bf16.mxu1 %v5496_v10  ;;  %830 = vmatprep.subr.bf16.mxu0 %v5499_v12  ;;  %v5506_v20 = vld [vmem:[%s9903_s3 + $0xe0] ss:$56 sps:$4 sm:$0xff]   ;;  %v5514_v23 = vld [vmem:[%s9903_s3 + $0x14] ss:$56 sps:$4 sm:$0xff]  }
   0x9   :  { %v5523_v24 = vld [vmem:[%s9903_s3 + $0x1c] ss:$56 sps:$4 sm:$0xff]   ;;  %v6647_v25 = vld [vmem:[%s9904_s2] ss:$0 sm:$0xff] }
   0xa   :  { %5014 = vmatmul.mubr.msk.bf16.vlgmr.msra.gmra.mrb[0].mxu0 %vm124_vm0, %v5487_v4  ;;  %5022 = vmatmul.mubr.msk.bf16.vlgmr.msra.gmra.mrb[0].mxu1 %vm124_vm0, %v5489_v5 }
   0xb   :  { %5017 = vmatprep.mubr.msk.bf16.mxu0 %vm124_vm0, %v5490_v6  ;;  %5025 = vmatprep.mubr.msk.bf16.mxu1 %vm124_vm0, %v5492_v7 }
   0xc   :  { %718 = vmatpush1.bf16.msra.mxu1 %v5494_v11  ;;  %831 = vmatpush1.bf16.msra.mxu0 %v5497_v13 }
   0xd   :  { %719 = vmatprep.subr.bf16.mxu1 %v5502_v14  ;;  %832 = vmatprep.subr.bf16.mxu0 %v5505_v15 }
  0x10   :  { %720 = vmatpush1.bf16.msra.mxu1 %v5500_v16  ;;  %833 = vmatpush1.bf16.msra.mxu0 %v5503_v17 }
  0x11   :  { %721 = vmatprep.subr.bf16.mxu1 %v5508_v18  ;;  %834 = vmatprep.subr.bf16.mxu0 %v5511_v19 }
  0x12   :  { %5018 = vmatmul.mubr.msk.bf16.gmra.mrb[4].mxu0 %vm124_vm0, %v5491_v8  ;;  %5026 = vmatmul.mubr.msk.bf16.gmra.mrb[4].mxu1 %vm124_vm0, %v5493_v9 }
  0x13   :  { %749 = vmatprep.mubr.bf16.mxu1 %v6519_v22  ;;  %862 = vmatprep.mubr.bf16.mxu0 %v6519_v22 }
  0x14   :  { %722 = vmatpush1.bf16.msra.mxu1 %v5506_v20  ;;  %835 = vmatpush1.bf16.msra.mxu0 %v5509_v21 }
  0x15   :  { %943 = vmatprep.subr.bf16.mxu1 %v5514_v23  ;;  %1056 = vmatprep.subr.bf16.mxu0 %v5523_v24 }
  0xdd   :  { %v5015_v26 = vpop.f32.mrb[0].mxu0  ;;  %v5023_v27 = vpop.f32.mrb[0].mxu1 }
  0xde   :  { %v6650_v28 = vadd.f32 %v5015_v26, %v6647_v25  ;;  %v183_v29 = vpop.f32.mrb[1].mxu0  ;;  %v6653_v30 = vadd.f32 %v5023_v27, %v6647_v25  ;;  %v215_v31 = vpop.f32.mrb[1].mxu1 }
  0xdf   :  { %v6656_v32 = vadd.f32 %v6647_v25, %v183_v29  ;;  %v5016_v33 = vpop.f32.mrb[2].mxu0  ;;  %v6659_v34 = vadd.f32 %v6647_v25, %v215_v31  ;;  %v5024_v35 = vpop.f32.mrb[2].mxu1 }
  0xe0   :  { %v4409_v36 = vmul.f32 -1.442695, %v6650_v28  ;;  %v6663_v37 = vadd.f32 %v5016_v33, %v6647_v25  ;;  %v186_v38 = vpop.f32.mrb[3].mxu0  ;;  %v6666_v39 = vadd.f32 %v5024_v35, %v6647_v25  ;;  %v218_v40 = vpop.f32.mrb[3].mxu1  ;;  %v4417_v45 = vmul.f32 -1.442695, %v6653_v30 }
  0xe1   :  { %v4407_v41 = vmul.f32 -1.442695, %v6656_v32  ;;  %v6670_v42 = vadd.f32 %v6647_v25, %v186_v38  ;;  %v6673_v43 = vadd.f32 %v6647_v25, %v218_v40  ;;  %v4415_v47 = vmul.f32 -1.442695, %v6659_v34 }
  0xe2   :  { %5557 = vpow2.f32 %v4409_v36  ;;  %v4410_v44 = vmul.f32 -1.442695, %v6663_v37  ;;  %v4418_v48 = vmul.f32 -1.442695, %v6666_v39 }
  0xe3   :  { %5559 = vpow2.f32 %v4407_v41  ;;  %v4408_v46 = vmul.f32 -1.442695, %v6670_v42  ;;  %v4416_v49 = vmul.f32 -1.442695, %v6673_v43 }
  0xe4   :  { %5561 = vpow2.f32 %v4410_v44 }
  0xe5   :  { %5563 = vpow2.f32 %v4408_v46  ;;  %v5019_v50 = vpop.f32.mrb[4].mxu0  ;;  %v5027_v51 = vpop.f32.mrb[4].mxu1 }
  0xe6   :  { %5565 = vpow2.f32 %v4417_v45  ;;  %v6682_v52 = vadd.f32 %v5019_v50, %v6647_v25  ;;  %v199_v53 = vpop.f32.mrb[5].mxu0  ;;  %v6685_v54 = vadd.f32 %v5027_v51, %v6647_v25  ;;  %v231_v55 = vpop.f32.mrb[5].mxu1 }
  0xe7   :  { %5567 = vpow2.f32 %v4415_v47  ;;  %v6688_v56 = vadd.f32 %v6647_v25, %v199_v53  ;;  %v5020_v57 = vpop.f32.mrb[6].mxu0  ;;  %v5028_v58 = vpop.f32.mrb[6].mxu1  ;;  %v6702_v21 = vadd.f32 %v6647_v25, %v231_v55 }
  0xe8   :  { %5569 = vpow2.f32 %v4418_v48  ;;  %v4413_v59 = vmul.f32 -1.442695, %v6682_v52  ;;  %v6692_v60 = vadd.f32 %v5020_v57, %v6647_v25  ;;  %v202_v61 = vpop.f32.mrb[7].mxu0  ;;  %v234_v62 = vpop.f32.mrb[7].mxu1  ;;  %v4421_v2 = vmul.f32 -1.442695, %v6685_v54 }
  0xe9   :  { %5571 = vpow2.f32 %v4416_v49  ;;  %v4411_v63 = vmul.f32 -1.442695, %v6688_v56  ;;  %v6696_v0 = vadd.f32 %v6647_v25, %v202_v61  ;;  %v6705_v26 = vadd.f32 %v5028_v58, %v6647_v25 }
  0xea   :  { %5573 = vpow2.f32 %v4413_v59  ;;  %v4414_v1 = vmul.f32 -1.442695, %v6692_v60  ;;  %v6708_v31 = vadd.f32 %v6647_v25, %v234_v62  ;;  %v4419_v40 = vmul.f32 -1.442695, %v6702_v21  ;;  %v5512_v59 = vld [vmem:[%s9903_s3 + $0x10] ss:$56 sps:$4 sm:$0xff]  }
  0xeb   :  { %5575 = vpow2.f32 %v4411_v63  ;;  %v4412_v3 = vmul.f32 -1.442695, %v6696_v0  ;;  %v4422_v44 = vmul.f32 -1.442695, %v6705_v26 }
  0xec   :  { %v5558_v4 = vpop.eup %5557  ;;  %5577 = vpow2.f32 %v4414_v1  ;;  %v4420_v46 = vmul.f32 -1.442695, %v6708_v31 }
  0xed   :  { %v5560_v5 = vpop.eup %5559  ;;  %v296_v6 = vadd.f32 1.0, %v5558_v4  ;;  %5579 = vpow2.f32 %v4412_v3 }
  0xee   :  { %v5562_v7 = vpop.eup %5561  ;;  %v294_v8 = vadd.f32 1.0, %v5560_v5  ;;  %5581 = vpow2.f32 %v4421_v2 }
  0xef   :  { %v5564_v9 = vpop.eup %5563  ;;  %5583 = vrcp.f32 %v296_v6  ;;  %v297_v10 = vadd.f32 1.0, %v5562_v7  ;;  %v5520_v6 = vld [vmem:[%s9903_s3 + $0xf4] ss:$56 sps:$4 sm:$0xff]  }
  0xf0   :  { %v5566_v11 = vpop.eup %5565  ;;  %5585 = vrcp.f32 %v294_v8  ;;  %v295_v12 = vadd.f32 1.0, %v5564_v9 }
  0xf1   :  { %v5568_v13 = vpop.eup %5567  ;;  %5587 = vrcp.f32 %v297_v10  ;;  %v304_v14 = vadd.f32 1.0, %v5566_v11  ;;  %v5524_v10 = vld [vmem:[%s9903_s3 + $0x88] ss:$56 sps:$4 sm:$0xff]  }
  0xf2   :  { %v5570_v15 = vpop.eup %5569  ;;  %5589 = vrcp.f32 %v295_v12  ;;  %v302_v16 = vadd.f32 1.0, %v5568_v13 }
  0xf3   :  { %v5572_v17 = vpop.eup %5571  ;;  %5591 = vrcp.f32 %v304_v14  ;;  %v305_v18 = vadd.f32 1.0, %v5570_v15 }
  0xf4   :  { %v5574_v19 = vpop.eup %5573  ;;  %5593 = vrcp.f32 %v302_v16  ;;  %v303_v20 = vadd.f32 1.0, %v5572_v17 }
  0xf5   :  { %v5576_v23 = vpop.eup %5575  ;;  %5595 = vrcp.f32 %v305_v18  ;;  %v300_v24 = vadd.f32 1.0, %v5574_v19  ;;  %v5527_v18 = vld [vmem:[%s9903_s3 + $0xf8] ss:$56 sps:$4 sm:$0xff]   ;;  %v5532_v19 = vld [vmem:[%s9903_s3 + $0x24] ss:$56 sps:$4 sm:$0xff]  }
  0xf6   :  { %v5578_v27 = vpop.eup %5577  ;;  %5597 = vrcp.f32 %v303_v20  ;;  %v298_v29 = vadd.f32 1.0, %v5576_v23  ;;  %v5541_v23 = vld [vmem:[%s9903_s3 + $0x2c] ss:$56 sps:$4 sm:$0xff]  }
  0xf7   :  { %v5580_v33 = vpop.eup %5579  ;;  %5599 = vrcp.f32 %v300_v24  ;;  %v301_v35 = vadd.f32 1.0, %v5578_v27 }
  0xf8   :  { %v5582_v36 = vpop.eup %5581  ;;  %5601 = vrcp.f32 %v298_v29  ;;  %v299_v38 = vadd.f32 1.0, %v5580_v33 }
  0xf9   :  { %v5584_v41 = vpop.eup %5583  ;;  %5603 = vrcp.f32 %v301_v35 }
  0xfa   :  { %v5586_v45 = vpop.eup %5585  ;;  %5605 = vrcp.f32 %v299_v38  ;;  %v344_v25 = vmul.f32 %v5584_v41, %v6650_v28 }
  0xfb   :  { %v5588_v47 = vpop.eup %5587  ;;  %5607 = vpow2.f32 %v4419_v40  ;;  %v342_v51 = vmul.f32 %v5586_v45, %v6656_v32  ;;  %v5517_v32 = vld [vmem:[%s9903_s3 + $0x84] ss:$56 sps:$4 sm:$0xff]   ;;  %v5533_v45 = vld [vmem:[%s9903_s3 + $0x90] ss:$56 sps:$4 sm:$0xff]  }
  0xfc   :  { %v5590_v48 = vpop.eup %5589  ;;  %v345_v49 = vmul.f32 %v5588_v47, %v6663_v37  ;;  %5609 = vpow2.f32 %v4422_v44  ;;  %v5542_v47 = vld [vmem:[%s9903_s3 + $0x98] ss:$56 sps:$4 sm:$0xff]  }
  0xfd   :  { %v5592_v50 = vpop.eup %5591  ;;  %v343_v53 = vmul.f32 %v5590_v48, %v6670_v42  ;;  %5611 = vpow2.f32 %v4420_v46  ;;  %v5538_v46 = vld [vmem:[%s9903_s3 + $0x104] ss:$56 sps:$4 sm:$0xff]   ;;  %v5536_v48 = vld [vmem:[%s9903_s3 + $0x100] ss:$56 sps:$4 sm:$0xff]  }
  0xfe   :  { %v5594_v55 = vpop.eup %5593  ;;  %v6717_v57 = vpack.c.bf16 %v345_v49, %v344_v25  ;;  %v352_v58 = vmul.f32 %v5592_v50, %v6653_v30  ;;  %v5521_v30 = vld [vmem:[%s9903_s3 + $0x18] ss:$56 sps:$4 sm:$0xff]   ;;  %v5547_v25 = vld [vmem:[%s9903_s3 + $0x10c] ss:$56 sps:$4 sm:$0xff]   ;;  %v5545_v49 = vld [vmem:[%s9903_s3 + $0x108] ss:$56 sps:$4 sm:$0xff]  }
  0xff   :  { %v5596_v28 = vpop.eup %5595  ;;  %v6723_v37 = vpack.c.bf16 %v343_v53, %v342_v51  ;;  %v350_v61 = vmul.f32 %v5594_v55, %v6659_v34  ;;  %v5526_v34 = vld [vmem:[%s9903_s3 + $0x8c] ss:$56 sps:$4 sm:$0xff]   ;;  %v5548_v51 = vld [vmem:[%s9903_s3 + $0x30] ss:$56 sps:$4 sm:$0xff]   ;;  %v5551_v55 = vld [vmem:[%s9903_s3 + $0xa0] ss:$56 sps:$4 sm:$0xff]  }
 0x100   :  { %v5598_v42 = vpop.eup %5597  ;;  %v353_v62 = vmul.f32 %v5596_v28, %v6666_v39  ;;  %v308_v39 = vadd.f32 1.0, %v5582_v36  ;;  %v5550_v50 = vld [vmem:[%s9903_s3 + $0x34] ss:$56 sps:$4 sm:$0xff]   ;;  %v5553_v53 = vld [vmem:[%s9903_s3 + $0xa4] ss:$56 sps:$4 sm:$0xff]   ;;  %v9913_v28 = vlaneseq }
 0x101   :  { %v5600_v63 = vpop.eup %5599  ;;  %v351_v1 = vmul.f32 %v5598_v42, %v6673_v43  ;;  %4465 = vmatmul.mubr.msk.bf16.vlgmr.msra.gmra.mrb[8].mxu1 %vm692_vm1, %v6723_v37  ;;  %4473 = vmatmul.mubr.msk.bf16.vlgmr.msra.gmra.mrb[8].mxu0 %vm692_vm1, %v6723_v37  ;;  %v5515_v43 = vld [vmem:[%s9903_s3 + $0x80] ss:$56 sps:$4 sm:$0xff]  }
 0x102   :  { %v5602_v2 = vpop.eup %5601  ;;  %v6741_v3 = vpack.c.bf16 %v353_v62, %v352_v58  ;;  %944 = vmatpush1.bf16.msra.mxu1 %v5512_v59  ;;  %759 = vmatprep.mubr.bf16.mxu1 %v6519_v22  ;;  %v348_v8 = vmul.f32 %v5600_v63, %v6682_v52  ;;  %5613 = vrcp.f32 %v308_v39  ;;  %v5556_v58 = vld [vmem:[%s9903_s3 + $0x114] ss:$56 sps:$4 sm:$0xff]   ;;  %v5554_v59 = vld [vmem:[%s9903_s3 + $0x110] ss:$56 sps:$4 sm:$0xff]   ;;  %v408_v62 = vld [vmem:[%s9905_s4] sm:$0xff] }
 0x103   :  { %v5604_v4 = vpop.eup %5603  ;;  %v6747_v5 = vpack.c.bf16 %v351_v1, %v350_v61  ;;  %872 = vmatprep.mubr.bf16.mxu0 %v6519_v22  ;;  %945 = vmatprep.subr.bf16.mxu1 %v5517_v32  ;;  %v346_v11 = vmul.f32 %v5602_v2, %v6688_v56  ;;  %v5529_v56 = vld [vmem:[%s9903_s3 + $0xfc] ss:$56 sps:$4 sm:$0xff]   ;;  %v6978_v61 = vshrl.u32 %v9913_v28, 7 }
 0x104   :  { %v5606_v7 = vpop.eup %5605  ;;  %v349_v9 = vmul.f32 %v5604_v4, %v6692_v60  ;;  %1057 = vmatpush1.bf16.msra.mxu0 %v5521_v30  ;;  %v5518_v60 = vld [vmem:[%s9903_s3 + $0xf0] ss:$56 sps:$4 sm:$0xff]  }
 0x105   :  { %v347_v12 = vmul.f32 %v5606_v7, %v6696_v0  ;;  %1058 = vmatprep.subr.bf16.mxu0 %v5526_v34  ;;  %v5608_v13 = vpop.eup %5607  ;;  %9953 = vst [vmem:[#allocation3_spill] sm:$0xff] %v6978_v61  ;;  %v9912_v32 = vsub.s32 0, %v6978_v61  ;;  %v9911_v42 = vsub.s32 2, %v6978_v61  ;;  %v9909_v30 = vsub.s32 3, %v6978_v61 }
 0x106   :  { %v6760_v14 = vpack.c.bf16 %v349_v9, %v348_v8  ;;  %946 = vmatpush1.bf16.msra.mxu1 %v5515_v43  ;;  %v5610_v15 = vpop.eup %5609  ;;  %v306_v52 = vadd.f32 1.0, %v5608_v13 }
 0x107   :  { %v6762_v16 = vpack.c.bf16 %v347_v12, %v346_v11  ;;  %947 = vmatprep.subr.bf16.mxu1 %v5520_v6  ;;  %v5612_v0 = vpop.eup %5611  ;;  %v309_v17 = vadd.f32 1.0, %v5610_v15  ;;  %v6996_v63 = vrot.slane %v408_v62, %v9911_v42  ;;  %v7004_v34 = vrot.slane %v408_v62, %v9909_v30 }
 0x108   :  { %1059 = vmatpush1.bf16.msra.mxu0 %v5524_v10  ;;  %5615 = vrcp.f32 %v306_v52  ;;  %v307_v20 = vadd.f32 1.0, %v5612_v0 }
 0x109   :  { %4466 = vmatmul.mubr.msk.bf16.gmra.mrb[12].mxu1 %vm692_vm1, %v6717_v57  ;;  %4474 = vmatmul.mubr.msk.bf16.gmra.mrb[12].mxu0 %vm692_vm1, %v6717_v57  ;;  %5617 = vrcp.f32 %v309_v17 }
 0x10a   :  { %769 = vmatprep.mubr.bf16.mxu1 %v6519_v22  ;;  %882 = vmatprep.mubr.bf16.mxu0 %v6519_v22  ;;  %5619 = vrcp.f32 %v307_v20 }
 0x10b   :  { %948 = vmatpush1.bf16.msra.mxu1 %v5518_v60  ;;  %1060 = vmatprep.subr.bf16.mxu0 %v5529_v56 }
 0x10c   :  { %1061 = vmatpush1.bf16.msra.mxu0 %v5527_v18  ;;  %1169 = vmatprep.subr.bf16.mxu1 %v5532_v19  ;;  %v5614_v24 = vpop.eup %5613 }
 0x10d   :  { %1282 = vmatprep.subr.bf16.mxu0 %v5541_v23  ;;  %v356_v29 = vmul.f32 %v5614_v24, %v6685_v54  ;;  %v5530_v54 = vld [vmem:[%s9903_s3 + $0x20] ss:$56 sps:$4 sm:$0xff]  }
 0x111   :  { %4467 = vmatmul.mubr.msk.bf16.gmra.mrb[16].mxu1 %vm692_vm1, %v6762_v16  ;;  %4475 = vmatmul.mubr.msk.bf16.gmra.mrb[16].mxu0 %vm692_vm1, %v6762_v16 }
 0x112   :  { %779 = vmatprep.mubr.bf16.mxu1 %v6519_v22  ;;  %892 = vmatprep.mubr.bf16.mxu0 %v6519_v22  ;;  %v5616_v27 = vpop.eup %5615 }
 0x113   :  { %v5618_v33 = vpop.eup %5617  ;;  %v354_v35 = vmul.f32 %v5616_v27, %v6702_v21  ;;  %v5535_v21 = vld [vmem:[%s9903_s3 + $0x94] ss:$56 sps:$4 sm:$0xff]  }
 0x114   :  { %v5620_v36 = vpop.eup %5619  ;;  %v357_v38 = vmul.f32 %v5618_v33, %v6705_v26  ;;  %v5539_v26 = vld [vmem:[%s9903_s3 + $0x28] ss:$56 sps:$4 sm:$0xff]  }
 0x115   :  { %v355_v40 = vmul.f32 %v5620_v36, %v6708_v31  ;;  %v5544_v31 = vld [vmem:[%s9903_s3 + $0x9c] ss:$56 sps:$4 sm:$0xff]  }
 0x116   :  { %v6795_v41 = vpack.c.bf16 %v357_v38, %v356_v29 }
 0x117   :  { %v6797_v44 = vpack.c.bf16 %v355_v40, %v354_v35 }
 0x119   :  { %4468 = vmatmul.mubr.msk.bf16.gmra.mrb[20].mxu1 %vm692_vm1, %v6760_v14  ;;  %4476 = vmatmul.mubr.msk.bf16.gmra.mrb[20].mxu0 %vm692_vm1, %v6760_v14 }
 0x11a   :  { %789 = vmatprep.mubr.bf16.mxu1 %v6519_v22  ;;  %902 = vmatprep.mubr.bf16.mxu0 %v6519_v22 }
 0x121   :  { %4469 = vmatmul.mubr.msk.bf16.gmra.mrb[24].mxu1 %vm692_vm1, %v6747_v5  ;;  %4477 = vmatmul.mubr.msk.bf16.gmra.mrb[24].mxu0 %vm692_vm1, %v6747_v5 }
 0x122   :  { %799 = vmatprep.mubr.bf16.mxu1 %v6519_v22  ;;  %912 = vmatprep.mubr.bf16.mxu0 %v6519_v22 }
 0x129   :  { %4470 = vmatmul.mubr.msk.bf16.gmra.mrb[28].mxu1 %vm692_vm1, %v6741_v3  ;;  %4478 = vmatmul.mubr.msk.bf16.gmra.mrb[28].mxu0 %vm692_vm1, %v6741_v3 }
 0x12a   :  { %809 = vmatprep.mubr.bf16.mxu1 %v6519_v22  ;;  %922 = vmatprep.mubr.bf16.mxu0 %v6519_v22 }
 0x131   :  { %4471 = vmatmul.mubr.msk.bf16.gmra.mrb[32].mxu1 %vm692_vm1, %v6797_v44  ;;  %4479 = vmatmul.mubr.msk.bf16.gmra.mrb[32].mxu0 %vm692_vm1, %v6797_v44 }
 0x132   :  { %819 = vmatprep.mubr.bf16.mxu1 %v6519_v22  ;;  %932 = vmatprep.mubr.bf16.mxu0 %v6519_v22 }
 0x139   :  { %4472 = vmatmul.mubr.msk.bf16.gmra.mrb[36].mxu1 %vm692_vm1, %v6795_v41  ;;  %4480 = vmatmul.mubr.msk.bf16.gmra.mrb[36].mxu0 %vm692_vm1, %v6795_v41 }
 0x13a   :  { %975 = vmatprep.mubr.bf16.mxu1 %v6519_v22  ;;  %1088 = vmatprep.mubr.bf16.mxu0 %v6519_v22 }
 0x141   :  { %4481 = vmatmul.mubr.msk.bf16.vlgmr.msra.gmra.mrb[40].mxu1 %vm692_vm1, %v6723_v37  ;;  %4489 = vmatmul.mubr.msk.bf16.vlgmr.msra.gmra.mrb[40].mxu0 %vm692_vm1, %v6723_v37 }
 0x142   :  { %1170 = vmatpush1.bf16.msra.mxu1 %v5530_v54  ;;  %985 = vmatprep.mubr.bf16.mxu1 %v6519_v22 }
 0x143   :  { %1098 = vmatprep.mubr.bf16.mxu0 %v6519_v22  ;;  %1171 = vmatprep.subr.bf16.mxu1 %v5535_v21 }
 0x144   :  { %1283 = vmatpush1.bf16.msra.mxu0 %v5539_v26 }
 0x145   :  { %1284 = vmatprep.subr.bf16.mxu0 %v5544_v31 }
 0x146   :  { %1172 = vmatpush1.bf16.msra.mxu1 %v5533_v45 }
 0x147   :  { %1173 = vmatprep.subr.bf16.mxu1 %v5538_v46 }
 0x148   :  { %1285 = vmatpush1.bf16.msra.mxu0 %v5542_v47 }
 0x149   :  { %4482 = vmatmul.mubr.msk.bf16.gmra.mrb[44].mxu1 %vm692_vm1, %v6717_v57  ;;  %4490 = vmatmul.mubr.msk.bf16.gmra.mrb[44].mxu0 %vm692_vm1, %v6717_v57 }
 0x14a   :  { %995 = vmatprep.mubr.bf16.mxu1 %v6519_v22  ;;  %1108 = vmatprep.mubr.bf16.mxu0 %v6519_v22 }
 0x14b   :  { %1174 = vmatpush1.bf16.msra.mxu1 %v5536_v48  ;;  %1286 = vmatprep.subr.bf16.mxu0 %v5547_v25 }
 0x14c   :  { %1287 = vmatpush1.bf16.msra.mxu0 %v5545_v49  ;;  %1395 = vmatprep.subr.bf16.mxu1 %v5550_v50 }
 0x151   :  { %4483 = vmatmul.mubr.msk.bf16.gmra.mrb[48].mxu1 %vm692_vm1, %v6762_v16  ;;  %4491 = vmatmul.mubr.msk.bf16.gmra.mrb[48].mxu0 %vm692_vm1, %v6762_v16 }
 0x152   :  { %1005 = vmatprep.mubr.bf16.mxu1 %v6519_v22  ;;  %1118 = vmatprep.mubr.bf16.mxu0 %v6519_v22 }
 0x159   :  { %4484 = vmatmul.mubr.msk.bf16.gmra.mrb[52].mxu1 %vm692_vm1, %v6760_v14  ;;  %4492 = vmatmul.mubr.msk.bf16.gmra.mrb[52].mxu0 %vm692_vm1, %v6760_v14 }
 0x15a   :  { %1015 = vmatprep.mubr.bf16.mxu1 %v6519_v22  ;;  %1128 = vmatprep.mubr.bf16.mxu0 %v6519_v22 }
 0x161   :  { %4485 = vmatmul.mubr.msk.bf16.gmra.mrb[56].mxu1 %vm692_vm1, %v6747_v5  ;;  %4493 = vmatmul.mubr.msk.bf16.gmra.mrb[56].mxu0 %vm692_vm1, %v6747_v5 }
 0x162   :  { %1025 = vmatprep.mubr.bf16.mxu1 %v6519_v22  ;;  %1138 = vmatprep.mubr.bf16.mxu0 %v6519_v22 }
 0x169   :  { %4486 = vmatmul.mubr.msk.bf16.gmra.mrb[60].mxu1 %vm692_vm1, %v6741_v3  ;;  %4494 = vmatmul.mubr.msk.bf16.gmra.mrb[60].mxu0 %vm692_vm1, %v6741_v3 }
 0x16a   :  { %1035 = vmatprep.mubr.bf16.mxu1 %v6519_v22  ;;  %1148 = vmatprep.mubr.bf16.mxu0 %v6519_v22 }
 0x171   :  { %4487 = vmatmul.mubr.msk.bf16.gmra.mrb[64].mxu1 %vm692_vm1, %v6797_v44  ;;  %4495 = vmatmul.mubr.msk.bf16.gmra.mrb[64].mxu0 %vm692_vm1, %v6797_v44 }
 0x172   :  { %1045 = vmatprep.mubr.bf16.mxu1 %v6519_v22  ;;  %1158 = vmatprep.mubr.bf16.mxu0 %v6519_v22 }
 0x179   :  { %4488 = vmatmul.mubr.msk.bf16.gmra.mrb[68].mxu1 %vm692_vm1, %v6795_v41  ;;  %4496 = vmatmul.mubr.msk.bf16.gmra.mrb[68].mxu0 %vm692_vm1, %v6795_v41 }
 0x17a   :  { %1201 = vmatprep.mubr.bf16.mxu1 %v6519_v22  ;;  %1314 = vmatprep.mubr.bf16.mxu0 %v6519_v22 }
 0x181   :  { %4497 = vmatmul.mubr.msk.bf16.vlgmr.msra.gmra.mrb[72].mxu1 %vm692_vm1, %v6723_v37  ;;  %4505 = vmatmul.mubr.msk.bf16.vlgmr.msra.gmra.mrb[72].mxu0 %vm692_vm1, %v6723_v37 }
 0x182   :  { %1396 = vmatpush1.bf16.msra.mxu1 %v5548_v51  ;;  %1211 = vmatprep.mubr.bf16.mxu1 %v6519_v22 }
 0x183   :  { %1324 = vmatprep.mubr.bf16.mxu0 %v6519_v22  ;;  %1397 = vmatprep.subr.bf16.mxu1 %v5553_v53 }
 0x186   :  { %1398 = vmatpush1.bf16.msra.mxu1 %v5551_v55 }
 0x187   :  { %1399 = vmatprep.subr.bf16.mxu1 %v5556_v58 }
 0x189   :  { %4498 = vmatmul.mubr.msk.bf16.gmra.mrb[76].mxu1 %vm692_vm1, %v6717_v57  ;;  %4506 = vmatmul.mubr.msk.bf16.gmra.mrb[76].mxu0 %vm692_vm1, %v6717_v57 }
 0x18a   :  { %1221 = vmatprep.mubr.bf16.mxu1 %v6519_v22  ;;  %1334 = vmatprep.mubr.bf16.mxu0 %v6519_v22 }
 0x18b   :  { %1400 = vmatpush1.bf16.msra.mxu1 %v5554_v59 }
 0x191   :  { %4499 = vmatmul.mubr.msk.bf16.gmra.mrb[80].mxu1 %vm692_vm1, %v6762_v16  ;;  %4507 = vmatmul.mubr.msk.bf16.gmra.mrb[80].mxu0 %vm692_vm1, %v6762_v16 }
 0x192   :  { %1231 = vmatprep.mubr.bf16.mxu1 %v6519_v22  ;;  %1344 = vmatprep.mubr.bf16.mxu0 %v6519_v22 }
 0x199   :  { %4500 = vmatmul.mubr.msk.bf16.gmra.mrb[84].mxu1 %vm692_vm1, %v6760_v14  ;;  %4508 = vmatmul.mubr.msk.bf16.gmra.mrb[84].mxu0 %vm692_vm1, %v6760_v14 }
 0x19a   :  { %1241 = vmatprep.mubr.bf16.mxu1 %v6519_v22  ;;  %1354 = vmatprep.mubr.bf16.mxu0 %v6519_v22 }
 0x1a1   :  { %4501 = vmatmul.mubr.msk.bf16.gmra.mrb[88].mxu1 %vm692_vm1, %v6747_v5  ;;  %4509 = vmatmul.mubr.msk.bf16.gmra.mrb[88].mxu0 %vm692_vm1, %v6747_v5 }
 0x1a2   :  { %1251 = vmatprep.mubr.bf16.mxu1 %v6519_v22  ;;  %1364 = vmatprep.mubr.bf16.mxu0 %v6519_v22 }
 0x1a9   :  { %4502 = vmatmul.mubr.msk.bf16.gmra.mrb[92].mxu1 %vm692_vm1, %v6741_v3  ;;  %4510 = vmatmul.mubr.msk.bf16.gmra.mrb[92].mxu0 %vm692_vm1, %v6741_v3 }
 0x1aa   :  { %1261 = vmatprep.mubr.bf16.mxu1 %v6519_v22  ;;  %1374 = vmatprep.mubr.bf16.mxu0 %v6519_v22 }
 0x1b1   :  { %4503 = vmatmul.mubr.msk.bf16.gmra.mrb[96].mxu1 %vm692_vm1, %v6797_v44  ;;  %4511 = vmatmul.mubr.msk.bf16.gmra.mrb[96].mxu0 %vm692_vm1, %v6797_v44 }
 0x1b2   :  { %1271 = vmatprep.mubr.bf16.mxu1 %v6519_v22  ;;  %1384 = vmatprep.mubr.bf16.mxu0 %v6519_v22 }
 0x1b9   :  { %4504 = vmatmul.mubr.msk.bf16.gmra.mrb[100].mxu1 %vm692_vm1, %v6795_v41  ;;  %4512 = vmatmul.mubr.msk.bf16.gmra.mrb[100].mxu0 %vm692_vm1, %v6795_v41 }
 0x1ba   :  { %1427 = vmatprep.mubr.bf16.mxu1 %v6519_v22 }
 0x1c1   :  { %4513 = vmatmul.mubr.msk.bf16.vlgmr.msra.gmra.mrb[104].mxu1 %vm692_vm1, %v6723_v37  ;;  %v9910_v37 = vsub.s32 1, %v6978_v61 }
 0x1c2   :  { %1437 = vmatprep.mubr.bf16.mxu1 %v6519_v22 }
 0x1c3   :  { %v7000_v1 = vrot.slane %v408_v62, %v9910_v37 }
 0x1c9   :  { %4514 = vmatmul.mubr.msk.bf16.gmra.mrb[108].mxu1 %vm692_vm1, %v6717_v57  ;;  %v6992_v57 = vrot.slane %v408_v62, %v9912_v32 }
 0x1ca   :  { %1447 = vmatprep.mubr.bf16.mxu1 %v6519_v22 }
 0x1d1   :  { %4515 = vmatmul.mubr.msk.bf16.gmra.mrb[112].mxu1 %vm692_vm1, %v6762_v16 }
 0x1d2   :  { %1457 = vmatprep.mubr.bf16.mxu1 %v6519_v22 }
 0x1d4   :  { %v751_v2 = vpop.f32.mrb[8].mxu1  ;;  %v864_v39 = vpop.f32.mrb[8].mxu0 }
 0x1d5   :  { %v7008_v43 = vadd.f32 %v751_v2, %v6992_v57  ;;  %v7011_v4 = vadd.f32 %v864_v39, %v6996_v63  ;;  %v753_v6 = vpop.f32.mrb[9].mxu1  ;;  %v866_v7 = vpop.f32.mrb[9].mxu0 }
 0x1d6   :  { %v7014_v8 = vadd.f32 %v753_v6, %v7000_v1  ;;  %v7017_v9 = vadd.f32 %v866_v7, %v7004_v34  ;;  %v755_v10 = vpop.f32.mrb[10].mxu1  ;;  %v868_v11 = vpop.f32.mrb[10].mxu0 }
 0x1d7   :  { %v4521_v12 = vmul.f32 -1.442695, %v7008_v43  ;;  %v4523_v13 = vmul.f32 -1.442695, %v7011_v4  ;;  %v7022_v15 = vadd.f32 %v755_v10, %v6992_v57  ;;  %v7025_v16 = vadd.f32 %v868_v11, %v6996_v63  ;;  %v757_v52 = vpop.f32.mrb[11].mxu1  ;;  %v870_v60 = vpop.f32.mrb[11].mxu0 }
 0x1d8   :  { %9954 = vst [vmem:[#allocation4_spill] sm:$0xff] %v7017_v9  ;;  %v4522_v56 = vmul.f32 -1.442695, %v7014_v8  ;;  %v4524_v0 = vmul.f32 -1.442695, %v7017_v9  ;;  %v7030_v17 = vadd.f32 %v757_v52, %v7000_v1  ;;  %v7033_v18 = vadd.f32 %v870_v60, %v7004_v34 }
 0x1d9   :  { %5621 = vpow2.f32 %v4521_v12  ;;  %v4535_v19 = vmul.f32 -1.442695, %v7022_v15  ;;  %4516 = vmatmul.mubr.msk.bf16.gmra.mrb[116].mxu1 %vm692_vm1, %v6760_v14  ;;  %v4537_v20 = vmul.f32 -1.442695, %v7025_v16 }
 0x1da   :  { %9955 = vst [vmem:[#allocation5_spill] sm:$0xff] %v7033_v18  ;;  %5623 = vpow2.f32 %v4523_v13  ;;  %1467 = vmatprep.mubr.bf16.mxu1 %v6519_v22  ;;  %v4536_v23 = vmul.f32 -1.442695, %v7030_v17  ;;  %v4538_v24 = vmul.f32 -1.442695, %v7033_v18 }
 0x1db   :  { %5625 = vpow2.f32 %v4522_v56 }
 0x1dc   :  { %5627 = vpow2.f32 %v4524_v0  ;;  %v761_v27 = vpop.f32.mrb[12].mxu1  ;;  %v874_v29 = vpop.f32.mrb[12].mxu0 }
 0x1dd   :  { %5629 = vpow2.f32 %v4535_v19  ;;  %v7043_v33 = vadd.f32 %v761_v27, %v6992_v57  ;;  %v7046_v35 = vadd.f32 %v874_v29, %v6996_v63  ;;  %v763_v14 = vpop.f32.mrb[13].mxu1  ;;  %v876_v36 = vpop.f32.mrb[13].mxu0 }
 0x1de   :  { %5631 = vpow2.f32 %v4537_v20  ;;  %v7049_v38 = vadd.f32 %v763_v14, %v7000_v1  ;;  %v7052_v40 = vadd.f32 %v876_v36, %v7004_v34  ;;  %v765_v54 = vpop.f32.mrb[14].mxu1  ;;  %v878_v21 = vpop.f32.mrb[14].mxu0 }
 0x1df   :  { %5633 = vpow2.f32 %v4536_v23  ;;  %v4549_v26 = vmul.f32 -1.442695, %v7043_v33  ;;  %v4551_v31 = vmul.f32 -1.442695, %v7046_v35  ;;  %v7057_v45 = vadd.f32 %v765_v54, %v6992_v57  ;;  %v767_v46 = vpop.f32.mrb[15].mxu1  ;;  %v880_v47 = vpop.f32.mrb[15].mxu0 }
 0x1e0   :  { %9956 = vst [vmem:[#allocation6_spill] sm:$0xff] %v7052_v40  ;;  %5635 = vpow2.f32 %v4538_v24  ;;  %v4550_v48 = vmul.f32 -1.442695, %v7049_v38  ;;  %v4552_v25 = vmul.f32 -1.442695, %v7052_v40  ;;  %v7072_v24 = vadd.f32 %v878_v21, %v6996_v63 }
 0x1e1   :  { %5637 = vpow2.f32 %v4549_v26  ;;  %v4563_v49 = vmul.f32 -1.442695, %v7057_v45  ;;  %4517 = vmatmul.mubr.msk.bf16.gmra.mrb[120].mxu1 %vm692_vm1, %v6747_v5  ;;  %v7076_v54 = vadd.f32 %v767_v46, %v7000_v1 }
 0x1e2   :  { %5639 = vpow2.f32 %v4551_v31  ;;  %1477 = vmatprep.mubr.bf16.mxu1 %v6519_v22 }
 0x1e3   :  { %v5622_v50 = vpop.eup %5621  ;;  %5641 = vpow2.f32 %v4550_v48  ;;  %v7079_v48 = vadd.f32 %v880_v47, %v7004_v34 }
 0x1e4   :  { %v5624_v51 = vpop.eup %5623  ;;  %v2180_v53 = vadd.f32 1.0, %v5622_v50  ;;  %5643 = vpow2.f32 %v4552_v25  ;;  %v771_v55 = vpop.f32.mrb[16].mxu1 }
 0x1e5   :  { %v884_v58 = vpop.f32.mrb[16].mxu0  ;;  %v5626_v59 = vpop.eup %5625  ;;  %v2182_v62 = vadd.f32 1.0, %v5624_v51  ;;  %5645 = vpow2.f32 %v4563_v49  ;;  %9957 = vst [vmem:[#allocation7_spill] sm:$0xff] %v7079_v48  ;;  %v4565_v51 = vmul.f32 -1.442695, %v7072_v24 }
 0x1e6   :  { %v773_v2 = vpop.f32.mrb[17].mxu1  ;;  %v886_v39 = vpop.f32.mrb[17].mxu0  ;;  %5647 = vrcp.f32 %v2180_v53  ;;  %v2181_v7 = vadd.f32 1.0, %v5626_v59  ;;  %v7085_v53 = vadd.f32 %v771_v55, %v6992_v57  ;;  %v7092_v47 = vadd.f32 %v884_v58, %v6996_v63 }
 0x1e7   :  { %v5628_v6 = vpop.eup %5627  ;;  %v775_v10 = vpop.f32.mrb[18].mxu1  ;;  %5649 = vrcp.f32 %v2182_v62  ;;  %v4566_v58 = vmul.f32 -1.442695, %v7079_v48 }
 0x1e8   :  { %v7065_v5 = vpop.f32.mrb[18].mxu0  ;;  %v5630_v11 = vpop.eup %5629  ;;  %v2183_v12 = vadd.f32 1.0, %v5628_v6  ;;  %5651 = vrcp.f32 %v2181_v7  ;;  %v7095_v7 = vadd.f32 %v773_v2, %v7000_v1  ;;  %v7109_v2 = vadd.f32 %v775_v10, %v6992_v57 }
 0x1e9   :  { %v7067_v13 = vpop.f32.mrb[19].mxu1  ;;  %v5632_v52 = vpop.eup %5631  ;;  %v2194_v60 = vadd.f32 1.0, %v5630_v11  ;;  %4518 = vmatmul.mubr.msk.bf16.gmra.mrb[124].mxu1 %vm692_vm1, %v6741_v3  ;;  %v7121_v10 = vadd.f32 %v7065_v5, %v6996_v63 }
 0x1ea   :  { %v890_v56 = vpop.f32.mrb[19].mxu0  ;;  %v5634_v0 = vpop.eup %5633  ;;  %5653 = vrcp.f32 %v2183_v12  ;;  %v2196_v19 = vadd.f32 1.0, %v5632_v52  ;;  %1487 = vmatprep.mubr.bf16.mxu1 %v6519_v22 }
 0x1eb   :  { %v5636_v20 = vpop.eup %5635  ;;  %5655 = vrcp.f32 %v2194_v60  ;;  %v2195_v23 = vadd.f32 1.0, %v5634_v0  ;;  %v4564_v60 = vmul.f32 -1.442695, %v7076_v54  ;;  %v7103_v0 = vadd.f32 %v886_v39, %v7004_v34 }
 0x1ec   :  { %v5638_v27 = vpop.eup %5637  ;;  %5657 = vrcp.f32 %v2196_v19  ;;  %v2197_v29 = vadd.f32 1.0, %v5636_v20  ;;  %v781_v26 = vpop.f32.mrb[20].mxu1 }
 0x1ed   :  { %v5640_v14 = vpop.eup %5639  ;;  %5659 = vrcp.f32 %v2195_v23  ;;  %v2208_v36 = vadd.f32 1.0, %v5638_v27  ;;  %v894_v21 = vpop.f32.mrb[20].mxu0  ;;  %9958 = vst [vmem:[#allocation8_spill] sm:$0xff] %v7103_v0  ;;  %v4577_v27 = vmul.f32 -1.442695, %v7085_v53 }
 0x1ee   :  { %v5642_v31 = vpop.eup %5641  ;;  %5661 = vrcp.f32 %v2197_v29  ;;  %v2210_v3 = vadd.f32 1.0, %v5640_v14  ;;  %v7081_v25 = vpop.f32.mrb[21].mxu1  ;;  %v4579_v29 = vmul.f32 -1.442695, %v7092_v47  ;;  %v4578_v14 = vmul.f32 -1.442695, %v7095_v7 }
 0x1ef   :  { %v5644_v49 = vpop.eup %5643  ;;  %5663 = vrcp.f32 %v2208_v36  ;;  %v2209_v50 = vadd.f32 1.0, %v5642_v31  ;;  %v7087_v46 = vpop.f32.mrb[21].mxu0  ;;  %v7126_v31 = vadd.f32 %v7067_v13, %v7000_v1 }
 0x1f0   :  { %v7089_v59 = vpop.f32.mrb[22].mxu1  ;;  %v5646_v62 = vpop.eup %5645  ;;  %5665 = vrcp.f32 %v2210_v3  ;;  %v2211_v6 = vadd.f32 1.0, %v5644_v49 }
 0x1f1   :  { %v7097_v11 = vpop.f32.mrb[22].mxu0  ;;  %v7099_v12 = vpop.f32.mrb[23].mxu1  ;;  %5667 = vrcp.f32 %v2209_v50  ;;  %v2222_v55 = vadd.f32 1.0, %v5646_v62  ;;  %4519 = vmatmul.mubr.msk.bf16.gmra.mrb[128].mxu1 %vm692_vm1, %v6797_v44  ;;  %v4580_v44 = vmul.f32 -1.442695, %v7103_v0 }
 0x1f2   :  { %v5648_v52 = vpop.eup %5647  ;;  %v7105_v19 = vpop.f32.mrb[23].mxu0  ;;  %5669 = vrcp.f32 %v2211_v6  ;;  %1497 = vmatprep.mubr.bf16.mxu1 %v6519_v22  ;;  %v7129_v22 = vadd.f32 %v890_v56, %v7004_v34  ;;  %v4591_v62 = vmul.f32 -1.442695, %v7109_v2  ;;  %v4592_v30 = vmul.f32 -1.442695, %v7126_v31 }
 0x1f3   :  { %v5650_v20 = vpop.eup %5649  ;;  %5671 = vrcp.f32 %v2222_v55 }
 0x1f4   :  { %v5652_v23 = vpop.eup %5651  ;;  %5673 = vpow2.f32 %v4565_v51  ;;  %9960 = vst [vmem:[#allocation10_spill] sm:$0xff] %v7129_v22  ;;  %v7131_v3 = vpop.f32.mrb[24].mxu1  ;;  %v7136_v51 = vmul.f32 %v5648_v52, %v7008_v43  ;;  %v7147_v55 = vmul.f32 %v5650_v20, %v7011_v4  ;;  %v7153_v43 = vadd.f32 %v781_v26, %v6992_v57 }
 0x1f5   :  { %v7115_v39 = vpop.eup %5653  ;;  %5675 = vpow2.f32 %v4564_v60  ;;  %v7133_v49 = vpop.f32.mrb[24].mxu0  ;;  %v4593_v4 = vmul.f32 -1.442695, %v7121_v10  ;;  %v7165_v20 = vadd.f32 %v894_v21, %v6996_v63 }
 0x1f6   :  { %9959 = vst [vmem:[#allocation9_spill] sm:$0xff] %v7115_v39  ;;  %v5656_v36 = vpop.eup %5655  ;;  %5677 = vpow2.f32 %v4566_v58  ;;  %v7142_v6 = vpop.f32.mrb[25].mxu1  ;;  %9961 = vst [vmem:[#allocation11_spill] sm:$0xff] %v7147_v55 }
 0x1f7   :  { %v5658_v50 = vpop.eup %5657  ;;  %v7139_v5 = vmul.f32 %v5656_v36, %v7022_v15  ;;  %v7144_v13 = vpop.f32.mrb[25].mxu0  ;;  %5679 = vpow2.f32 %v4577_v27 }
 0x1f8   :  { %v5660_v56 = vpop.eup %5659  ;;  %v7150_v60 = vmul.f32 %v5658_v50, %v7025_v16  ;;  %v7155_v15 = vpop.f32.mrb[26].mxu1  ;;  %5681 = vpow2.f32 %v4579_v29  ;;  %v4594_v29 = vmul.f32 -1.442695, %v7129_v22 }
 0x1f9   :  { %v7157_v52 = vpop.f32.mrb[26].mxu0  ;;  %v7159_v58 = vpop.eup %5661  ;;  %v5031_v36 = vpack.c.bf16 %v7139_v5, %v7136_v51  ;;  %5683 = vpow2.f32 %v4578_v14  ;;  %4520 = vmatmul.mubr.msk.bf16.gmra.mrb[132].mxu1 %vm692_vm1, %v6795_v41  ;;  %v2867_v51 = vmul.f32 %v5660_v56, %v7030_v17  ;;  %v4605_v5 = vmul.f32 -1.442695, %v7153_v43 }
 0x1fa   :  { %9962 = vst [vmem:[#allocation12_spill] sm:$0xff] %v7150_v60  ;;  %9963 = vst [vmem:[#allocation13_spill] sm:$0xff] %v7159_v58  ;;  %v7167_v16 = vpop.f32.mrb[27].mxu1  ;;  %v7169_v27 = vpop.f32.mrb[27].mxu0  ;;  %5685 = vpow2.f32 %v4580_v44  ;;  %v4607_v14 = vmul.f32 -1.442695, %v7165_v20  ;;  %v2853_v44 = vmul.f32 %v5652_v23, %v7014_v8 }
 0x1fb   :  { %v5664_v26 = vpop.eup %5663  ;;  %5687 = vpow2.f32 %v4591_v62 }
 0x1fc   :  { %v7174_v37 = vpop.eup %5665  ;;  %5689 = vpow2.f32 %v4593_v4  ;;  %v801_v50 = vpop.f32.mrb[28].mxu1  ;;  %v7190_v55 = vmul.f32 %v5664_v26, %v7043_v33  ;;  %v5029_v8 = vpack.c.bf16 %v2867_v51, %v2853_v44 }
 0x1fd   :  { %v7179_v21 = vpop.eup %5667  ;;  %5691 = vpow2.f32 %v4592_v30  ;;  %v7187_v28 = vpop.f32.mrb[28].mxu0  ;;  %v7200_v30 = vadd.f32 %v801_v50, %v6992_v57 }
 0x1fe   :  { %v7183_v42 = vpop.eup %5669  ;;  %5693 = vpow2.f32 %v4594_v29  ;;  %v7195_v62 = vpop.f32.mrb[29].mxu1  ;;  %5030 = vmatprep.subr.bf16.mxu0 %v5029_v8 }
 0x1ff   :  { %9964 = vst [vmem:[#allocation14_spill] sm:$0xff] %v7183_v42  ;;  %v5672_v32 = vpop.eup %5671  ;;  %v7197_v56 = vpop.f32.mrb[29].mxu0  ;;  %5695 = vpow2.f32 %v4605_v5  ;;  %5032 = vmatpush1.bf16.msra.mxu0 %v5031_v36  ;;  %v7223_v36 = vadd.f32 %v7089_v59, %v6992_v57 }
 0x200   :  { %v5674_v41 = vpop.eup %5673  ;;  %v7193_v17 = vmul.f32 %v5672_v32, %v7057_v45  ;;  %v805_v23 = vpop.f32.mrb[30].mxu1  ;;  %5697 = vpow2.f32 %v4607_v14  ;;  %v7215_v32 = vadd.f32 %v7081_v25, %v7000_v1  ;;  %v7229_v25 = vadd.f32 %v7097_v11, %v6996_v63 }
 0x201   :  { %v5676_v4 = vpop.eup %5675  ;;  %v2224_v60 = vadd.f32 1.0, %v5674_v41  ;;  %v7202_v0 = vpop.f32.mrb[30].mxu0  ;;  %v7211_v48 = vadd.f32 %v805_v23, %v6992_v57 }
 0x202   :  { %v5678_v33 = vpop.eup %5677  ;;  %v2223_v45 = vadd.f32 1.0, %v5676_v4  ;;  %v7206_v26 = vpop.f32.mrb[31].mxu1  ;;  %v4606_v42 = vmul.f32 -1.442695, %v7215_v32 }
 0x203   :  { %v7208_v29 = vpop.f32.mrb[31].mxu0  ;;  %v5680_v22 = vpop.eup %5679  ;;  %5699 = vrcp.f32 %v2224_v60  ;;  %v2225_v5 = vadd.f32 1.0, %v5678_v33  ;;  %v7219_v60 = vadd.f32 %v7087_v46, %v7004_v34  ;;  %v7233_v46 = vadd.f32 %v7099_v12, %v7000_v1 }
 0x204   :  { %v5682_v51 = vpop.eup %5681  ;;  %5701 = vrcp.f32 %v2223_v45  ;;  %v2236_v50 = vadd.f32 1.0, %v5680_v22  ;;  %v811_v23 = vpop.f32.mrb[32].mxu1 }
 0x205   :  { %v5684_v44 = vpop.eup %5683  ;;  %5703 = vrcp.f32 %v2225_v5  ;;  %v2238_v41 = vadd.f32 1.0, %v5682_v51  ;;  %9965 = vst [vmem:[#allocation15_spill] sm:$0xff] %v7219_v60  ;;  %v7225_v33 = vpop.f32.mrb[32].mxu0  ;;  %v4608_v12 = vmul.f32 -1.442695, %v7219_v60 }
 0x206   :  { %v5686_v4 = vpop.eup %5685  ;;  %5705 = vrcp.f32 %v2236_v50  ;;  %v2237_v14 = vadd.f32 1.0, %v5684_v44  ;;  %v7235_v51 = vpop.f32.mrb[33].mxu1  ;;  %v4620_v60 = vmul.f32 -1.442695, %v7233_v46 }
 0x207   :  { %v5688_v8 = vpop.eup %5687  ;;  %5707 = vrcp.f32 %v2238_v41  ;;  %v2239_v22 = vadd.f32 1.0, %v5686_v4  ;;  %v7237_v50 = vpop.f32.mrb[33].mxu0  ;;  %v7240_v41 = vadd.f32 %v811_v23, %v6992_v57  ;;  %v7251_v23 = vadd.f32 %v7105_v19, %v7004_v34 }
 0x208   :  { %v5690_v45 = vpop.eup %5689  ;;  %5709 = vrcp.f32 %v2237_v14  ;;  %v2250_v5 = vadd.f32 1.0, %v5688_v8  ;;  %v815_v4 = vpop.f32.mrb[34].mxu1 }
 0x209   :  { %v5692_v59 = vpop.eup %5691  ;;  %5711 = vrcp.f32 %v2239_v22  ;;  %v2252_v44 = vadd.f32 1.0, %v5690_v45  ;;  %v7242_v14 = vpop.f32.mrb[34].mxu0  ;;  %v4619_v22 = vmul.f32 -1.442695, %v7223_v36  ;;  %9967 = vst [vmem:[#allocation17_spill] sm:$0xff] %v7251_v23 }
 0x20a   :  { %v5694_v8 = vpop.eup %5693  ;;  %5713 = vrcp.f32 %v2250_v5  ;;  %v2251_v11 = vadd.f32 1.0, %v5692_v59  ;;  %v7246_v40 = vpop.f32.mrb[35].mxu1  ;;  %v4621_v59 = vmul.f32 -1.442695, %v7229_v25 }
 0x20b   :  { %9966 = vst [vmem:[#allocation16_spill] sm:$0xff] %v7246_v40  ;;  %v5696_v39 = vpop.eup %5695  ;;  %5715 = vrcp.f32 %v2252_v44  ;;  %v2253_v9 = vadd.f32 1.0, %v5694_v8  ;;  %v7253_v45 = vpop.f32.mrb[35].mxu0  ;;  %v7259_v44 = vadd.f32 %v7131_v3, %v6992_v57  ;;  %v7262_v8 = vadd.f32 %v815_v4, %v6992_v57 }
 0x20c   :  { %9968 = vst [vmem:[#allocation18_spill] sm:$0xff] %v7253_v45  ;;  %v5698_v58 = vpop.eup %5697  ;;  %5717 = vrcp.f32 %v2251_v11  ;;  %v2264_v5 = vadd.f32 1.0, %v5696_v39  ;;  %v7266_v45 = vmul.f32 %v7174_v37, %v7046_v35  ;;  %v2881_v3 = vmul.f32 %v7179_v21, %v7049_v38  ;;  %v821_v35 = vpop.f32.mrb[36].mxu1 }
 0x20d   :  { %v5700_v18 = vpop.eup %5699  ;;  %5719 = vrcp.f32 %v2253_v9  ;;  %v2266_v40 = vadd.f32 1.0, %v5698_v58  ;;  %v7273_v9 = vadd.f32 %v7133_v49, %v6996_v63  ;;  %v7282_v37 = vadd.f32 %v7142_v6, %v7000_v1 }
 0x20e   :  { %v5702_v19 = vpop.eup %5701  ;;  %9969 = vst [vmem:[#allocation19_spill] sm:$0xff] %v7266_v45  ;;  %v7269_v39 = vmul.f32 %v5700_v18, %v7072_v24  ;;  %5721 = vrcp.f32 %v2264_v5  ;;  %v7284_v18 = vpop.f32.mrb[36].mxu0  ;;  %v7290_v11 = vadd.f32 %v7144_v13, %v7004_v34  ;;  %v7294_v38 = vadd.f32 %v7155_v15, %v6992_v57 }
 0x20f   :  { %v7275_v58 = vpop.eup %5703  ;;  %v2895_v4 = vmul.f32 %v5702_v19, %v7076_v54  ;;  %5723 = vrcp.f32 %v2266_v40  ;;  %v7296_v40 = vpop.f32.mrb[37].mxu1  ;;  %v4622_v21 = vmul.f32 -1.442695, %v7251_v23  ;;  %v7303_v5 = vadd.f32 %v7157_v52, %v6996_v63 }
 0x210   :  { %9970 = vst [vmem:[#allocation20_spill] sm:$0xff] %v7269_v39  ;;  %9971 = vst [vmem:[#allocation21_spill] sm:$0xff] %v7275_v58  ;;  %v5706_v24 = vpop.eup %5705  ;;  %5725 = vpow2.f32 %v4606_v42  ;;  %v7298_v54 = vpop.f32.mrb[37].mxu0  ;;  %v4633_v15 = vmul.f32 -1.442695, %v7259_v44 }
 0x211   :  { %9972 = vst [vmem:[#allocation22_spill] sm:$0xff] %v7290_v11  ;;  %v5708_v6 = vpop.eup %5707  ;;  %5727 = vpow2.f32 %v4608_v12  ;;  %v5033_v42 = vpack.c.bf16 %v2895_v4, %v2881_v3  ;;  %v825_v19 = vpop.f32.mrb[38].mxu1  ;;  %v4635_v12 = vmul.f32 -1.442695, %v7273_v9  ;;  %v4634_v52 = vmul.f32 -1.442695, %v7282_v37 }
 0x212   :  { %v7305_v13 = vpop.f32.mrb[38].mxu0  ;;  %v5710_v49 = vpop.eup %5709  ;;  %5729 = vpow2.f32 %v4619_v22  ;;  %v7317_v3 = vadd.f32 %v821_v35, %v6992_v57  ;;  %v4636_v22 = vmul.f32 -1.442695, %v7290_v11  ;;  %v4647_v23 = vmul.f32 -1.442695, %v7294_v38 }
 0x213   :  { %9973 = vst [vmem:[#allocation23_spill] sm:$0xff] %v7305_v13  ;;  %v7308_v45 = vpop.f32.mrb[39].mxu1  ;;  %v7310_v39 = vpop.f32.mrb[39].mxu0  ;;  %5731 = vpow2.f32 %v4621_v59  ;;  %5034 = vmatprep.subr.bf16.mxu0 %v5033_v42  ;;  %v9977_v59 = vpack.c.bf16 %v7193_v17, %v7190_v55  ;;  %v2908_v42 = vmul.f32 %v5706_v24, %v7085_v53  ;;  %v7332_v11 = vmul.f32 %v5708_v6, %v7092_v47 }
 0x214   :  { %9974 = vst [vmem:[#allocation24_spill] sm:$0xff] %v7308_v45  ;;  %9975 = vst [vmem:[#allocation25_spill] sm:$0xff] %v7310_v39  ;;  %v7312_v58 = vpop.eup %5711  ;;  %5733 = vpow2.f32 %v4620_v60  ;;  %v7323_v39 = vadd.f32 %v7167_v16, %v7000_v1  ;;  %v4649_v60 = vmul.f32 -1.442695, %v7303_v5  ;;  %v2909_v13 = vmul.f32 %v5710_v49, %v7095_v7  ;;  %v7344_v24 = vpop.f32.mrb[40].mxu1 }
 0x215   :  { %9976 = vst [vmem:[#allocation26_spill] sm:$0xff] %v7312_v58  ;;  %v5714_v4 = vpop.eup %5713  ;;  %5036 = vmatpush1.bf16.msra.mxu0 %v9977_v59  ;;  %5735 = vpow2.f32 %v4622_v21  ;;  %9978 = vst [vmem:[#allocation27_spill] sm:$0xff] %v7332_v11  ;;  %v7346_v21 = vpop.f32.mrb[40].mxu0 }
 0x216   :  { %v5716_v58 = vpop.eup %5715  ;;  %v2922_v35 = vmul.f32 %v5714_v4, %v7109_v2  ;;  %5737 = vpow2.f32 %v4633_v15  ;;  %v7342_v2 = vadd.f32 %v825_v19, %v6992_v57  ;;  %v7355_v49 = vpop.f32.mrb[41].mxu0 }
 0x217   :  { %v5718_v45 = vpop.eup %5717  ;;  %v7336_v16 = vmul.f32 %v5716_v58, %v7121_v10  ;;  %5739 = vpow2.f32 %v4635_v12  ;;  %v4648_v10 = vmul.f32 -1.442695, %v7323_v39  ;;  %v7353_v58 = vpop.f32.mrb[41].mxu1 }
 0x218   :  { %v7338_v55 = vpop.eup %5719  ;;  %v5039_v17 = vpack.c.bf16 %v2922_v35, %v2908_v42  ;;  %v2923_v53 = vmul.f32 %v5718_v45, %v7126_v31  ;;  %5741 = vpow2.f32 %v4634_v52  ;;  %v7359_v45 = vpop.f32.mrb[42].mxu1 }
 0x219   :  { %9979 = vst [vmem:[#allocation28_spill] sm:$0xff] %v7336_v16  ;;  %v7348_v47 = vpop.eup %5721  ;;  %5743 = vpow2.f32 %v4636_v22  ;;  %v7361_v6 = vpop.f32.mrb[42].mxu0 }
 0x21a   :  { %v7357_v31 = vpop.eup %5723  ;;  %v5037_v57 = vpack.c.bf16 %v2923_v53, %v2909_v13  ;;  %5745 = vpow2.f32 %v4647_v23  ;;  %v7363_v15 = vpop.f32.mrb[43].mxu1 }
 0x21b   :  { %v5726_v19 = vpop.eup %5725  ;;  %v7365_v12 = vpop.f32.mrb[43].mxu0  ;;  %5747 = vpow2.f32 %v4649_v60 }
 0x21c   :  { %9980 = vst [vmem:[#allocation29_spill] sm:$0xff] %v7365_v12  ;;  %v5728_v52 = vpop.eup %5727  ;;  %v2265_v4 = vadd.f32 1.0, %v5726_v19  ;;  %5038 = vmatprep.subr.bf16.mxu0 %v5037_v57  ;;  %5749 = vpow2.f32 %v4648_v10  ;;  %v7367_v11 = vpop.f32.mrb[44].mxu1 }
 0x21d   :  { %v5730_v59 = vpop.eup %5729  ;;  %v2267_v42 = vadd.f32 1.0, %v5728_v52  ;;  %5040 = vmatpush1.bf16.msra.mxu0 %v5039_v17  ;;  %9981 = vst [vmem:[#allocation30_spill] sm:$0xff] %v7367_v11  ;;  %v7369_v16 = vpop.f32.mrb[44].mxu0  ;;  %v7375_v52 = vadd.f32 %v7169_v27, %v7004_v34 }
 0x21e   :  { %v5732_v22 = vpop.eup %5731  ;;  %5751 = vrcp.f32 %v2265_v4  ;;  %v2278_v13 = vadd.f32 1.0, %v5730_v59  ;;  %9982 = vst [vmem:[#allocation31_spill] sm:$0xff] %v7369_v16  ;;  %v7371_v57 = vpop.f32.mrb[45].mxu1 }
 0x21f   :  { %v5734_v35 = vpop.eup %5733  ;;  %5753 = vrcp.f32 %v2267_v42  ;;  %v2280_v53 = vadd.f32 1.0, %v5732_v22  ;;  %9983 = vst [vmem:[#allocation32_spill] sm:$0xff] %v7371_v57  ;;  %v7377_v4 = vpop.f32.mrb[45].mxu0 }
 0x220   :  { %v5736_v7 = vpop.eup %5735  ;;  %5755 = vrcp.f32 %v2278_v13  ;;  %v2279_v23 = vadd.f32 1.0, %v5734_v35  ;;  %9984 = vst [vmem:[#allocation33_spill] sm:$0xff] %v7377_v4  ;;  %v7379_v22 = vpop.f32.mrb[46].mxu1 }
 0x221   :  { %v5738_v19 = vpop.eup %5737  ;;  %5757 = vrcp.f32 %v2280_v53  ;;  %v2281_v60 = vadd.f32 1.0, %v5736_v7  ;;  %9985 = vst [vmem:[#allocation34_spill] sm:$0xff] %v7379_v22  ;;  %v7381_v13 = vpop.f32.mrb[46].mxu0  ;;  %v7385_v53 = vadd.f32 %v7187_v28, %v6996_v63  ;;  %v4650_v28 = vmul.f32 -1.442695, %v7375_v52 }
 0x222   :  { %v5740_v10 = vpop.eup %5739  ;;  %5759 = vrcp.f32 %v2279_v23  ;;  %v2292_v17 = vadd.f32 1.0, %v5738_v19  ;;  %9986 = vst [vmem:[#allocation35_spill] sm:$0xff] %v7381_v13  ;;  %v7387_v23 = vpop.f32.mrb[47].mxu1 }
 0x223   :  { %v5742_v59 = vpop.eup %5741  ;;  %5761 = vrcp.f32 %v2281_v60  ;;  %v2294_v42 = vadd.f32 1.0, %v5740_v10  ;;  %9987 = vst [vmem:[#allocation36_spill] sm:$0xff] %v7387_v23  ;;  %v7389_v27 = vpop.f32.mrb[47].mxu0  ;;  %v7393_v60 = vadd.f32 %v7195_v62, %v7000_v1  ;;  %v7397_v10 = vadd.f32 %v7197_v56, %v7004_v34 }
 0x224   :  { %v5744_v35 = vpop.eup %5743  ;;  %5763 = vrcp.f32 %v2292_v17  ;;  %v2293_v7 = vadd.f32 1.0, %v5742_v59  ;;  %9988 = vst [vmem:[#allocation37_spill] sm:$0xff] %v7389_v27  ;;  %v4661_v27 = vmul.f32 -1.442695, %v7200_v30  ;;  %v4663_v56 = vmul.f32 -1.442695, %v7385_v53 }
 0x225   :  { %v5746_v19 = vpop.eup %5745  ;;  %5765 = vrcp.f32 %v2294_v42  ;;  %v2295_v4 = vadd.f32 1.0, %v5744_v35  ;;  %9989 = vst [vmem:[#allocation38_spill] sm:$0xff] %v7397_v10  ;;  %v7403_v42 = vadd.f32 %v7202_v0, %v6996_v63  ;;  %v7406_v22 = vpop.f32.mrb[48].mxu1 }
 0x226   :  { %v5748_v17 = vpop.eup %5747  ;;  %5767 = vrcp.f32 %v2293_v7  ;;  %v2306_v59 = vadd.f32 1.0, %v5746_v19  ;;  %9990 = vst [vmem:[#allocation39_spill] sm:$0xff] %v7406_v22  ;;  %v7408_v7 = vpop.f32.mrb[48].mxu0 }
 0x227   :  { %v5750_v13 = vpop.eup %5749  ;;  %5769 = vrcp.f32 %v2295_v4  ;;  %v2308_v23 = vadd.f32 1.0, %v5748_v17  ;;  %9991 = vst [vmem:[#allocation40_spill] sm:$0xff] %v7408_v7  ;;  %v4662_v4 = vmul.f32 -1.442695, %v7393_v60  ;;  %v4664_v17 = vmul.f32 -1.442695, %v7397_v10 }
 0x228   :  { %v5752_v62 = vpop.eup %5751  ;;  %5771 = vrcp.f32 %v2306_v59  ;;  %v2307_v35 = vadd.f32 1.0, %v5750_v13  ;;  %v7414_v57 = vpop.f32.mrb[49].mxu1  ;;  %v4675_v13 = vmul.f32 -1.442695, %v7211_v48  ;;  %v7421_v59 = vadd.f32 %v7206_v26, %v7000_v1 }
 0x229   :  { %v7410_v19 = vpop.eup %5753  ;;  %5773 = vrcp.f32 %v2308_v23  ;;  %9992 = vst [vmem:[#allocation41_spill] sm:$0xff] %v7414_v57  ;;  %v7416_v0 = vpop.f32.mrb[49].mxu0  ;;  %v7425_v7 = vadd.f32 %v7208_v29, %v7004_v34  ;;  %v4677_v57 = vmul.f32 -1.442695, %v7403_v42  ;;  %v7441_v29 = vmul.f32 %v7357_v31, %v7165_v20 }
 0x22a   :  { %9993 = vst [vmem:[#allocation42_spill] sm:$0xff] %v7416_v0  ;;  %v5756_v16 = vpop.eup %5755  ;;  %5775 = vrcp.f32 %v2307_v35  ;;  %v7427_v23 = vpop.f32.mrb[50].mxu1  ;;  %v2936_v0 = vmul.f32 %v7348_v47, %v7153_v43  ;;  %v7448_v43 = vadd.f32 %v7225_v33, %v6996_v63  ;;  %v7459_v31 = vadd.f32 %v7235_v51, %v7000_v1 }
 0x22b   :  { %9994 = vst [vmem:[#allocation43_spill] sm:$0xff] %v7427_v23  ;;  %v7429_v22 = vpop.f32.mrb[50].mxu0  ;;  %v5758_v10 = vpop.eup %5757  ;;  %v2950_v35 = vmul.f32 %v5756_v16, %v7223_v36  ;;  %5777 = vpow2.f32 %v4650_v28  ;;  %9998 = vst [vmem:[#allocation47_spill] sm:$0xff] %v7441_v29  ;;  %v2937_v16 = vmul.f32 %v5752_v62, %v7215_v32  ;;  %v7464_v32 = vadd.f32 %v7237_v50, %v7004_v34 }
 0x22c   :  { %9995 = vst [vmem:[#allocation44_spill] sm:$0xff] %v7429_v22  ;;  %v7435_v11 = vpop.f32.mrb[51].mxu1  ;;  %v7437_v26 = vpop.f32.mrb[51].mxu0  ;;  %v7444_v22 = vmul.f32 %v5758_v10, %v7229_v25  ;;  %5779 = vpow2.f32 %v4661_v27  ;;  %v4676_v25 = vmul.f32 -1.442695, %v7421_v59 }
 0x22d   :  { %9996 = vst [vmem:[#allocation45_spill] sm:$0xff] %v7435_v11  ;;  %9997 = vst [vmem:[#allocation46_spill] sm:$0xff] %v7437_v26  ;;  %v5760_v12 = vpop.eup %5759  ;;  %v5043_v47 = vpack.c.bf16 %v2950_v35, %v2936_v0  ;;  %5781 = vpow2.f32 %v4663_v56  ;;  %v4678_v27 = vmul.f32 -1.442695, %v7425_v7  ;;  %v4689_v10 = vmul.f32 -1.442695, %v7240_v41 }
 0x22e   :  { %9999 = vst [vmem:[#allocation48_spill] sm:$0xff] %v7444_v22  ;;  %v7450_v36 = vpop.eup %5761  ;;  %v2951_v28 = vmul.f32 %v5760_v12, %v7233_v46  ;;  %5783 = vpow2.f32 %v4662_v4  ;;  %v7467_v62 = vpop.f32.mrb[52].mxu1  ;;  %v4691_v51 = vmul.f32 -1.442695, %v7448_v43  ;;  %v10041_v11 = vld [vmem:[#allocation24_spill] sm:$0xff] }
 0x22f   :  { %v5764_v26 = vpop.eup %5763  ;;  %5785 = vpow2.f32 %v4664_v17  ;;  %10000 = vst [vmem:[#allocation49_spill] sm:$0xff] %v7467_v62  ;;  %v7469_v56 = vpop.f32.mrb[52].mxu0  ;;  %v7621_v23 = vadd.f32 %v10041_v11, %v7000_v1 }
 0x230   :  { %v5766_v33 = vpop.eup %5765  ;;  %v5041_v46 = vpack.c.bf16 %v2951_v28, %v2937_v16  ;;  %5787 = vpow2.f32 %v4675_v13  ;;  %10001 = vst [vmem:[#allocation50_spill] sm:$0xff] %v7469_v56  ;;  %v7474_v17 = vpop.f32.mrb[53].mxu1  ;;  %v4690_v13 = vmul.f32 -1.442695, %v7459_v31  ;;  %v2964_v20 = vmul.f32 %v5764_v26, %v7259_v44 }
 0x231   :  { %v5768_v12 = vpop.eup %5767  ;;  %5789 = vpow2.f32 %v4677_v57  ;;  %10002 = vst [vmem:[#allocation51_spill] sm:$0xff] %v7474_v17  ;;  %v7476_v0 = vpop.f32.mrb[53].mxu0  ;;  %v7491_v22 = vmul.f32 %v5766_v33, %v7273_v9 }
 0x232   :  { %v7471_v4 = vpop.eup %5769  ;;  %5042 = vmatprep.subr.bf16.mxu0 %v5041_v46  ;;  %10003 = vst [vmem:[#allocation52_spill] sm:$0xff] %v7476_v0  ;;  %5791 = vpow2.f32 %v4676_v25  ;;  %v7479_v35 = vpop.f32.mrb[54].mxu1  ;;  %v4692_v46 = vmul.f32 -1.442695, %v7464_v32  ;;  %v2965_v44 = vmul.f32 %v5768_v12, %v7282_v37 }
 0x233   :  { %v5772_v50 = vpop.eup %5771  ;;  %5044 = vmatpush1.bf16.msra.mxu0 %v5043_v47  ;;  %10004 = vst [vmem:[#allocation53_spill] sm:$0xff] %v7479_v35  ;;  %v7481_v16 = vpop.f32.mrb[54].mxu0  ;;  %5793 = vpow2.f32 %v4678_v27  ;;  %10008 = vst [vmem:[#allocation57_spill] sm:$0xff] %v7491_v22  ;;  %v10037_v22 = vld [vmem:[#allocation7_spill] sm:$0xff] }
 0x234   :  { %10005 = vst [vmem:[#allocation54_spill] sm:$0xff] %v7481_v16  ;;  %v5774_v28 = vpop.eup %5773  ;;  %v2978_v57 = vmul.f32 %v5772_v50, %v7294_v38  ;;  %v7486_v29 = vpop.f32.mrb[55].mxu1  ;;  %5795 = vpow2.f32 %v4689_v10  ;;  %v10021_v50 = vld [vmem:[#allocation4_spill] sm:$0xff] }
 0x235   :  { %10006 = vst [vmem:[#allocation55_spill] sm:$0xff] %v7486_v29  ;;  %v7488_v0 = vpop.f32.mrb[55].mxu0  ;;  %v5776_v25 = vpop.eup %5775  ;;  %v7494_v47 = vmul.f32 %v5774_v28, %v7303_v5  ;;  %5797 = vpow2.f32 %v4691_v51  ;;  %v9932_v28 = vsub.s32 4, %v6978_v61  ;;  %v438_v51 = vsub.s32 6, %v6978_v61 }
 0x236   :  { %10007 = vst [vmem:[#allocation56_spill] sm:$0xff] %v7488_v0  ;;  %v5778_v16 = vpop.eup %5777  ;;  %v5047_v26 = vpack.c.bf16 %v2978_v57, %v2964_v20  ;;  %v2979_v38 = vmul.f32 %v5776_v25, %v7323_v39  ;;  %5799 = vpow2.f32 %v4690_v13  ;;  %v7501_v37 = vpop.f32.mrb[56].mxu1 }
 0x237   :  { %10009 = vst [vmem:[#allocation58_spill] sm:$0xff] %v7494_v47  ;;  %v5780_v27 = vpop.eup %5779  ;;  %v2309_v0 = vadd.f32 1.0, %v5778_v16  ;;  %5801 = vpow2.f32 %v4692_v46  ;;  %10010 = vst [vmem:[#allocation59_spill] sm:$0xff] %v7501_v37  ;;  %v7503_v20 = vpop.f32.mrb[56].mxu0  ;;  %v10038_v47 = vld [vmem:[#allocation21_spill] sm:$0xff] }
 0x238   :  { %v5782_v29 = vpop.eup %5781  ;;  %v2320_v9 = vadd.f32 1.0, %v5780_v27  ;;  %v5045_v33 = vpack.c.bf16 %v2979_v38, %v2965_v44  ;;  %10011 = vst [vmem:[#allocation60_spill] sm:$0xff] %v7503_v20  ;;  %v7506_v13 = vpop.f32.mrb[57].mxu1  ;;  %v7514_v44 = vadd.f32 %v7242_v14, %v6996_v63  ;;  %v10025_v20 = vld [vmem:[#allocation18_spill] sm:$0xff] }
 0x239   :  { %v5784_v5 = vpop.eup %5783  ;;  %5803 = vrcp.f32 %v2309_v0  ;;  %v2322_v10 = vadd.f32 1.0, %v5782_v29  ;;  %10012 = vst [vmem:[#allocation61_spill] sm:$0xff] %v7506_v13  ;;  %v7508_v16 = vpop.f32.mrb[57].mxu0 }
 0x23a   :  { %v5786_v39 = vpop.eup %5785  ;;  %5805 = vrcp.f32 %v2320_v9  ;;  %v2321_v12 = vadd.f32 1.0, %v5784_v5  ;;  %5046 = vmatprep.subr.bf16.mxu0 %v5045_v33  ;;  %10013 = vst [vmem:[#allocation62_spill] sm:$0xff] %v7508_v16  ;;  %v7510_v29 = vpop.f32.mrb[58].mxu1  ;;  %v10016_v9 = vld [vmem:[#allocation5_spill] sm:$0xff]  ;;  %v4703_v16 = vmul.f32 -1.442695, %v7262_v8 }
 0x23b   :  { %v5788_v57 = vpop.eup %5787  ;;  %5807 = vrcp.f32 %v2322_v10  ;;  %v2323_v0 = vadd.f32 1.0, %v5786_v39  ;;  %5048 = vmatpush1.bf16.msra.mxu0 %v5047_v26  ;;  %10014 = vst [vmem:[#allocation63_spill] sm:$0xff] %v7510_v29  ;;  %v7516_v38 = vpop.f32.mrb[58].mxu0  ;;  %v10017_v33 = vld [vmem:[#allocation13_spill] sm:$0xff]  ;;  %v7525_v26 = vld [vmem:[%s9905_s4] sm:$0xff] }
 0x23c   :  { %v5790_v46 = vpop.eup %5789  ;;  %5809 = vrcp.f32 %v2321_v12  ;;  %v2334_v25 = vadd.f32 1.0, %v5788_v57  ;;  %10015 = vst [vmem:[#allocation64_spill] sm:$0xff] %v7516_v38  ;;  %v7520_v5 = vmul.f32 %v10017_v33, %v10016_v9  ;;  %v7530_v39 = vrot.slane %v7525_v26, %v9932_v28  ;;  %v7532_v14 = vpop.f32.mrb[59].mxu1  ;;  %v10022_v38 = vld [vmem:[#allocation9_spill] sm:$0xff] }
 0x23d   :  { %v5792_v27 = vpop.eup %5791  ;;  %5811 = vrcp.f32 %v2323_v0  ;;  %v2336_v10 = vadd.f32 1.0, %v5790_v46  ;;  %10019 = vst [vmem:[#allocation13_spill] sm:$0xff] %v7532_v14  ;;  %v7534_v12 = vpop.f32.mrb[59].mxu0  ;;  %v7537_v0 = vrot.slane %v7525_v26, %v438_v51  ;;  %v7542_v29 = vmul.f32 %v10022_v38, %v10021_v50 }
 0x23e   :  { %10018 = vst [vmem:[#allocation5_spill] sm:$0xff] %v7520_v5  ;;  %10020 = vst [vmem:[#allocation65_spill] sm:$0xff] %v7534_v12  ;;  %v5794_v57 = vpop.eup %5793  ;;  %5813 = vrcp.f32 %v2334_v25  ;;  %v2335_v9 = vadd.f32 1.0, %v5792_v27  ;;  %v4705_v25 = vmul.f32 -1.442695, %v7514_v44  ;;  %v10024_v27 = vld [vmem:[#allocation16_spill] sm:$0xff]  ;;  %v7552_v50 = vadd.f32 %v10025_v20, %v7004_v34 }
 0x23f   :  { %v5796_v33 = vpop.eup %5795  ;;  %10023 = vst [vmem:[#allocation4_spill] sm:$0xff] %v7542_v29  ;;  %5815 = vrcp.f32 %v2336_v10  ;;  %v2337_v28 = vadd.f32 1.0, %v5794_v57  ;;  %v7548_v51 = vadd.f32 %v10024_v27, %v7000_v1  ;;  %v7556_v10 = vpop.f32.mrb[60].mxu1  ;;  %v7562_v27 = vadd.f32 %v7284_v18, %v6996_v63 }
 0x240   :  { %v5798_v14 = vpop.eup %5797  ;;  %5817 = vrcp.f32 %v2335_v9  ;;  %v2348_v12 = vadd.f32 1.0, %v5796_v33  ;;  %10026 = vst [vmem:[#allocation9_spill] sm:$0xff] %v7556_v10  ;;  %v7558_v57 = vpop.f32.mrb[60].mxu0 }
 0x241   :  { %v5800_v13 = vpop.eup %5799  ;;  %5819 = vrcp.f32 %v2337_v28  ;;  %v2350_v46 = vadd.f32 1.0, %v5798_v14  ;;  %10027 = vst [vmem:[#allocation16_spill] sm:$0xff] %v7558_v57  ;;  %v7566_v28 = vadd.f32 %v7296_v40, %v7000_v1  ;;  %v7568_v20 = vpop.f32.mrb[61].mxu1  ;;  %v4704_v40 = vmul.f32 -1.442695, %v7548_v51 }
 0x242   :  { %v5802_v9 = vpop.eup %5801  ;;  %5821 = vrcp.f32 %v2348_v12  ;;  %v2349_v33 = vadd.f32 1.0, %v5800_v13  ;;  %10028 = vst [vmem:[#allocation18_spill] sm:$0xff] %v7568_v20  ;;  %v7570_v14 = vpop.f32.mrb[61].mxu0  ;;  %v7576_v12 = vadd.f32 %v7298_v54, %v7004_v34  ;;  %v10032_v20 = vsub.s32 5, %v6978_v61 }
 0x243   :  { %10029 = vst [vmem:[#allocation66_spill] sm:$0xff] %v7570_v14  ;;  %v7572_v38 = vpop.eup %5803  ;;  %5823 = vrcp.f32 %v2350_v46  ;;  %v2351_v10 = vadd.f32 1.0, %v5802_v9  ;;  %v7578_v13 = vpop.f32.mrb[62].mxu1  ;;  %v9935_v9 = vmov 0.0   ;;  %v4706_v46 = vmul.f32 -1.442695, %v7552_v50 }
 0x244   :  { %10030 = vst [vmem:[#allocation67_spill] sm:$0xff] %v7578_v13  ;;  %v7580_v18 = vpop.f32.mrb[62].mxu0  ;;  %v5806_v57 = vpop.eup %5805  ;;  %5825 = vrcp.f32 %v2349_v33  ;;  %v7586_v14 = vrot.slane %v7525_v26, %v10032_v20  ;;  %3170 = vmatprep.mubr.f32.mxu0 %v9935_v9  ;;  %3312 = vmatprep.mubr.f32.mxu1 %v9935_v9  ;;  %v10035_v33 = vld [vmem:[#allocation6_spill] sm:$0xff]  ;;  %v7601_v20 = vmul.f32 %v10038_v47, %v10037_v22  ;;  %v10039_v9 = vld [vmem:[#allocation23_spill] sm:$0xff]  ;;  %v4718_v22 = vmul.f32 -1.442695, %v7566_v28 }
 0x245   :  { %10031 = vst [vmem:[#allocation68_spill] sm:$0xff] %v7580_v18  ;;  %v7590_v54 = vpop.f32.mrb[63].mxu1  ;;  %v7592_v37 = vpop.f32.mrb[63].mxu0  ;;  %v10036_v13 = vld [vmem:[#allocation14_spill] sm:$0xff]  ;;  %5827 = vrcp.f32 %v2351_v10  ;;  %v7608_v56 = vadd.f32 %v10039_v9, %v6996_v63  ;;  %v4720_v47 = vmul.f32 -1.442695, %v7576_v12 }
 0x246   :  { %10033 = vst [vmem:[#allocation69_spill] sm:$0xff] %v7590_v54  ;;  %10034 = vst [vmem:[#allocation70_spill] sm:$0xff] %v7592_v37  ;;  %v5808_v18 = vpop.eup %5807  ;;  %v7597_v35 = vmul.f32 %v10036_v13, %v10035_v33  ;;  %5829 = vpow2.f32 %v4703_v16  ;;  %v4717_v54 = vmul.f32 -1.442695, %v7317_v3  ;;  %v4719_v37 = vmul.f32 -1.442695, %v7562_v27 }
 0x247   :  { %v5810_v17 = vpop.eup %5809  ;;  %v10040_v13 = vld [vmem:[#allocation10_spill] sm:$0xff]  ;;  %5831 = vpow2.f32 %v4705_v25  ;;  %v4731_v10 = vmul.f32 -1.442695, %v7342_v2  ;;  %v10042_v63 = vld [vmem:[#allocation25_spill] sm:$0xff]  ;;  %v7635_v5 = vpop.f32.mrb[64].mxu0  ;;  %v7638_v11 = vmul.f32 %v5808_v18, %v7385_v53 }
 0x248   :  { %v7610_v62 = vpop.eup %5811  ;;  %v7614_v33 = vmul.f32 %v7338_v55, %v10040_v13  ;;  %5833 = vpow2.f32 %v4704_v40  ;;  %v7625_v9 = vadd.f32 %v10042_v63, %v7004_v34  ;;  %v2992_v55 = vmul.f32 %v5806_v57, %v7200_v30  ;;  %v7633_v40 = vpop.f32.mrb[64].mxu1  ;;  %10044 = vst [vmem:[#allocation14_spill] sm:$0xff] %v7635_v5 }
 0x249   :  { %v5814_v16 = vpop.eup %5813  ;;  %5835 = vpow2.f32 %v4706_v46  ;;  %v7631_v13 = vadd.f32 %v7344_v24, %v7530_v39  ;;  %10043 = vst [vmem:[#allocation6_spill] sm:$0xff] %v7633_v40  ;;  %10045 = vst [vmem:[#allocation7_spill] sm:$0xff] %v7638_v11  ;;  %v4733_v30 = vmul.f32 -1.442695, %v7608_v56  ;;  %v7646_v57 = vpop.f32.mrb[65].mxu0  ;;  %v2993_v46 = vmul.f32 %v5810_v17, %v7393_v60  ;;  %v10074_v11 = vld [vmem:[#allocation38_spill] sm:$0xff] }
 0x24a   :  { %v5816_v29 = vpop.eup %5815  ;;  %v3006_v25 = vmul.f32 %v5814_v16, %v7211_v48  ;;  %5837 = vpow2.f32 %v4717_v54  ;;  %v7644_v48 = vpop.f32.mrb[65].mxu1  ;;  %10048 = vst [vmem:[#allocation10_spill] sm:$0xff] %v7646_v57  ;;  %v10052_v54 = vld [vmem:[#allocation26_spill] sm:$0xff]  ;;  %v4732_v60 = vmul.f32 -1.442695, %v7621_v23  ;;  %v10055_v57 = vsub.s32 7, %v6978_v61 }
 0x24b   :  { %v5818_v1 = vpop.eup %5817  ;;  %v7641_v34 = vmul.f32 %v5816_v29, %v7403_v42  ;;  %10047 = vst [vmem:[#allocation23_spill] sm:$0xff] %v7644_v48  ;;  %5839 = vpow2.f32 %v4719_v37  ;;  %v7652_v53 = vpop.f32.mrb[66].mxu1  ;;  %v10051_v29 = vld [vmem:[#allocation8_spill] sm:$0xff] }
 0x24c   :  { %v7648_v24 = vpop.eup %5819  ;;  %v5051_v16 = vpack.c.bf16 %v3006_v25, %v2992_v55  ;;  %v3007_v63 = vmul.f32 %v5818_v1, %v7421_v59  ;;  %10049 = vst [vmem:[#allocation24_spill] sm:$0xff] %v7652_v53  ;;  %v7654_v18 = vpop.f32.mrb[66].mxu0  ;;  %v7660_v5 = vmul.f32 %v10052_v54, %v10051_v29  ;;  %5841 = vpow2.f32 %v4718_v22 }
 0x24d   :  { %10046 = vst [vmem:[#allocation21_spill] sm:$0xff] %v7641_v34  ;;  %10050 = vst [vmem:[#allocation25_spill] sm:$0xff] %v7654_v18  ;;  %v7656_v42 = vpop.eup %5821  ;;  %v7665_v17 = vpop.f32.mrb[67].mxu1  ;;  %5843 = vpow2.f32 %v4720_v47  ;;  %v4734_v55 = vmul.f32 -1.442695, %v7625_v9  ;;  %v10058_v47 = vld [vmem:[#allocation17_spill] sm:$0xff] }
 0x24e   :  { %10053 = vst [vmem:[#allocation8_spill] sm:$0xff] %v7665_v17  ;;  %v7667_v59 = vpop.f32.mrb[67].mxu0  ;;  %v7669_v37 = vpop.eup %5823  ;;  %v5049_v25 = vpack.c.bf16 %v3007_v63, %v2993_v46  ;;  %5845 = vpow2.f32 %v4731_v10  ;;  %v4525_v22 = vmul.f32 -1.442695, %v7631_v13  ;;  %v7688_v10 = vadd.f32 %v7346_v21, %v7537_v0  ;;  %v10077_v34 = vld [vmem:[#allocation33_spill] sm:$0xff] }
 0x24f   :  { %10054 = vst [vmem:[#allocation26_spill] sm:$0xff] %v7667_v59  ;;  %v7674_v29 = vpop.eup %5825  ;;  %5847 = vpow2.f32 %v4733_v30  ;;  %v7682_v59 = vrot.slane %v7525_v26, %v10055_v57  ;;  %v7692_v30 = vadd.f32 %v7353_v58, %v7586_v14  ;;  %v7694_v26 = vpop.f32.mrb[68].mxu1 }
 0x250   :  { %v7677_v54 = vpop.eup %5827  ;;  %5050 = vmatprep.subr.bf16.mxu0 %v5049_v25  ;;  %5849 = vpow2.f32 %v4732_v60  ;;  %10056 = vst [vmem:[#allocation71_spill] sm:$0xff] %v7694_v26  ;;  %v7696_v57 = vpop.f32.mrb[68].mxu0  ;;  %v7700_v60 = vmul.f32 %v7450_v36, %v10058_v47  ;;  %v10063_v47 = vld [vmem:[#allocation15_spill] sm:$0xff] }
 0x251   :  { %v5830_v46 = vpop.eup %5829  ;;  %5052 = vmatpush1.bf16.msra.mxu0 %v5051_v16  ;;  %5851 = vpow2.f32 %v4734_v55  ;;  %10057 = vst [vmem:[#allocation72_spill] sm:$0xff] %v7696_v57  ;;  %v7702_v55 = vpop.f32.mrb[69].mxu1  ;;  %v7708_v58 = vadd.f32 %v7355_v49, %v7682_v59  ;;  %v7712_v57 = vadd.f32 %v7359_v45, %v7530_v39 }
 0x252   :  { %v5832_v63 = vpop.eup %5831  ;;  %v2362_v1 = vadd.f32 1.0, %v5830_v46  ;;  %5853 = vpow2.f32 %v4525_v22  ;;  %10059 = vst [vmem:[#allocation17_spill] sm:$0xff] %v7702_v55  ;;  %v7704_v46 = vpop.f32.mrb[69].mxu0 }
 0x253   :  { %v5834_v25 = vpop.eup %5833  ;;  %v2364_v16 = vadd.f32 1.0, %v5832_v63  ;;  %10060 = vst [vmem:[#allocation73_spill] sm:$0xff] %v7704_v46  ;;  %v7714_v26 = vpop.f32.mrb[70].mxu1  ;;  %v7720_v63 = vmul.f32 %v7410_v19, %v10063_v47  ;;  %v10067_v47 = vld [vmem:[#allocation22_spill] sm:$0xff] }
 0x254   :  { %v5836_v21 = vpop.eup %5835  ;;  %5855 = vrcp.f32 %v2362_v1  ;;  %v2363_v17 = vadd.f32 1.0, %v5834_v25  ;;  %10061 = vst [vmem:[#allocation74_spill] sm:$0xff] %v7714_v26  ;;  %v7716_v36 = vpop.f32.mrb[70].mxu0  ;;  %v7724_v1 = vmul.f32 %v7572_v38, %v7375_v52  ;;  %v7729_v26 = vmul.f32 -1.442695, %v7688_v10 }
 0x255   :  { %10062 = vst [vmem:[#allocation75_spill] sm:$0xff] %v7716_v36  ;;  %v5838_v22 = vpop.eup %5837  ;;  %5857 = vrcp.f32 %v2364_v16  ;;  %v2365_v49 = vadd.f32 1.0, %v5836_v21  ;;  %v7726_v25 = vpop.f32.mrb[71].mxu1  ;;  %v7732_v36 = vmul.f32 -1.442695, %v7692_v30  ;;  %v7738_v52 = vmul.f32 %v7471_v4, %v10067_v47 }
 0x256   :  { %10064 = vst [vmem:[#allocation15_spill] sm:$0xff] %v7724_v1  ;;  %10065 = vst [vmem:[#allocation76_spill] sm:$0xff] %v7726_v25  ;;  %v5840_v46 = vpop.eup %5839  ;;  %5859 = vrcp.f32 %v2363_v17  ;;  %v2376_v45 = vadd.f32 1.0, %v5838_v22  ;;  %v7734_v55 = vpop.f32.mrb[71].mxu0  ;;  %v7744_v22 = vadd.f32 %v7361_v6, %v7537_v0  ;;  %v10069_v6 = vld [vmem:[#allocation29_spill] sm:$0xff] }
 0x257   :  { %10066 = vst [vmem:[#allocation77_spill] sm:$0xff] %v7734_v55  ;;  %v5842_v19 = vpop.eup %5841  ;;  %10068 = vst [vmem:[#allocation22_spill] sm:$0xff] %v7738_v52  ;;  %5861 = vrcp.f32 %v2365_v49  ;;  %v2378_v38 = vadd.f32 1.0, %v5840_v46  ;;  %v7748_v55 = vadd.f32 %v7363_v15, %v7586_v14  ;;  %v4528_v49 = vmul.f32 -1.442695, %v7708_v58  ;;  %v7758_v18 = vpop.f32.mrb[72].mxu1 }
 0x258   :  { %v5844_v17 = vpop.eup %5843  ;;  %5863 = vrcp.f32 %v2376_v45  ;;  %v2377_v21 = vadd.f32 1.0, %v5842_v19  ;;  %v4539_v19 = vmul.f32 -1.442695, %v7712_v57  ;;  %v7756_v16 = vadd.f32 %v10069_v6, %v7682_v59  ;;  %10070 = vst [vmem:[#allocation29_spill] sm:$0xff] %v7758_v18  ;;  %v7760_v15 = vpop.f32.mrb[72].mxu0 }
 0x259   :  { %v5846_v25 = vpop.eup %5845  ;;  %5865 = vrcp.f32 %v2378_v38  ;;  %v2379_v4 = vadd.f32 1.0, %v5844_v17  ;;  %10071 = vst [vmem:[#allocation78_spill] sm:$0xff] %v7760_v15  ;;  %v7764_v17 = vmul.f32 %v7648_v24, %v7425_v7  ;;  %v7770_v53 = vpop.f32.mrb[73].mxu1  ;;  %v4541_v18 = vmul.f32 -1.442695, %v7744_v22 }
 0x25a   :  { %v5848_v47 = vpop.eup %5847  ;;  %5867 = vrcp.f32 %v2377_v21  ;;  %v2390_v45 = vadd.f32 1.0, %v5846_v25  ;;  %v10072_v21 = vld [vmem:[#allocation30_spill] sm:$0xff]  ;;  %v4540_v15 = vmul.f32 -1.442695, %v7748_v55  ;;  %v7776_v7 = vmul.f32 %v7610_v62, %v10074_v11  ;;  %v7790_v1 = vpop.f32.mrb[73].mxu0 }
 0x25b   :  { %v5850_v38 = vpop.eup %5849  ;;  %5869 = vrcp.f32 %v2379_v4  ;;  %v2392_v46 = vadd.f32 1.0, %v5848_v47  ;;  %v7768_v25 = vadd.f32 %v10072_v21, %v7530_v39  ;;  %10073 = vst [vmem:[#allocation30_spill] sm:$0xff] %v7770_v53  ;;  %v10075_v4 = vld [vmem:[#allocation31_spill] sm:$0xff]  ;;  %v7788_v52 = vadd.f32 %v10077_v34, %v7682_v59  ;;  %10078 = vst [vmem:[#allocation38_spill] sm:$0xff] %v7790_v1 }
 0x25c   :  { %v5852_v48 = vpop.eup %5851  ;;  %5871 = vrcp.f32 %v2390_v45  ;;  %v2391_v6 = vadd.f32 1.0, %v5850_v38  ;;  %v7780_v47 = vadd.f32 %v10075_v4, %v7537_v0  ;;  %v10076_v45 = vld [vmem:[#allocation32_spill] sm:$0xff]  ;;  %v3020_v11 = vmul.f32 %v7656_v42, %v7240_v41  ;;  %v10079_v4 = vld [vmem:[#allocation34_spill] sm:$0xff]  ;;  %v7808_v41 = vpop.f32.mrb[74].mxu1 }
 0x25d   :  { %v5854_v40 = vpop.eup %5853  ;;  %5873 = vrcp.f32 %v2392_v46  ;;  %v2393_v24 = vadd.f32 1.0, %v5852_v48  ;;  %v7784_v38 = vadd.f32 %v10076_v45, %v7586_v14  ;;  %v7806_v45 = vadd.f32 %v10079_v4, %v7530_v39  ;;  %10080 = vst [vmem:[#allocation31_spill] sm:$0xff] %v7808_v41  ;;  %v7826_v4 = vpop.f32.mrb[75].mxu1 }
 0x25e   :  { %v5856_v21 = vpop.eup %5855  ;;  %5875 = vrcp.f32 %v2391_v6  ;;  %v2184_v53 = vadd.f32 1.0, %v5854_v40  ;;  %v7799_v6 = vmul.f32 %v7669_v37, %v7448_v43  ;;  %10082 = vst [vmem:[#allocation33_spill] sm:$0xff] %v7826_v4  ;;  %v10085_v37 = vlaneseq }
 0x25f   :  { %v5858_v62 = vpop.eup %5857  ;;  %v3034_v48 = vmul.f32 %v5856_v21, %v7262_v8  ;;  %5877 = vrcp.f32 %v2393_v24  ;;  %v7810_v8 = vpop.f32.mrb[74].mxu0  ;;  %v3021_v24 = vmul.f32 %v7674_v29, %v7459_v31  ;;  %v4542_v29 = vmul.f32 -1.442695, %v7756_v16 }
 0x260   :  { %v5860_v46 = vpop.eup %5859  ;;  %v7802_v34 = vmul.f32 %v5858_v62, %v7514_v44  ;;  %5879 = vrcp.f32 %v2184_v53  ;;  %10081 = vst [vmem:[#allocation32_spill] sm:$0xff] %v7810_v8  ;;  %v7818_v53 = vmul.f32 %v7677_v54, %v7464_v32  ;;  %v7828_v31 = vpop.f32.mrb[75].mxu0  ;;  %v3083_v32 = vmul.u32 64, %v6978_v61 }
 0x261   :  { %v5862_v42 = vpop.eup %5861  ;;  %v5055_v21 = vpack.c.bf16 %v3034_v48, %v3020_v11  ;;  %v3035_v43 = vmul.f32 %v5860_v46, %v7548_v51  ;;  %5881 = vpow2.f32 %v7729_v26  ;;  %10083 = vst [vmem:[#allocation34_spill] sm:$0xff] %v7828_v31  ;;  %v4553_v11 = vmul.f32 -1.442695, %v7768_v25 }
 0x262   :  { %v5864_v44 = vpop.eup %5863  ;;  %v7823_v62 = vmul.f32 %v5862_v42, %v7552_v50  ;;  %5883 = vpow2.f32 %v7732_v36  ;;  %v10084_v50 = vld [vmem:[#allocation35_spill] sm:$0xff]  ;;  %v4554_v42 = vmul.f32 -1.442695, %v7784_v38  ;;  %v10126_v1 = vpack.c.bf16 %v7700_v60, %v7720_v63 }
 0x263   :  { %v5866_v51 = vpop.eup %5865  ;;  %5885 = vpow2.f32 %v4528_v49  ;;  %v5053_v26 = vpack.c.bf16 %v3035_v43, %v3021_v24  ;;  %v7835_v48 = vadd.f32 %v10084_v50, %v7537_v0  ;;  %v4555_v49 = vmul.f32 -1.442695, %v7780_v47  ;;  %v10128_v60 = vld [vmem:[#allocation51_spill] sm:$0xff] }
 0x264   :  { %v5868_v54 = vpop.eup %5867  ;;  %5887 = vpow2.f32 %v4539_v19  ;;  %v4556_v19 = vmul.f32 -1.442695, %v7788_v52  ;;  %v4567_v43 = vmul.f32 -1.442695, %v7806_v45  ;;  %v3078_v50 = vand.u32 127, %v10085_v37  ;;  %v7855_v37 = vpop.f32.mrb[76].mxu0 }
 0x265   :  { %v5870_v46 = vpop.eup %5869  ;;  %5889 = vpow2.f32 %v4541_v18  ;;  %5054 = vmatprep.subr.bf16.mxu0 %v5053_v26  ;;  %v3048_v31 = vmul.f32 %v5864_v44, %v7317_v3  ;;  %v3085_v18 = vadd.s32 64, %v3083_v32  ;;  %v7847_v8 = vmul.f32 %v5866_v51, %v7562_v27  ;;  %10087 = vst [vmem:[#allocation79_spill] sm:$0xff] %v7855_v37  ;;  %v7861_v27 = vpop.f32.mrb[77].mxu0 }
 0x266   :  { %v5872_v24 = vpop.eup %5871  ;;  %5891 = vpow2.f32 %v4540_v15  ;;  %5056 = vmatpush1.bf16.msra.mxu0 %v5055_v21  ;;  %v4569_v26 = vmul.f32 -1.442695, %v7835_v48  ;;  %v7853_v21 = vpop.f32.mrb[76].mxu1  ;;  %v3049_v3 = vmul.f32 %v5868_v54, %v7566_v28  ;;  %10089 = vst [vmem:[#allocation81_spill] sm:$0xff] %v7861_v27  ;;  %vm7877_vm2 = vcmp.ge.s32.totalorder %v3078_v50, %v3083_v32 }
 0x267   :  { %v5874_v40 = vpop.eup %5873  ;;  %v3062_v36 = vmul.f32 %v5872_v24, %v7342_v2  ;;  %5893 = vpow2.f32 %v4542_v29  ;;  %10086 = vst [vmem:[#allocation35_spill] sm:$0xff] %v7853_v21  ;;  %v7859_v29 = vpop.f32.mrb[77].mxu1  ;;  %vm3086_vm3 = vcmp.lt.s32.totalorder %v3078_v50, %v3085_v18  ;;  %v9943_v50 = vmov 1.0  }
 0x268   :  { %v5876_v4 = vpop.eup %5875  ;;  %v7850_v15 = vmul.f32 %v5874_v40, %v7608_v56  ;;  %5895 = vpow2.f32 %v4553_v11  ;;  %10088 = vst [vmem:[#allocation80_spill] sm:$0xff] %v7859_v29  ;;  %v7866_v40 = vmul.f32 %v5870_v46, %v7576_v12  ;;  %v7873_v28 = vpop.f32.mrb[78].mxu1  ;;  %vm7890_vm4 = vmand %vm7877_vm2, %vm3086_vm3  ;;  %v10124_v29 = vld [vmem:[#allocation46_spill] sm:$0xff]  ;;  %v7987_v63 = vadd.f32 %v10128_v60, %v7586_v14 }
 0x269   :  { %v5878_v41 = vpop.eup %5877  ;;  %v5059_v2 = vpack.c.bf16 %v3062_v36, %v3048_v31  ;;  %v3063_v44 = vmul.f32 %v5876_v4, %v7621_v23  ;;  %5897 = vpow2.f32 %v4555_v49  ;;  %10090 = vst [vmem:[#allocation82_spill] sm:$0xff] %v7873_v28  ;;  %v7875_v23 = vpop.f32.mrb[78].mxu0  ;;  %v7963_v37 = vadd.f32 %v10124_v29, %v7682_v59 }
 0x26a   :  { %v7863_v56 = vpop.eup %5879  ;;  %v7871_v11 = vmul.f32 %v5878_v41, %v7625_v9  ;;  %5899 = vpow2.f32 %v4554_v42  ;;  %10091 = vst [vmem:[#allocation83_spill] sm:$0xff] %v7875_v23  ;;  %v7881_v12 = vpop.f32.mrb[79].mxu1 }
 0x26b   :  { %v5882_v4 = vpop.eup %5881  ;;  %5901 = vpow2.f32 %v4556_v19  ;;  %v5057_v31 = vpack.c.bf16 %v3063_v44, %v3049_v3  ;;  %10094 = vst [vmem:[#allocation84_spill] sm:$0xff] %v7881_v12  ;;  %v7883_v36 = vpop.f32.mrb[79].mxu0  ;;  %v10096_v19 = vmov 0  ;;  %v10099_v44 = vld [vmem:[#allocation5_spill] sm:$0xff] }
 0x26c   :  { %10095 = vst [vmem:[#allocation85_spill] sm:$0xff] %v7883_v36  ;;  %v5884_v46 = vpop.eup %5883  ;;  %v2186_v9 = vadd.f32 1.0, %v5882_v4  ;;  %5903 = vpow2.f32 %v4567_v43  ;;  %v10097_v19 = vsel %vm7890_vm4, 4294967295, %v10096_v19  ;;  %v10100_v4 = vld [vmem:[#allocation4_spill] sm:$0xff] }
 0x26d   :  { %v5886_v49 = vpop.eup %5885  ;;  %v2185_v42 = vadd.f32 1.0, %v5884_v46  ;;  %5905 = vpow2.f32 %v4569_v26  ;;  %5058 = vmatprep.subr.bf16.mxu0 %v5057_v31  ;;  %10098 = vst [vmem:[#allocation86_spill] sm:$0xff] %v10097_v19  ;;  %v10101_v51 = vpack.c.bf16 %v10099_v44, %v10100_v4  ;;  %v10107_v44 = vld [vmem:[#allocation37_spill] sm:$0xff] }
 0x26e   :  { %v5888_v24 = vpop.eup %5887  ;;  %5907 = vrcp.f32 %v2186_v9  ;;  %v2187_v32 = vadd.f32 1.0, %v5886_v49  ;;  %5060 = vmatpush1.bf16.msra.mxu0 %v5059_v2  ;;  %v10102_v9 = vld [vmem:[#allocation12_spill] sm:$0xff]  ;;  %v10103_v49 = vld [vmem:[#allocation11_spill] sm:$0xff]  ;;  %v7910_v4 = vadd.f32 %v10107_v44, %v7682_v59  ;;  %v10111_v44 = vld [vmem:[#allocation41_spill] sm:$0xff] }
 0x26f   :  { %v5890_v3 = vpop.eup %5889  ;;  %5909 = vrcp.f32 %v2185_v42  ;;  %v2198_v43 = vadd.f32 1.0, %v5888_v24  ;;  %5062 = vmatprep.subr.bf16.mxu0 %v10101_v51  ;;  %v10104_v42 = vpack.c.bf16 %v10102_v9, %v10103_v49  ;;  %v10105_v24 = vmov 0.0   ;;  %v10109_v9 = vld [vmem:[#allocation39_spill] sm:$0xff] }
 0x270   :  { %v5892_v26 = vpop.eup %5891  ;;  %5911 = vrcp.f32 %v2187_v32  ;;  %v2200_v31 = vadd.f32 1.0, %v5890_v3  ;;  %v10106_v3 = vld [vmem:[#allocation36_spill] sm:$0xff]  ;;  %v7917_v49 = vadd.f32 %v10109_v9, %v7530_v39  ;;  %v4570_v28 = vmul.f32 -1.442695, %v7910_v4 }
 0x271   :  { %v5894_v46 = vpop.eup %5893  ;;  %5913 = vrcp.f32 %v2198_v43  ;;  %v2199_v2 = vadd.f32 1.0, %v5892_v26  ;;  %4746 = vmatmul.mubr.msk.f32.vlgmr.msra.gmra.mrb[104].mxu0 %vm7890_vm4, %v9943_v50  ;;  %v7906_v43 = vadd.f32 %v10106_v3, %v7586_v14  ;;  %v10108_v26 = vpack.c.bf16 %v7601_v20, %v7597_v35  ;;  %v10112_v35 = vld [vmem:[#allocation42_spill] sm:$0xff] }
 0x272   :  { %v5896_v18 = vpop.eup %5895  ;;  %5915 = vrcp.f32 %v2200_v31  ;;  %v2201_v54 = vadd.f32 1.0, %v5894_v46  ;;  %5064 = vmatpush1.bf16.msra.mxu0 %v10104_v42  ;;  %3241 = vmatprep.mubr.f32.mxu0 %v10105_v24  ;;  %v7925_v50 = vadd.f32 %v10111_v44, %v7586_v14  ;;  %v7929_v20 = vadd.f32 %v10112_v35, %v7682_v59 }
 0x273   :  { %v5898_v51 = vpop.eup %5897  ;;  %5917 = vrcp.f32 %v2199_v2  ;;  %v2212_v32 = vadd.f32 1.0, %v5896_v18  ;;  %5066 = vmatprep.subr.bf16.mxu0 %v10108_v26  ;;  %v10110_v2 = vld [vmem:[#allocation40_spill] sm:$0xff]  ;;  %v10114_v26 = vld [vmem:[#allocation43_spill] sm:$0xff]  ;;  %v4568_v35 = vmul.f32 -1.442695, %v7906_v43 }
 0x274   :  { %v5900_v31 = vpop.eup %5899  ;;  %5919 = vrcp.f32 %v2201_v54  ;;  %v2214_v46 = vadd.f32 1.0, %v5898_v51  ;;  %v7921_v18 = vadd.f32 %v10110_v2, %v7537_v0  ;;  %10113 = vst [vmem:[#allocation5_spill] sm:$0xff] %v7929_v20  ;;  %v7933_v9 = vadd.f32 %v10114_v26, %v7530_v39  ;;  %v10115_v2 = vld [vmem:[#allocation44_spill] sm:$0xff] }
 0x275   :  { %v5902_v42 = vpop.eup %5901  ;;  %5921 = vrcp.f32 %v2212_v32  ;;  %v2213_v3 = vadd.f32 1.0, %v5900_v31  ;;  %v7937_v41 = vadd.f32 %v10115_v2, %v7537_v0  ;;  %v10116_v32 = vld [vmem:[#allocation20_spill] sm:$0xff]  ;;  %v10117_v31 = vld [vmem:[#allocation19_spill] sm:$0xff]  ;;  %v10120_v26 = vpack.c.bf16 %v7614_v33, %v7660_v5 }
 0x276   :  { %v5904_v54 = vpop.eup %5903  ;;  %5923 = vrcp.f32 %v2214_v46  ;;  %v2215_v51 = vadd.f32 1.0, %v5902_v42  ;;  %v10118_v36 = vpack.c.bf16 %v10116_v32, %v10117_v31  ;;  %v10119_v46 = vld [vmem:[#allocation45_spill] sm:$0xff]  ;;  %v4595_v5 = vmul.f32 -1.442695, %v7933_v9 }
 0x277   :  { %v5906_v44 = vpop.eup %5905  ;;  %5925 = vrcp.f32 %v2213_v3  ;;  %v2226_v12 = vadd.f32 1.0, %v5904_v54  ;;  %v7945_v42 = vadd.f32 %v10119_v46, %v7586_v14  ;;  %v4583_v3 = vmul.f32 -1.442695, %v7921_v18 }
 0x278   :  { %5068 = vmatpush1.bf16.msra.mxu0 %v10118_v36  ;;  %v5908_v23 = vpop.eup %5907  ;;  %5927 = vrcp.f32 %v2215_v51  ;;  %v2228_v2 = vadd.f32 1.0, %v5906_v44  ;;  %v4581_v36 = vmul.f32 -1.442695, %v7917_v49  ;;  %v4582_v54 = vmul.f32 -1.442695, %v7925_v50  ;;  %v10121_v51 = vld [vmem:[#allocation28_spill] sm:$0xff] }
 0x279   :  { %5070 = vmatprep.subr.bf16.mxu0 %v10120_v26  ;;  %v5910_v32 = vpop.eup %5909  ;;  %5929 = vrcp.f32 %v2226_v12  ;;  %v4584_v46 = vmul.f32 -1.442695, %v7929_v20  ;;  %v4597_v33 = vmul.f32 -1.442695, %v7937_v41  ;;  %v10122_v44 = vld [vmem:[#allocation27_spill] sm:$0xff]  ;;  %v7980_v20 = vmul.f32 %v5908_v23, %v7688_v10  ;;  %v10130_v10 = vld [vmem:[#allocation48_spill] sm:$0xff] }
 0x27a   :  { %v5912_v31 = vpop.eup %5911  ;;  %5931 = vrcp.f32 %v2228_v2  ;;  %v10123_v26 = vpack.c.bf16 %v10121_v51, %v10122_v44  ;;  %v4596_v12 = vmul.f32 -1.442695, %v7945_v42  ;;  %v10125_v2 = vld [vmem:[#allocation49_spill] sm:$0xff]  ;;  %v2856_v51 = vmul.f32 %v7863_v56, %v7631_v13  ;;  %v10127_v44 = vld [vmem:[#allocation50_spill] sm:$0xff]  ;;  %v7989_v13 = vpop.f32.mrb[80].mxu1  ;;  %v10131_v23 = vld [vmem:[#allocation47_spill] sm:$0xff] }
 0x27b   :  { %v5914_v27 = vpop.eup %5913  ;;  %5933 = vpow2.f32 %v4568_v35  ;;  %v7967_v21 = vadd.f32 %v10125_v2, %v7530_v39  ;;  %v8003_v60 = vmul.f32 %v5912_v31, %v7708_v58  ;;  %v4598_v58 = vmul.f32 -1.442695, %v7963_v37 }
 0x27c   :  { %5072 = vmatpush1.bf16.msra.mxu0 %v10123_v26  ;;  %v5916_v61 = vpop.eup %5915  ;;  %v2870_v35 = vmul.f32 %v5914_v27, %v7712_v57  ;;  %5935 = vpow2.f32 %v4570_v28  ;;  %v7977_v26 = vadd.f32 %v10127_v44, %v7537_v0  ;;  %v7991_v57 = vpop.f32.mrb[80].mxu0  ;;  %v2857_v27 = vmul.f32 %v5910_v32, %v7692_v30  ;;  %v10134_v32 = vld [vmem:[#allocation22_spill] sm:$0xff] }
 0x27d   :  { %5074 = vmatprep.subr.bf16.mxu0 %v10126_v1  ;;  %v5918_v29 = vpop.eup %5917  ;;  %v7983_v2 = vmul.f32 %v5916_v61, %v7744_v22  ;;  %5937 = vpow2.f32 %v4581_v36  ;;  %10129 = vst [vmem:[#allocation4_spill] sm:$0xff] %v7991_v57  ;;  %v10132_v61 = vpack.c.bf16 %v10130_v10, %v10131_v23  ;;  %v7998_v22 = vpop.f32.mrb[81].mxu1 }
 0x27e   :  { %v5920_v1 = vpop.eup %5919  ;;  %v5095_v56 = vpack.c.bf16 %v2870_v35, %v2856_v51  ;;  %v2871_v28 = vmul.f32 %v5918_v29, %v7748_v55  ;;  %5939 = vpow2.f32 %v4583_v3  ;;  %v8000_v36 = vpop.f32.mrb[81].mxu0  ;;  %v10133_v55 = vld [vmem:[#allocation15_spill] sm:$0xff] }
 0x27f   :  { %v5922_v44 = vpop.eup %5921  ;;  %v8008_v30 = vmul.f32 %v5920_v1, %v7756_v16  ;;  %5941 = vpow2.f32 %v4582_v54  ;;  %v10135_v3 = vpack.c.bf16 %v10133_v55, %v10134_v32  ;;  %v8013_v51 = vpop.f32.mrb[82].mxu1  ;;  %v4609_v54 = vmul.f32 -1.442695, %v7967_v21  ;;  %v10136_v55 = vld [vmem:[#allocation58_spill] sm:$0xff] }
 0x280   :  { %5076 = vmatpush1.bf16.msra.mxu0 %v10132_v61  ;;  %v8015_v35 = vpop.f32.mrb[82].mxu0  ;;  %v5924_v29 = vpop.eup %5923  ;;  %5943 = vpow2.f32 %v4584_v46  ;;  %v5093_v31 = vpack.c.bf16 %v2871_v28, %v2857_v27  ;;  %v4611_v46 = vmul.f32 -1.442695, %v7977_v26  ;;  %v10137_v27 = vld [vmem:[#allocation57_spill] sm:$0xff]  ;;  %v8038_v1 = vmul.f32 %v5922_v44, %v7768_v25  ;;  %v10148_v25 = vld [vmem:[#allocation52_spill] sm:$0xff] }
 0x281   :  { %5078 = vmatprep.subr.bf16.mxu0 %v10135_v3  ;;  %v8018_v10 = vpop.f32.mrb[83].mxu1  ;;  %v8020_v23 = vpop.f32.mrb[83].mxu0  ;;  %5945 = vpow2.f32 %v4595_v5  ;;  %v10138_v28 = vpack.c.bf16 %v10136_v55, %v10137_v27  ;;  %v4610_v3 = vmul.f32 -1.442695, %v7987_v63  ;;  %v10139_v5 = vpack.c.bf16 %v7764_v17, %v7776_v7 }
 0x282   :  { %v8022_v16 = vpop.eup %5925  ;;  %5947 = vpow2.f32 %v4597_v33  ;;  %5094 = vmatprep.subr.bf16.mxu1 %v5093_v31  ;;  %v8044_v55 = vmul.f32 %v5924_v29, %v7780_v47  ;;  %v8051_v17 = vpop.f32.mrb[84].mxu0 }
 0x283   :  { %v8027_v61 = vpop.eup %5927  ;;  %5949 = vpow2.f32 %v4596_v12  ;;  %5096 = vmatpush1.bf16.msra.mxu1 %v5095_v56  ;;  %v8049_v56 = vpop.f32.mrb[84].mxu1  ;;  %10140 = vst [vmem:[#allocation12_spill] sm:$0xff] %v8051_v17 }
 0x284   :  { %5080 = vmatpush1.bf16.msra.mxu0 %v10138_v28  ;;  %v5930_v32 = vpop.eup %5929  ;;  %5951 = vpow2.f32 %v4598_v58  ;;  %v10142_v58 = vld [vmem:[#allocation7_spill] sm:$0xff]  ;;  %v8058_v47 = vpop.f32.mrb[85].mxu1  ;;  %v10146_v28 = vpack.c.bf16 %v7823_v62, %v7818_v53 }
 0x285   :  { %5082 = vmatprep.subr.bf16.mxu0 %v10139_v5  ;;  %v5932_v57 = vpop.eup %5931  ;;  %v8041_v33 = vmul.f32 %v5930_v32, %v7806_v45  ;;  %5953 = vpow2.f32 %v4609_v54  ;;  %v10141_v45 = vld [vmem:[#allocation21_spill] sm:$0xff]  ;;  %10144 = vst [vmem:[#allocation11_spill] sm:$0xff] %v8058_v47  ;;  %v8060_v29 = vpop.f32.mrb[85].mxu0 }
 0x286   :  { %v5934_v31 = vpop.eup %5933  ;;  %v8047_v12 = vmul.f32 %v5932_v57, %v7835_v48  ;;  %5955 = vpow2.f32 %v4611_v46  ;;  %v10143_v27 = vpack.c.bf16 %v10141_v45, %v10142_v58  ;;  %10145 = vst [vmem:[#allocation36_spill] sm:$0xff] %v8060_v29  ;;  %v8067_v32 = vpop.f32.mrb[86].mxu1  ;;  %v8071_v57 = vadd.f32 %v10148_v25, %v7682_v59 }
 0x287   :  { %v5936_v7 = vpop.eup %5935  ;;  %v2227_v44 = vadd.f32 1.0, %v5934_v31  ;;  %5957 = vpow2.f32 %v4610_v3  ;;  %10147 = vst [vmem:[#allocation37_spill] sm:$0xff] %v8067_v32  ;;  %v10149_v3 = vpack.c.bf16 %v7802_v34, %v7799_v6  ;;  %v10153_v6 = vld [vmem:[#allocation55_spill] sm:$0xff]  ;;  %v8144_v29 = vpop.f32.mrb[87].mxu1 }
 0x288   :  { %5084 = vmatpush1.bf16.msra.mxu0 %v10143_v27  ;;  %v5938_v48 = vpop.eup %5937  ;;  %v2229_v54 = vadd.f32 1.0, %v5936_v7  ;;  %v10150_v7 = vld [vmem:[#allocation53_spill] sm:$0xff]  ;;  %v8089_v34 = vadd.f32 %v10153_v6, %v7586_v14  ;;  %10166 = vst [vmem:[#allocation40_spill] sm:$0xff] %v8144_v29 }
 0x289   :  { %5086 = vmatprep.subr.bf16.mxu0 %v10146_v28  ;;  %v5940_v46 = vpop.eup %5939  ;;  %5959 = vrcp.f32 %v2227_v44  ;;  %v2240_v5 = vadd.f32 1.0, %v5938_v48  ;;  %v8078_v44 = vadd.f32 %v10150_v7, %v7530_v39  ;;  %v10151_v48 = vld [vmem:[#allocation54_spill] sm:$0xff]  ;;  %v10152_v28 = vpack.c.bf16 %v7871_v11, %v7866_v40 }
 0x28a   :  { %v5942_v31 = vpop.eup %5941  ;;  %5961 = vrcp.f32 %v2229_v54  ;;  %v2242_v45 = vadd.f32 1.0, %v5940_v46  ;;  %v8082_v54 = vadd.f32 %v10151_v48, %v7537_v0  ;;  %v10154_v7 = vpack.c.bf16 %v7850_v15, %v7847_v8 }
 0x28b   :  { %v5944_v58 = vpop.eup %5943  ;;  %5963 = vrcp.f32 %v2240_v5  ;;  %v2241_v27 = vadd.f32 1.0, %v5942_v31 }
 0x28c   :  { %5088 = vmatpush1.bf16.msra.mxu0 %v10149_v3  ;;  %v5946_v53 = vpop.eup %5945  ;;  %5965 = vrcp.f32 %v2242_v45  ;;  %v2243_v62 = vadd.f32 1.0, %v5944_v58  ;;  %v4612_v3 = vmul.f32 -1.442695, %v8071_v57 }
 0x28d   :  { %5090 = vmatprep.subr.bf16.mxu0 %v10152_v28  ;;  %v5948_v25 = vpop.eup %5947  ;;  %5967 = vrcp.f32 %v2241_v27  ;;  %v2254_v46 = vadd.f32 1.0, %v5946_v53  ;;  %v4623_v27 = vmul.f32 -1.442695, %v8078_v44  ;;  %v4625_v53 = vmul.f32 -1.442695, %v8082_v54 }
 0x28e   :  { %v5950_v5 = vpop.eup %5949  ;;  %5969 = vrcp.f32 %v2243_v62  ;;  %v2256_v31 = vadd.f32 1.0, %v5948_v25  ;;  %v10155_v62 = vpack.c.bf16 %v8008_v30, %v8003_v60  ;;  %v4624_v25 = vmul.f32 -1.442695, %v8089_v34 }
 0x28f   :  { %v5952_v45 = vpop.eup %5951  ;;  %5971 = vrcp.f32 %v2254_v46  ;;  %v2255_v58 = vadd.f32 1.0, %v5950_v5  ;;  %v10156_v46 = vld [vmem:[#allocation56_spill] sm:$0xff]  ;;  %v10157_v5 = vld [vmem:[#allocation59_spill] sm:$0xff]  ;;  %v10159_v30 = vmov 1.0  }
 0x290   :  { %5092 = vmatpush1.bf16.msra.mxu0 %v10154_v7  ;;  %v5954_v40 = vpop.eup %5953  ;;  %5973 = vrcp.f32 %v2256_v31  ;;  %v2257_v11 = vadd.f32 1.0, %v5952_v45  ;;  %v8103_v8 = vadd.f32 %v10156_v46, %v7682_v59  ;;  %v8107_v31 = vadd.f32 %v10157_v5, %v7530_v39  ;;  %v10158_v45 = vld [vmem:[#allocation60_spill] sm:$0xff]  ;;  %v8127_v5 = vpop.f32.mrb[86].mxu0 }
 0x291   :  { %5126 = vmatprep.subr.bf16.mxu0 %v10155_v62  ;;  %v5956_v48 = vpop.eup %5955  ;;  %5975 = vrcp.f32 %v2255_v58  ;;  %v2268_v28 = vadd.f32 1.0, %v5954_v40  ;;  %v8111_v60 = vadd.f32 %v10158_v45, %v7537_v0  ;;  %v10160_v40 = vld [vmem:[#allocation61_spill] sm:$0xff]  ;;  %v10162_v46 = vpack.c.bf16 %v7983_v2, %v7980_v20  ;;  %10163 = vst [vmem:[#allocation39_spill] sm:$0xff] %v8127_v5 }
 0x292   :  { %v5958_v15 = vpop.eup %5957  ;;  %5977 = vrcp.f32 %v2257_v11  ;;  %v2270_v6 = vadd.f32 1.0, %v5956_v48  ;;  %v8118_v62 = vadd.f32 %v10160_v40, %v7586_v14  ;;  %v10161_v11 = vld [vmem:[#allocation62_spill] sm:$0xff]  ;;  %v10164_v40 = vld [vmem:[#allocation63_spill] sm:$0xff]  ;;  %v2887_v20 = vmul.f32 %v8027_v61, %v7788_v52 }
 0x293   :  { %4747 = vmatmul.mubr.msk.f32.vlgmr.msra.gmra.mrb[106].mxu0 %vm7890_vm4, %v10159_v30  ;;  %v5960_v58 = vpop.eup %5959  ;;  %5979 = vrcp.f32 %v2268_v28  ;;  %v2269_v7 = vadd.f32 1.0, %v5958_v15  ;;  %v8122_v48 = vadd.f32 %v10161_v11, %v7682_v59  ;;  %v2885_v28 = vmul.f32 %v8022_v16, %v7784_v38  ;;  %v8146_v38 = vpop.f32.mrb[87].mxu0 }
 0x294   :  { %5128 = vmatpush1.bf16.msra.mxu0 %v10162_v46  ;;  %3383 = vmatprep.mubr.f32.mxu0 %v10105_v24  ;;  %v5962_v45 = vpop.eup %5961  ;;  %v2899_v15 = vmul.f32 %v5960_v58, %v7906_v43  ;;  %5981 = vrcp.f32 %v2270_v6  ;;  %v8135_v32 = vadd.f32 %v10164_v40, %v7530_v39  ;;  %v10165_v46 = vld [vmem:[#allocation64_spill] sm:$0xff]  ;;  %10167 = vst [vmem:[#allocation41_spill] sm:$0xff] %v8146_v38  ;;  %v4626_v16 = vmul.f32 -1.442695, %v8103_v8 }
 0x295   :  { %v5964_v11 = vpop.eup %5963  ;;  %v2901_v2 = vmul.f32 %v5962_v45, %v7910_v4  ;;  %5983 = vrcp.f32 %v2269_v7  ;;  %v8142_v5 = vadd.f32 %v10165_v46, %v7537_v0  ;;  %v4637_v52 = vmul.f32 -1.442695, %v8107_v31  ;;  %v10168_v4 = vld [vmem:[#allocation13_spill] sm:$0xff] }
 0x296   :  { %v5966_v43 = vpop.eup %5965  ;;  %5985 = vpow2.f32 %v4612_v3  ;;  %v5097_v6 = vpack.c.bf16 %v2899_v15, %v2885_v28  ;;  %v8152_v61 = vadd.f32 %v10168_v4, %v7586_v14  ;;  %v4639_v40 = vmul.f32 -1.442695, %v8111_v60 }
 0x297   :  { %v5968_v58 = vpop.eup %5967  ;;  %5987 = vpow2.f32 %v4623_v27  ;;  %v5129_v7 = vpack.c.bf16 %v2901_v2, %v2887_v20  ;;  %v4638_v46 = vmul.f32 -1.442695, %v8118_v62  ;;  %v4640_v28 = vmul.f32 -1.442695, %v8122_v48 }
 0x298   :  { %v5970_v45 = vpop.eup %5969  ;;  %5989 = vpow2.f32 %v4625_v53  ;;  %5098 = vmatprep.subr.bf16.mxu1 %v5097_v6  ;;  %v4651_v27 = vmul.f32 -1.442695, %v8135_v32  ;;  %v4653_v15 = vmul.f32 -1.442695, %v8142_v5  ;;  %v10169_v4 = vpack.c.bf16 %v8041_v33, %v8038_v1  ;;  %v10170_v6 = vld [vmem:[#allocation65_spill] sm:$0xff] }
 0x299   :  { %v5972_v3 = vpop.eup %5971  ;;  %5991 = vpow2.f32 %v4624_v25  ;;  %5130 = vmatprep.subr.bf16.mxu0 %v5129_v7  ;;  %v2912_v53 = vmul.f32 %v5964_v11, %v7917_v49  ;;  %v8166_v25 = vadd.f32 %v10170_v6, %v7682_v59  ;;  %v10171_v38 = vpack.c.bf16 %v8047_v12, %v8044_v55  ;;  %v8174_v49 = vpop.f32.mrb[88].mxu1 }
 0x29a   :  { %5100 = vmatpush1.bf16.msra.mxu1 %v10169_v4  ;;  %v5974_v20 = vpop.eup %5973  ;;  %v2926_v2 = vmul.f32 %v5972_v3, %v7933_v9  ;;  %5993 = vpow2.f32 %v4626_v16  ;;  %v2914_v47 = vmul.f32 %v5966_v43, %v7921_v18  ;;  %v4652_v33 = vmul.f32 -1.442695, %v8152_v61  ;;  %10172 = vst [vmem:[#allocation42_spill] sm:$0xff] %v8174_v49  ;;  %v8176_v9 = vpop.f32.mrb[88].mxu0 }
 0x29b   :  { %5132 = vmatpush1.bf16.msra.mxu0 %v10171_v38  ;;  %v5976_v29 = vpop.eup %5975  ;;  %v2928_v1 = vmul.f32 %v5974_v20, %v7937_v41  ;;  %5995 = vpow2.f32 %v4637_v52  ;;  %10173 = vst [vmem:[#allocation43_spill] sm:$0xff] %v8176_v9  ;;  %v2913_v16 = vmul.f32 %v5968_v58, %v7925_v50  ;;  %v8180_v55 = vpop.f32.mrb[89].mxu1  ;;  %v10176_v41 = vld [vmem:[#allocation5_spill] sm:$0xff] }
 0x29c   :  { %v5978_v11 = vpop.eup %5977  ;;  %v5103_v7 = vpack.c.bf16 %v2926_v2, %v2912_v53  ;;  %v2927_v3 = vmul.f32 %v5976_v29, %v7945_v42  ;;  %5997 = vpow2.f32 %v4639_v40  ;;  %10174 = vst [vmem:[#allocation44_spill] sm:$0xff] %v8180_v55  ;;  %v8182_v12 = vpop.f32.mrb[89].mxu0  ;;  %v2915_v38 = vmul.f32 %v5970_v45, %v10176_v41  ;;  %v10194_v55 = vld [vmem:[#allocation14_spill] sm:$0xff] }
 0x29d   :  { %10175 = vst [vmem:[#allocation20_spill] sm:$0xff] %v8182_v12  ;;  %v8184_v18 = vpop.eup %5979  ;;  %v5135_v43 = vpack.c.bf16 %v2928_v1, %v2914_v47  ;;  %v2929_v52 = vmul.f32 %v5978_v11, %v7963_v37  ;;  %5999 = vpow2.f32 %v4638_v46  ;;  %v8188_v4 = vpop.f32.mrb[90].mxu1  ;;  %v4654_v42 = vmul.f32 -1.442695, %v8166_v25 }
 0x29e   :  { %10177 = vst [vmem:[#allocation19_spill] sm:$0xff] %v8188_v4  ;;  %v8190_v20 = vpop.f32.mrb[90].mxu0  ;;  %v8192_v50 = vpop.eup %5981  ;;  %6001 = vpow2.f32 %v4640_v28  ;;  %v5101_v29 = vpack.c.bf16 %v2927_v3, %v2913_v16  ;;  %v2940_v12 = vmul.f32 %v8184_v18, %v7967_v21  ;;  %v8257_v9 = vadd.f32 %v10194_v55, %v7537_v0 }
 0x29f   :  { %10178 = vst [vmem:[#allocation45_spill] sm:$0xff] %v8190_v20  ;;  %v8195_v58 = vpop.f32.mrb[91].mxu1  ;;  %v8197_v40 = vpop.f32.mrb[91].mxu0  ;;  %6003 = vpow2.f32 %v4651_v27  ;;  %v5133_v47 = vpack.c.bf16 %v2929_v52, %v2915_v38 }
 0x2a0   :  { %10179 = vst [vmem:[#allocation28_spill] sm:$0xff] %v8195_v58  ;;  %10180 = vst [vmem:[#allocation27_spill] sm:$0xff] %v8197_v40  ;;  %v8199_v53 = vpop.eup %5983  ;;  %6005 = vpow2.f32 %v4653_v15  ;;  %5102 = vmatprep.subr.bf16.mxu1 %v5101_v29  ;;  %v8201_v11 = vpop.f32.mrb[92].mxu1  ;;  %v10184_v29 = vld [vmem:[#allocation16_spill] sm:$0xff]  ;;  %v10190_v58 = vld [vmem:[#allocation70_spill] sm:$0xff] }
 0x2a1   :  { %v5986_v37 = vpop.eup %5985  ;;  %6007 = vpow2.f32 %v4652_v33  ;;  %5104 = vmatpush1.bf16.msra.mxu1 %v5103_v7  ;;  %5134 = vmatprep.subr.bf16.mxu0 %v5133_v47  ;;  %10181 = vst [vmem:[#allocation46_spill] sm:$0xff] %v8201_v11  ;;  %v8203_v3 = vpop.f32.mrb[92].mxu0  ;;  %v8211_v47 = vadd.f32 %v10184_v29, %v7537_v0  ;;  %v8242_v20 = vadd.f32 %v10190_v58, %v7682_v59 }
 0x2a2   :  { %v5988_v45 = vpop.eup %5987  ;;  %v2271_v46 = vadd.f32 1.0, %v5986_v37  ;;  %6009 = vpow2.f32 %v4654_v42  ;;  %5136 = vmatpush1.bf16.msra.mxu0 %v5135_v43  ;;  %10182 = vst [vmem:[#allocation49_spill] sm:$0xff] %v8203_v3  ;;  %v10183_v43 = vld [vmem:[#allocation9_spill] sm:$0xff]  ;;  %v8248_v4 = vpop.f32.mrb[93].mxu1  ;;  %v2941_v55 = vmul.f32 %v8199_v53, %v7987_v63  ;;  %v10200_v63 = vld [vmem:[#allocation10_spill] sm:$0xff] }
 0x2a3   :  { %v5990_v28 = vpop.eup %5989  ;;  %v2282_v2 = vadd.f32 1.0, %v5988_v45  ;;  %v8207_v42 = vadd.f32 %v10183_v43, %v7530_v39  ;;  %v10189_v43 = vld [vmem:[#allocation69_spill] sm:$0xff]  ;;  %10192 = vst [vmem:[#allocation50_spill] sm:$0xff] %v8248_v4  ;;  %v8266_v17 = vpop.f32.mrb[94].mxu1 }
 0x2a4   :  { %v5992_v6 = vpop.eup %5991  ;;  %6011 = vrcp.f32 %v2271_v46  ;;  %v2284_v1 = vadd.f32 1.0, %v5990_v28  ;;  %v10185_v46 = vld [vmem:[#allocation18_spill] sm:$0xff]  ;;  %v8231_v29 = vadd.f32 %v10189_v43, %v7586_v14  ;;  %10196 = vst [vmem:[#allocation48_spill] sm:$0xff] %v8266_v17 }
 0x2a5   :  { %v5994_v16 = vpop.eup %5993  ;;  %6013 = vrcp.f32 %v2282_v2  ;;  %v2283_v27 = vadd.f32 1.0, %v5992_v6  ;;  %v8215_v28 = vadd.f32 %v10185_v46, %v7586_v14  ;;  %v10186_v2 = vld [vmem:[#allocation66_spill] sm:$0xff] }
 0x2a6   :  { %v5996_v15 = vpop.eup %5995  ;;  %6015 = vrcp.f32 %v2284_v1  ;;  %v2285_v41 = vadd.f32 1.0, %v5994_v16  ;;  %v8219_v6 = vadd.f32 %v10186_v2, %v7682_v59 }
 0x2a7   :  { %v5998_v33 = vpop.eup %5997  ;;  %6017 = vrcp.f32 %v2283_v27  ;;  %v2296_v7 = vadd.f32 1.0, %v5996_v15  ;;  %v10187_v27 = vld [vmem:[#allocation67_spill] sm:$0xff] }
 0x2a8   :  { %v6000_v38 = vpop.eup %5999  ;;  %6019 = vrcp.f32 %v2285_v41  ;;  %v2298_v52 = vadd.f32 1.0, %v5998_v33  ;;  %v8223_v15 = vadd.f32 %v10187_v27, %v7530_v39  ;;  %v10188_v41 = vld [vmem:[#allocation68_spill] sm:$0xff]  ;;  %v4668_v11 = vmul.f32 -1.442695, %v8219_v6 }
 0x2a9   :  { %v6002_v37 = vpop.eup %6001  ;;  %6021 = vrcp.f32 %v2296_v7  ;;  %v2297_v45 = vadd.f32 1.0, %v6000_v38  ;;  %v8227_v33 = vadd.f32 %v10188_v41, %v7537_v0  ;;  %v4666_v41 = vmul.f32 -1.442695, %v8215_v28 }
 0x2aa   :  { %v6004_v1 = vpop.eup %6003  ;;  %6023 = vrcp.f32 %v2298_v52  ;;  %v2299_v16 = vadd.f32 1.0, %v6002_v37  ;;  %v4665_v52 = vmul.f32 -1.442695, %v8207_v42  ;;  %v4667_v37 = vmul.f32 -1.442695, %v8211_v47 }
 0x2ab   :  { %v6006_v7 = vpop.eup %6005  ;;  %6025 = vrcp.f32 %v2297_v45  ;;  %v2310_v38 = vadd.f32 1.0, %v6004_v1  ;;  %v4679_v43 = vmul.f32 -1.442695, %v8223_v15  ;;  %v4681_v40 = vmul.f32 -1.442695, %v8227_v33 }
 0x2ac   :  { %v6008_v46 = vpop.eup %6007  ;;  %6027 = vrcp.f32 %v2299_v16  ;;  %v2312_v2 = vadd.f32 1.0, %v6006_v7  ;;  %v4680_v7 = vmul.f32 -1.442695, %v8231_v29 }
 0x2ad   :  { %v6010_v27 = vpop.eup %6009  ;;  %6029 = vrcp.f32 %v2310_v38  ;;  %v2311_v3 = vadd.f32 1.0, %v6008_v46  ;;  %v10191_v38 = vld [vmem:[#allocation6_spill] sm:$0xff] }
 0x2ae   :  { %v6012_v45 = vpop.eup %6011  ;;  %6031 = vrcp.f32 %v2312_v2  ;;  %v2313_v1 = vadd.f32 1.0, %v6010_v27  ;;  %v8246_v46 = vadd.f32 %v10191_v38, %v7530_v39  ;;  %v8250_v2 = vpop.f32.mrb[93].mxu0  ;;  %v2942_v38 = vmul.f32 %v8192_v50, %v7977_v26 }
 0x2af   :  { %v6014_v16 = vpop.eup %6013  ;;  %6033 = vrcp.f32 %v2311_v3  ;;  %10193 = vst [vmem:[#allocation51_spill] sm:$0xff] %v8250_v2  ;;  %v10195_v2 = vld [vmem:[#allocation23_spill] sm:$0xff]  ;;  %v8268_v21 = vpop.f32.mrb[94].mxu0 }
 0x2b0   :  { %v6016_v27 = vpop.eup %6015  ;;  %v2954_v3 = vmul.f32 %v6014_v16, %v8078_v44  ;;  %6035 = vrcp.f32 %v2313_v1  ;;  %v8264_v4 = vadd.f32 %v10195_v2, %v7586_v14  ;;  %10197 = vst [vmem:[#allocation47_spill] sm:$0xff] %v8268_v21  ;;  %v8275_v16 = vpop.f32.mrb[95].mxu1  ;;  %v4682_v21 = vmul.f32 -1.442695, %v8242_v20 }
 0x2b1   :  { %v6018_v58 = vpop.eup %6017  ;;  %v2956_v49 = vmul.f32 %v6016_v27, %v8082_v54  ;;  %6037 = vpow2.f32 %v4665_v52  ;;  %v2943_v54 = vmul.f32 %v6012_v45, %v8071_v57  ;;  %10198 = vst [vmem:[#allocation15_spill] sm:$0xff] %v8275_v16  ;;  %v8277_v2 = vpop.f32.mrb[95].mxu0  ;;  %v4693_v57 = vmul.f32 -1.442695, %v8246_v46  ;;  %v10225_v16 = vld [vmem:[#allocation78_spill] sm:$0xff] }
 0x2b2   :  { %v6020_v44 = vpop.eup %6019  ;;  %v5107_v18 = vpack.c.bf16 %v2954_v3, %v2940_v12  ;;  %v2955_v1 = vmul.f32 %v6018_v58, %v8089_v34  ;;  %6039 = vpow2.f32 %v4667_v37  ;;  %10199 = vst [vmem:[#allocation22_spill] sm:$0xff] %v8277_v2  ;;  %v8282_v12 = vadd.f32 %v10200_v63, %v7682_v59 }
 0x2b3   :  { %v6022_v26 = vpop.eup %6021  ;;  %v5139_v50 = vpack.c.bf16 %v2956_v49, %v2942_v38  ;;  %v2957_v52 = vmul.f32 %v6020_v44, %v8103_v8  ;;  %6041 = vpow2.f32 %v4666_v41  ;;  %v10201_v8 = vld [vmem:[#allocation24_spill] sm:$0xff]  ;;  %v4694_v3 = vmul.f32 -1.442695, %v8264_v4 }
 0x2b4   :  { %v6024_v27 = vpop.eup %6023  ;;  %6043 = vpow2.f32 %v4668_v11  ;;  %v5105_v34 = vpack.c.bf16 %v2955_v1, %v2941_v55  ;;  %v8287_v49 = vadd.f32 %v10201_v8, %v7530_v39  ;;  %v4695_v11 = vmul.f32 -1.442695, %v8257_v9 }
 0x2b5   :  { %v6026_v53 = vpop.eup %6025  ;;  %6045 = vpow2.f32 %v4679_v43  ;;  %v5137_v37 = vpack.c.bf16 %v2957_v52, %v2943_v54  ;;  %v2968_v43 = vmul.f32 %v6022_v26, %v8107_v31  ;;  %v4696_v44 = vmul.f32 -1.442695, %v8282_v12  ;;  %v8297_v54 = vpop.f32.mrb[96].mxu1 }
 0x2b6   :  { %v6028_v41 = vpop.eup %6027  ;;  %6047 = vpow2.f32 %v4681_v40  ;;  %5106 = vmatprep.subr.bf16.mxu1 %v5105_v34  ;;  %v2970_v40 = vmul.f32 %v6024_v27, %v8111_v60  ;;  %10202 = vst [vmem:[#allocation58_spill] sm:$0xff] %v8297_v54  ;;  %v2969_v31 = vmul.f32 %v6026_v53, %v8118_v62  ;;  %v8303_v26 = vpop.f32.mrb[97].mxu1 }
 0x2b7   :  { %v6030_v45 = vpop.eup %6029  ;;  %6049 = vpow2.f32 %v4680_v7  ;;  %5108 = vmatpush1.bf16.msra.mxu1 %v5107_v18  ;;  %5138 = vmatprep.subr.bf16.mxu0 %v5137_v37  ;;  %v4707_v7 = vmul.f32 -1.442695, %v8287_v49  ;;  %v8299_v18 = vpop.f32.mrb[96].mxu0  ;;  %10204 = vst [vmem:[#allocation21_spill] sm:$0xff] %v8303_v26  ;;  %v10224_v26 = vld [vmem:[#allocation29_spill] sm:$0xff] }
 0x2b8   :  { %v6032_v58 = vpop.eup %6031  ;;  %v2982_v38 = vmul.f32 %v6030_v45, %v8135_v32  ;;  %6051 = vpow2.f32 %v4682_v21  ;;  %5140 = vmatpush1.bf16.msra.mxu0 %v5139_v50  ;;  %10203 = vst [vmem:[#allocation57_spill] sm:$0xff] %v8299_v18  ;;  %v8305_v50 = vpop.f32.mrb[97].mxu0 }
 0x2b9   :  { %v6034_v55 = vpop.eup %6033  ;;  %v2984_v1 = vmul.f32 %v6032_v58, %v8142_v5  ;;  %6053 = vpow2.f32 %v4693_v57  ;;  %10205 = vst [vmem:[#allocation7_spill] sm:$0xff] %v8305_v50  ;;  %v2971_v5 = vmul.f32 %v6028_v41, %v8122_v48  ;;  %v8309_v34 = vpop.f32.mrb[98].mxu1 }
 0x2ba   :  { %v6036_v52 = vpop.eup %6035  ;;  %v5111_v32 = vpack.c.bf16 %v2982_v38, %v2968_v43  ;;  %v2983_v21 = vmul.f32 %v6034_v55, %v8152_v61  ;;  %6055 = vpow2.f32 %v4695_v11  ;;  %10206 = vst [vmem:[#allocation52_spill] sm:$0xff] %v8309_v34  ;;  %v8311_v57 = vpop.f32.mrb[98].mxu0  ;;  %v10209_v38 = vld [vmem:[#allocation25_spill] sm:$0xff]  ;;  %v10210_v55 = vld [vmem:[#allocation8_spill] sm:$0xff] }
 0x2bb   :  { %v6038_v60 = vpop.eup %6037  ;;  %v5143_v27 = vpack.c.bf16 %v2984_v1, %v2970_v40  ;;  %v2985_v63 = vmul.f32 %v6036_v52, %v8166_v25  ;;  %6057 = vpow2.f32 %v4694_v3  ;;  %10207 = vst [vmem:[#allocation53_spill] sm:$0xff] %v8311_v57  ;;  %v8313_v8 = vpop.f32.mrb[99].mxu1  ;;  %v8321_v40 = vadd.f32 %v10210_v55, %v7586_v14  ;;  %v10223_v57 = vld [vmem:[#allocation77_spill] sm:$0xff] }
 0x2bc   :  { %v6040_v62 = vpop.eup %6039  ;;  %v2324_v53 = vadd.f32 1.0, %v6038_v60  ;;  %6059 = vpow2.f32 %v4696_v44  ;;  %v5109_v61 = vpack.c.bf16 %v2983_v21, %v2969_v31  ;;  %10208 = vst [vmem:[#allocation54_spill] sm:$0xff] %v8313_v8  ;;  %v8317_v44 = vadd.f32 %v10209_v38, %v7537_v0  ;;  %v8344_v38 = vld [vmem:[%s9905_s4 + $0x8] sm:$0x3f] }
 0x2bd   :  { %v6042_v37 = vpop.eup %6041  ;;  %v2326_v11 = vadd.f32 1.0, %v6040_v62  ;;  %6061 = vpow2.f32 %v4707_v7  ;;  %v5141_v45 = vpack.c.bf16 %v2985_v63, %v2971_v5  ;;  %v4708_v62 = vmul.f32 -1.442695, %v8321_v40 }
 0x2be   :  { %v6044_v58 = vpop.eup %6043  ;;  %6063 = vrcp.f32 %v2324_v53  ;;  %v2325_v48 = vadd.f32 1.0, %v6042_v37  ;;  %5110 = vmatprep.subr.bf16.mxu1 %v5109_v61  ;;  %v4709_v63 = vmul.f32 -1.442695, %v8317_v44  ;;  %v8384_v34 = vadd.f32 %v10223_v57, %v7682_v59  ;;  %v8398_v57 = vpop.f32.mrb[100].mxu1 }
 0x2bf   :  { %v6046_v25 = vpop.eup %6045  ;;  %6065 = vrcp.f32 %v2326_v11  ;;  %v2327_v41 = vadd.f32 1.0, %v6044_v58  ;;  %5112 = vmatpush1.bf16.msra.mxu1 %v5111_v32  ;;  %5142 = vmatprep.subr.bf16.mxu0 %v5141_v45  ;;  %v10212_v11 = vld [vmem:[#allocation71_spill] sm:$0xff]  ;;  %10226 = vst [vmem:[#allocation56_spill] sm:$0xff] %v8398_v57 }
 0x2c0   :  { %v6048_v3 = vpop.eup %6047  ;;  %6067 = vrcp.f32 %v2325_v48  ;;  %v2338_v43 = vadd.f32 1.0, %v6046_v25  ;;  %5144 = vmatpush1.bf16.msra.mxu0 %v5143_v27  ;;  %v10211_v27 = vld [vmem:[#allocation26_spill] sm:$0xff]  ;;  %v8331_v45 = vadd.f32 %v10212_v11, %v7530_v39  ;;  %v10213_v25 = vld [vmem:[#allocation72_spill] sm:$0xff] }
 0x2c1   :  { %v6050_v1 = vpop.eup %6049  ;;  %6069 = vrcp.f32 %v2327_v41  ;;  %v2340_v7 = vadd.f32 1.0, %v6048_v3  ;;  %v8327_v37 = vadd.f32 %v10211_v27, %v7682_v59  ;;  %v8335_v41 = vadd.f32 %v10213_v25, %v7537_v0  ;;  %v10214_v3 = vld [vmem:[#allocation17_spill] sm:$0xff]  ;;  %v10218_v27 = vld [vmem:[#allocation76_spill] sm:$0xff] }
 0x2c2   :  { %v6052_v52 = vpop.eup %6051  ;;  %6071 = vrcp.f32 %v2338_v43  ;;  %v2339_v31 = vadd.f32 1.0, %v6050_v1  ;;  %v8339_v43 = vadd.f32 %v10214_v3, %v7586_v14  ;;  %v8360_v11 = vadd.f32 %v10218_v27, %v7586_v14  ;;  %v10220_v3 = vld [vmem:[#allocation3_spill] sm:$0xff] }
 0x2c3   :  { %v6054_v32 = vpop.eup %6053  ;;  %6073 = vrcp.f32 %v2340_v7  ;;  %v2341_v21 = vadd.f32 1.0, %v6052_v52  ;;  %v10215_v7 = vld [vmem:[#allocation73_spill] sm:$0xff]  ;;  %v4710_v25 = vmul.f32 -1.442695, %v8327_v37  ;;  %v10222_v14 = vsub.s32 2, %v10220_v3 }
 0x2c4   :  { %v6056_v60 = vpop.eup %6055  ;;  %6075 = vrcp.f32 %v2339_v31  ;;  %v2352_v5 = vadd.f32 1.0, %v6054_v32  ;;  %v8348_v52 = vadd.f32 %v10215_v7, %v7682_v59  ;;  %v10216_v31 = vld [vmem:[#allocation74_spill] sm:$0xff]  ;;  %v4736_v8 = vmul.f32 -1.442695, %v8360_v11 }
 0x2c5   :  { %v6058_v53 = vpop.eup %6057  ;;  %6077 = vrcp.f32 %v2341_v21  ;;  %v2354_v61 = vadd.f32 1.0, %v6056_v60  ;;  %v8352_v32 = vadd.f32 %v10216_v31, %v7530_v39  ;;  %v10221_v39 = vsub.s32 0, %v10220_v3 }
 0x2c6   :  { %v6060_v58 = vpop.eup %6059  ;;  %6079 = vrcp.f32 %v2352_v5  ;;  %v2353_v48 = vadd.f32 1.0, %v6058_v53  ;;  %v10217_v5 = vld [vmem:[#allocation75_spill] sm:$0xff]  ;;  %v8375_v31 = vrot.slane %v8344_v38, %v10222_v14  ;;  %v4724_v27 = vmul.f32 -1.442695, %v8348_v52 }
 0x2c7   :  { %v6062_v55 = vpop.eup %6061  ;;  %6081 = vrcp.f32 %v2354_v61  ;;  %v2355_v1 = vadd.f32 1.0, %v6060_v58  ;;  %v8356_v53 = vadd.f32 %v10217_v5, %v7537_v0  ;;  %v8362_v61 = vpop.f32.mrb[99].mxu0  ;;  %v8368_v7 = vrot.slane %v8344_v38, %v10221_v39 }
 0x2c8   :  { %v6064_v21 = vpop.eup %6063  ;;  %6083 = vrcp.f32 %v2353_v48  ;;  %v2366_v60 = vadd.f32 1.0, %v6062_v55  ;;  %10219 = vst [vmem:[#allocation55_spill] sm:$0xff] %v8362_v61  ;;  %v4721_v0 = vmul.f32 -1.442695, %v8331_v45  ;;  %v4723_v55 = vmul.f32 -1.442695, %v8335_v41 }
 0x2c9   :  { %v6066_v58 = vpop.eup %6065  ;;  %6085 = vrcp.f32 %v2355_v1  ;;  %v4722_v1 = vmul.f32 -1.442695, %v8339_v43  ;;  %v4735_v39 = vmul.f32 -1.442695, %v8352_v32  ;;  %v2996_v50 = vmul.f32 %v6064_v21, %v8207_v42  ;;  %v8400_v42 = vpop.f32.mrb[100].mxu0 }
 0x2ca   :  { %v6068_v48 = vpop.eup %6067  ;;  %6087 = vrcp.f32 %v2366_v60  ;;  %v4737_v60 = vmul.f32 -1.442695, %v8356_v53  ;;  %v8390_v18 = vadd.f32 %v10224_v26, %v8368_v7  ;;  %v8396_v59 = vadd.f32 %v10225_v16, %v8375_v31  ;;  %10227 = vst [vmem:[#allocation59_spill] sm:$0xff] %v8400_v42 }
 0x2cb   :  { %v6070_v5 = vpop.eup %6069  ;;  %6089 = vpow2.f32 %v4709_v63  ;;  %v2997_v21 = vmul.f32 %v6068_v48, %v8215_v28 }
 0x2cc   :  { %v6072_v61 = vpop.eup %6071  ;;  %6091 = vpow2.f32 %v4708_v62  ;;  %v2998_v62 = vmul.f32 %v6066_v58, %v8211_v47  ;;  %v8406_v47 = vpop.f32.mrb[101].mxu0  ;;  %v2999_v58 = vmul.f32 %v6070_v5, %v8219_v6  ;;  %v4531_v5 = vmul.f32 -1.442695, %v8396_v59 }
 0x2cd   :  { %v6074_v14 = vpop.eup %6073  ;;  %v3010_v63 = vmul.f32 %v6072_v61, %v8223_v15  ;;  %6093 = vpow2.f32 %v4710_v25  ;;  %v8404_v25 = vpop.f32.mrb[101].mxu1  ;;  %10229 = vst [vmem:[#allocation61_spill] sm:$0xff] %v8406_v47 }
 0x2ce   :  { %v6076_v54 = vpop.eup %6075  ;;  %v3012_v2 = vmul.f32 %v6074_v14, %v8227_v33  ;;  %6095 = vpow2.f32 %v4721_v0  ;;  %10228 = vst [vmem:[#allocation60_spill] sm:$0xff] %v8404_v25  ;;  %v8410_v14 = vpop.f32.mrb[102].mxu1 }
 0x2cf   :  { %v6078_v15 = vpop.eup %6077  ;;  %v5115_v61 = vpack.c.bf16 %v3010_v63, %v2996_v50  ;;  %v3011_v26 = vmul.f32 %v6076_v54, %v8231_v29  ;;  %6097 = vpow2.f32 %v4723_v55  ;;  %10230 = vst [vmem:[#allocation62_spill] sm:$0xff] %v8410_v14  ;;  %v8412_v42 = vpop.f32.mrb[102].mxu0  ;;  %v4738_v29 = vmul.f32 -1.442695, %v8384_v34  ;;  %v10248_v14 = vld [vmem:[#allocation80_spill] sm:$0xff] }
 0x2d0   :  { %v6080_v33 = vpop.eup %6079  ;;  %v5147_v16 = vpack.c.bf16 %v3012_v2, %v2998_v62  ;;  %v3013_v0 = vmul.f32 %v6078_v15, %v8242_v20  ;;  %6099 = vpow2.f32 %v4722_v1  ;;  %10231 = vst [vmem:[#allocation63_spill] sm:$0xff] %v8412_v42  ;;  %v8417_v50 = vpop.f32.mrb[103].mxu1  ;;  %v4529_v20 = vmul.f32 -1.442695, %v8390_v18 }
 0x2d1   :  { %v8414_v28 = vpop.eup %6081  ;;  %6101 = vpow2.f32 %v4724_v27  ;;  %v5113_v54 = vpack.c.bf16 %v3011_v26, %v2997_v21  ;;  %10232 = vst [vmem:[#allocation64_spill] sm:$0xff] %v8417_v50  ;;  %v8419_v48 = vpop.f32.mrb[103].mxu0  ;;  %v8428_v63 = vmul.f32 %v6080_v33, %v8246_v46 }
 0x2d2   :  { %10233 = vst [vmem:[#allocation13_spill] sm:$0xff] %v8419_v48  ;;  %v8421_v55 = vpop.eup %6083  ;;  %6103 = vpow2.f32 %v4735_v39  ;;  %v5145_v6 = vpack.c.bf16 %v3013_v0, %v2999_v58 }
 0x2d3   :  { %v8424_v2 = vpop.eup %6085  ;;  %6105 = vpow2.f32 %v4737_v60  ;;  %5114 = vmatprep.subr.bf16.mxu1 %v5113_v54  ;;  %v10234_v60 = vsub.s32 1, %v10220_v3 }
 0x2d4   :  { %v6088_v1 = vpop.eup %6087  ;;  %6107 = vpow2.f32 %v4736_v8  ;;  %5116 = vmatpush1.bf16.msra.mxu1 %v5115_v61  ;;  %5146 = vmatprep.subr.bf16.mxu0 %v5145_v6  ;;  %v8438_v8 = vpop.f32.mrb[104].mxu1 }
 0x2d5   :  { %v6090_v27 = vpop.eup %6089  ;;  %v8431_v62 = vmul.f32 %v6088_v1, %v8287_v49  ;;  %6109 = vpow2.f32 %v4738_v29  ;;  %5148 = vmatpush1.bf16.msra.mxu0 %v5147_v16  ;;  %v8436_v21 = vrot.slane %v8344_v38, %v10234_v60  ;;  %10235 = vst [vmem:[#allocation65_spill] sm:$0xff] %v8438_v8  ;;  %v10236_v49 = vsub.s32 3, %v10220_v3  ;;  %v8447_v58 = vpop.f32.mrb[105].mxu1 }
 0x2d6   :  { %v6092_v39 = vpop.eup %6091  ;;  %v2368_v15 = vadd.f32 1.0, %v6090_v27  ;;  %6111 = vpow2.f32 %v4529_v20  ;;  %10237 = vst [vmem:[#allocation5_spill] sm:$0xff] %v8447_v58  ;;  %v8449_v29 = vpop.f32.mrb[106].mxu1  ;;  %v10240_v27 = vld [vmem:[#allocation30_spill] sm:$0xff] }
 0x2d7   :  { %v6094_v61 = vpop.eup %6093  ;;  %v2367_v26 = vadd.f32 1.0, %v6092_v39  ;;  %6113 = vpow2.f32 %v4531_v5  ;;  %v8445_v33 = vrot.slane %v8344_v38, %v10236_v49  ;;  %10238 = vst [vmem:[#allocation9_spill] sm:$0xff] %v8449_v29  ;;  %v8451_v6 = vpop.f32.mrb[107].mxu1  ;;  %v8455_v39 = vadd.f32 %v10240_v27, %v8436_v21  ;;  %v10242_v49 = vld [vmem:[#allocation31_spill] sm:$0xff] }
 0x2d8   :  { %v6096_v16 = vpop.eup %6095  ;;  %6115 = vrcp.f32 %v2368_v15  ;;  %v2369_v0 = vadd.f32 1.0, %v6094_v61  ;;  %10239 = vst [vmem:[#allocation16_spill] sm:$0xff] %v8451_v6  ;;  %v10241_v15 = vld [vmem:[#allocation38_spill] sm:$0xff] }
 0x2d9   :  { %v6098_v54 = vpop.eup %6097  ;;  %6117 = vrcp.f32 %v2367_v26  ;;  %v2380_v20 = vadd.f32 1.0, %v6096_v16  ;;  %v8459_v61 = vadd.f32 %v10241_v15, %v8445_v33  ;;  %v8463_v26 = vadd.f32 %v10242_v49, %v8368_v7 }
 0x2da   :  { %v6100_v1 = vpop.eup %6099  ;;  %6119 = vrcp.f32 %v2369_v0  ;;  %v2382_v5 = vadd.f32 1.0, %v6098_v54  ;;  %v10243_v0 = vld [vmem:[#allocation32_spill] sm:$0xff]  ;;  %v4530_v49 = vmul.f32 -1.442695, %v8455_v39 }
 0x2db   :  { %v6102_v38 = vpop.eup %6101  ;;  %6121 = vrcp.f32 %v2380_v20  ;;  %v2381_v60 = vadd.f32 1.0, %v6100_v1  ;;  %v8467_v54 = vadd.f32 %v10243_v0, %v8375_v31  ;;  %v10244_v20 = vld [vmem:[#allocation33_spill] sm:$0xff]  ;;  %v4543_v0 = vmul.f32 -1.442695, %v8463_v26 }
 0x2dc   :  { %v6104_v16 = vpop.eup %6103  ;;  %6123 = vrcp.f32 %v2382_v5  ;;  %v2383_v46 = vadd.f32 1.0, %v6102_v38  ;;  %v8471_v1 = vadd.f32 %v10244_v20, %v8436_v21  ;;  %v4532_v38 = vmul.f32 -1.442695, %v8459_v61  ;;  %v10245_v20 = vld [vmem:[#allocation34_spill] sm:$0xff] }
 0x2dd   :  { %v6106_v27 = vpop.eup %6105  ;;  %6125 = vrcp.f32 %v2381_v60  ;;  %v2394_v6 = vadd.f32 1.0, %v6104_v16  ;;  %v4545_v16 = vmul.f32 -1.442695, %v8467_v54  ;;  %v8479_v48 = vadd.f32 %v10245_v20, %v8445_v33 }
 0x2de   :  { %v6108_v15 = vpop.eup %6107  ;;  %6127 = vrcp.f32 %v2383_v46  ;;  %v2396_v29 = vadd.f32 1.0, %v6106_v27  ;;  %v4544_v3 = vmul.f32 -1.442695, %v8471_v1  ;;  %v8492_v20 = vadd.f32 %v10248_v14, %v8436_v21  ;;  %v10250_v14 = vld [vmem:[#allocation82_spill] sm:$0xff] }
 0x2df   :  { %v6110_v58 = vpop.eup %6109  ;;  %6129 = vrcp.f32 %v2394_v6  ;;  %v2395_v5 = vadd.f32 1.0, %v6108_v15  ;;  %v10246_v6 = vld [vmem:[#allocation35_spill] sm:$0xff]  ;;  %v8506_v57 = vadd.f32 %v10250_v14, %v8368_v7 }
 0x2e0   :  { %v6112_v8 = vpop.eup %6111  ;;  %6131 = vrcp.f32 %v2396_v29  ;;  %v2397_v60 = vadd.f32 1.0, %v6110_v58  ;;  %v8484_v15 = vadd.f32 %v10246_v6, %v8368_v7  ;;  %v10247_v58 = vld [vmem:[#allocation79_spill] sm:$0xff]  ;;  %v10249_v6 = vld [vmem:[#allocation81_spill] sm:$0xff] }
 0x2e1   :  { %v6114_v46 = vpop.eup %6113  ;;  %6133 = vrcp.f32 %v2395_v5  ;;  %v2188_v27 = vadd.f32 1.0, %v6112_v8  ;;  %v8488_v29 = vadd.f32 %v10247_v58, %v8375_v31  ;;  %v3026_v8 = vmul.f32 %v8414_v28, %v8257_v9 }
 0x2e2   :  { %v6116_v50 = vpop.eup %6115  ;;  %6135 = vrcp.f32 %v2397_v60  ;;  %v2190_v42 = vadd.f32 1.0, %v6114_v46  ;;  %v8499_v25 = vadd.f32 %v10249_v6, %v8445_v33  ;;  %v3025_v46 = vmul.f32 %v8421_v55, %v8264_v4  ;;  %v10251_v4 = vld [vmem:[#allocation83_spill] sm:$0xff]  ;;  %v10252_v6 = vld [vmem:[#allocation84_spill] sm:$0xff] }
 0x2e3   :  { %v6118_v47 = vpop.eup %6117  ;;  %v3040_v5 = vmul.f32 %v6116_v50, %v8317_v44  ;;  %6137 = vrcp.f32 %v2188_v27  ;;  %v3027_v9 = vmul.f32 %v8424_v2, %v8282_v12  ;;  %v4546_v27 = vmul.f32 -1.442695, %v8479_v48 }
 0x2e4   :  { %v6120_v60 = vpop.eup %6119  ;;  %v3039_v58 = vmul.f32 %v6118_v47, %v8321_v40  ;;  %6139 = vrcp.f32 %v2190_v42  ;;  %v8514_v40 = vadd.f32 %v10251_v4, %v8375_v31  ;;  %v4557_v55 = vmul.f32 -1.442695, %v8484_v15 }
 0x2e5   :  { %v6122_v17 = vpop.eup %6121  ;;  %v5151_v44 = vpack.c.bf16 %v3040_v5, %v3026_v8  ;;  %v3041_v28 = vmul.f32 %v6120_v60, %v8327_v37  ;;  %6141 = vpow2.f32 %v4530_v49  ;;  %v8519_v12 = vadd.f32 %v10252_v6, %v8436_v21  ;;  %v8521_v37 = vpop.f32.mrb[108].mxu1 }
 0x2e6   :  { %v6124_v50 = vpop.eup %6123  ;;  %6143 = vpow2.f32 %v4532_v38  ;;  %v5117_v42 = vpack.c.bf16 %v3039_v58, %v3025_v46  ;;  %v4559_v38 = vmul.f32 -1.442695, %v8488_v29  ;;  %v4558_v8 = vmul.f32 -1.442695, %v8492_v20  ;;  %v8525_v5 = vpop.f32.mrb[109].mxu1 }
 0x2e7   :  { %v6126_v47 = vpop.eup %6125  ;;  %6145 = vpow2.f32 %v4543_v0  ;;  %v5149_v2 = vpack.c.bf16 %v3041_v28, %v3027_v9  ;;  %v4560_v0 = vmul.f32 -1.442695, %v8499_v25  ;;  %v4571_v46 = vmul.f32 -1.442695, %v8506_v57  ;;  %v8532_v14 = vpop.f32.mrb[110].mxu1 }
 0x2e8   :  { %v6128_v49 = vpop.eup %6127  ;;  %6147 = vpow2.f32 %v4545_v16  ;;  %5118 = vmatprep.subr.bf16.mxu1 %v5117_v42  ;;  %v10253_v58 = vpack.c.bf16 %v8431_v62, %v8428_v63  ;;  %v3052_v9 = vmul.f32 %v6122_v17, %v8331_v45  ;;  %v4573_v4 = vmul.f32 -1.442695, %v8514_v40 }
 0x2e9   :  { %v6130_v60 = vpop.eup %6129  ;;  %6149 = vpow2.f32 %v4544_v3  ;;  %5150 = vmatprep.subr.bf16.mxu0 %v5149_v2  ;;  %v8537_v3 = vpop.f32.mrb[111].mxu1  ;;  %v3054_v6 = vmul.f32 %v6124_v50, %v8335_v41  ;;  %v4572_v62 = vmul.f32 -1.442695, %v8519_v12 }
 0x2ea   :  { %5120 = vmatpush1.bf16.msra.mxu1 %v10253_v58  ;;  %v6132_v16 = vpop.eup %6131  ;;  %v3066_v28 = vmul.f32 %v6130_v60, %v8352_v32  ;;  %6151 = vpow2.f32 %v4546_v27  ;;  %5152 = vmatpush1.bf16.msra.mxu0 %v5151_v44  ;;  %v3053_v58 = vmul.f32 %v6126_v47, %v8339_v43  ;;  %v3055_v44 = vmul.f32 %v6128_v49, %v8348_v52  ;;  %v8550_v43 = vpop.f32.mrb[112].mxu1 }
 0x2eb   :  { %v6134_v42 = vpop.eup %6133  ;;  %v3068_v63 = vmul.f32 %v6132_v16, %v8356_v53  ;;  %6153 = vpow2.f32 %v4557_v55 }
 0x2ec   :  { %v6136_v2 = vpop.eup %6135  ;;  %v5123_v17 = vpack.c.bf16 %v3066_v28, %v3052_v9  ;;  %v3067_v45 = vmul.f32 %v6134_v42, %v8360_v11  ;;  %6155 = vpow2.f32 %v4559_v38  ;;  %v8552_v38 = vpop.f32.mrb[113].mxu1 }
 0x2ed   :  { %v8544_v32 = vpop.eup %6137  ;;  %v5155_v27 = vpack.c.bf16 %v3068_v63, %v3054_v6  ;;  %v3069_v60 = vmul.f32 %v6136_v2, %v8384_v34  ;;  %6157 = vpow2.f32 %v4558_v8  ;;  %v8554_v34 = vpop.f32.mrb[114].mxu1 }
 0x2ee   :  { %v8548_v41 = vpop.eup %6139  ;;  %6159 = vpow2.f32 %v4560_v0  ;;  %v5121_v53 = vpack.c.bf16 %v3067_v45, %v3053_v58 }
 0x2ef   :  { %v6142_v50 = vpop.eup %6141  ;;  %6161 = vpow2.f32 %v4571_v46  ;;  %v5153_v55 = vpack.c.bf16 %v3069_v60, %v3055_v44  ;;  %v8556_v46 = vpop.f32.mrb[115].mxu1  ;;  %v8572_v44 = vadd.f32 %v7989_v13, %v8368_v7  ;;  %v8588_v13 = vadd.f32 %v8000_v36, %v8445_v33 }
 0x2f0   :  { %v6144_v47 = vpop.eup %6143  ;;  %v2189_v11 = vadd.f32 1.0, %v6142_v50  ;;  %6163 = vpow2.f32 %v4573_v4  ;;  %5122 = vmatprep.subr.bf16.mxu1 %v5121_v53  ;;  %v10255_v50 = vld [vmem:[#allocation4_spill] sm:$0xff]  ;;  %v2862_v19 = vmul.f32 %v8548_v41, %v8396_v59 }
 0x2f1   :  { %v6146_v52 = vpop.eup %6145  ;;  %v2191_v49 = vadd.f32 1.0, %v6144_v47  ;;  %6165 = vpow2.f32 %v4572_v62  ;;  %5154 = vmatprep.subr.bf16.mxu0 %v5153_v55  ;;  %5124 = vmatpush1.bf16.msra.mxu1 %v5123_v17  ;;  %v10254_v17 = vld [vmem:[#allocation85_spill] sm:$0xff]  ;;  %v8578_v55 = vadd.f32 %v10255_v50, %v8375_v31  ;;  %v8582_v47 = vadd.f32 %v7998_v22, %v8436_v21 }
 0x2f2   :  { %v6148_v8 = vpop.eup %6147  ;;  %6167 = vrcp.f32 %v2189_v11  ;;  %v2202_v0 = vadd.f32 1.0, %v6146_v52  ;;  %5156 = vmatpush1.bf16.msra.mxu0 %v5155_v27  ;;  %v8568_v45 = vadd.f32 %v10254_v17, %v8445_v33  ;;  %v8574_v27 = vpop.f32.mrb[116].mxu1  ;;  %v8598_v22 = vadd.f32 %v8015_v35, %v8375_v31 }
 0x2f3   :  { %v6150_v16 = vpop.eup %6149  ;;  %6169 = vrcp.f32 %v2191_v49  ;;  %v2204_v9 = vadd.f32 1.0, %v6148_v8  ;;  %v8584_v11 = vpop.f32.mrb[117].mxu1  ;;  %v8592_v8 = vadd.f32 %v8013_v51, %v8368_v7  ;;  %v4586_v35 = vmul.f32 -1.442695, %v8582_v47 }
 0x2f4   :  { %v6152_v28 = vpop.eup %6151  ;;  %6171 = vrcp.f32 %v2202_v0  ;;  %v2203_v4 = vadd.f32 1.0, %v6150_v16  ;;  %4748 = vmatmul.mubr.msk.f32.vlgmr.msra.gmra.mrb[136].mxu1 %vm7890_vm4, %v10159_v30  ;;  %v8594_v0 = vpop.f32.mrb[118].mxu1  ;;  %v4574_v51 = vmul.f32 -1.442695, %v8568_v45  ;;  %v4601_v50 = vmul.f32 -1.442695, %v8598_v22 }
 0x2f5   :  { %v6154_v42 = vpop.eup %6153  ;;  %6173 = vrcp.f32 %v2204_v9  ;;  %v2205_v6 = vadd.f32 1.0, %v6152_v28  ;;  %4749 = vmatmul.mubr.msk.f32.vlgmr.msra.gmra.mrb[108].mxu0 %vm7890_vm4, %v10159_v30  ;;  %3454 = vmatprep.mubr.f32.mxu1 %v10105_v24  ;;  %10256 = vst [vmem:[#allocation18_spill] sm:$0xff] %v8594_v0  ;;  %v8602_v28 = vadd.f32 %v8018_v10, %v8436_v21  ;;  %v4588_v10 = vmul.f32 -1.442695, %v8588_v13  ;;  %v10260_v30 = vld [vmem:[#allocation11_spill] sm:$0xff] }
 0x2f6   :  { %v6156_v63 = vpop.eup %6155  ;;  %6175 = vrcp.f32 %v2203_v4  ;;  %v2216_v62 = vadd.f32 1.0, %v6154_v42  ;;  %3525 = vmatprep.mubr.f32.mxu0 %v10105_v24  ;;  %v8604_v4 = vpop.f32.mrb[119].mxu1  ;;  %v4599_v17 = vmul.f32 -1.442695, %v8592_v8 }
 0x2f7   :  { %v6158_v2 = vpop.eup %6157  ;;  %6177 = vrcp.f32 %v2205_v6  ;;  %v2218_v58 = vadd.f32 1.0, %v6156_v63  ;;  %10257 = vst [vmem:[#allocation66_spill] sm:$0xff] %v8604_v4  ;;  %v4585_v6 = vmul.f32 -1.442695, %v8572_v44  ;;  %v8636_v4 = vadd.f32 %v10260_v30, %v8436_v21 }
 0x2f8   :  { %v6160_v60 = vpop.eup %6159  ;;  %6179 = vrcp.f32 %v2216_v62  ;;  %v2217_v53 = vadd.f32 1.0, %v6158_v2  ;;  %v4587_v2 = vmul.f32 -1.442695, %v8578_v55 }
 0x2f9   :  { %v6162_v52 = vpop.eup %6161  ;;  %6181 = vrcp.f32 %v2218_v58  ;;  %v2219_v49 = vadd.f32 1.0, %v6160_v60  ;;  %v8614_v60 = vadd.f32 %v8020_v23, %v8445_v33  ;;  %v10258_v23 = vld [vmem:[#allocation12_spill] sm:$0xff] }
 0x2fa   :  { %v6164_v16 = vpop.eup %6163  ;;  %6183 = vrcp.f32 %v2217_v53  ;;  %v2230_v9 = vadd.f32 1.0, %v6162_v52  ;;  %v4600_v52 = vmul.f32 -1.442695, %v8602_v28 }
 0x2fb   :  { %v6166_v36 = vpop.eup %6165  ;;  %6185 = vrcp.f32 %v2219_v49  ;;  %v2232_v42 = vadd.f32 1.0, %v6164_v16  ;;  %v8620_v49 = vadd.f32 %v8049_v56, %v8368_v7 }
 0x2fc   :  { %v6168_v63 = vpop.eup %6167  ;;  %6187 = vrcp.f32 %v2230_v9  ;;  %v2231_v62 = vadd.f32 1.0, %v6166_v36  ;;  %v2860_v9 = vmul.f32 %v8544_v32, %v8390_v18 }
 0x2fd   :  { %v6170_v58 = vpop.eup %6169  ;;  %6189 = vrcp.f32 %v2232_v42  ;;  %v8627_v42 = vadd.f32 %v10258_v23, %v8375_v31  ;;  %v2861_v32 = vmul.f32 %v6168_v63, %v8455_v39  ;;  %v10264_v39 = vld [vmem:[#allocation36_spill] sm:$0xff] }
 0x2fe   :  { %v6172_v53 = vpop.eup %6171  ;;  %6191 = vrcp.f32 %v2231_v62  ;;  %v8629_v62 = vpop.f32.mrb[120].mxu1  ;;  %v2863_v59 = vmul.f32 %v6170_v58, %v8459_v61  ;;  %v8651_v63 = vadd.f32 %v10264_v39, %v8445_v33  ;;  %v4614_v58 = vmul.f32 -1.442695, %v8636_v4 }
 0x2ff   :  { %v6174_v16 = vpop.eup %6173  ;;  %v2874_v36 = vmul.f32 %v6172_v53, %v8463_v26  ;;  %6193 = vpow2.f32 %v4574_v51  ;;  %10259 = vst [vmem:[#allocation67_spill] sm:$0xff] %v8629_v62  ;;  %v8638_v18 = vpop.f32.mrb[121].mxu1 }
 0x300   :  { %v6176_v24 = vpop.eup %6175  ;;  %v2876_v56 = vmul.f32 %v6174_v16, %v8467_v54  ;;  %6195 = vpow2.f32 %v4585_v6  ;;  %10261 = vst [vmem:[#allocation68_spill] sm:$0xff] %v8638_v18  ;;  %v8642_v23 = vpop.f32.mrb[122].mxu1  ;;  %v4602_v16 = vmul.f32 -1.442695, %v8614_v60 }
 0x301   :  { %v6178_v26 = vpop.eup %6177  ;;  %v5159_v51 = vpack.c.bf16 %v2874_v36, %v2860_v9  ;;  %v2875_v53 = vmul.f32 %v6176_v24, %v8471_v1  ;;  %6197 = vpow2.f32 %v4587_v2  ;;  %10262 = vst [vmem:[#allocation69_spill] sm:$0xff] %v8642_v23  ;;  %v8646_v30 = vpop.f32.mrb[123].mxu1  ;;  %v4613_v2 = vmul.f32 -1.442695, %v8620_v49 }
 0x302   :  { %v6180_v62 = vpop.eup %6179  ;;  %v5191_v54 = vpack.c.bf16 %v2876_v56, %v2862_v19  ;;  %v2877_v41 = vmul.f32 %v6178_v26, %v8479_v48  ;;  %6199 = vpow2.f32 %v4586_v35  ;;  %10263 = vst [vmem:[#allocation70_spill] sm:$0xff] %v8646_v30  ;;  %v4615_v48 = vmul.f32 -1.442695, %v8627_v42  ;;  %v8661_v56 = vpop.f32.mrb[124].mxu1 }
 0x303   :  { %v6182_v6 = vpop.eup %6181  ;;  %6201 = vpow2.f32 %v4588_v10  ;;  %v5157_v24 = vpack.c.bf16 %v2875_v53, %v2861_v32  ;;  %v2888_v9 = vmul.f32 %v6180_v62, %v8484_v15  ;;  %v4616_v36 = vmul.f32 -1.442695, %v8651_v63  ;;  %10265 = vst [vmem:[#allocation6_spill] sm:$0xff] %v8661_v56  ;;  %v8669_v32 = vpop.f32.mrb[125].mxu1 }
 0x304   :  { %v6184_v1 = vpop.eup %6183  ;;  %6203 = vpow2.f32 %v4599_v17  ;;  %v5189_v61 = vpack.c.bf16 %v2877_v41, %v2863_v59  ;;  %v8664_v26 = vmul.f32 %v6182_v6, %v8488_v29  ;;  %10266 = vst [vmem:[#allocation14_spill] sm:$0xff] %v8669_v32  ;;  %v8673_v53 = vpop.f32.mrb[126].mxu1 }
 0x305   :  { %v8654_v19 = vpop.eup %6185  ;;  %6205 = vpow2.f32 %v4601_v50  ;;  %5158 = vmatprep.subr.bf16.mxu1 %v5157_v24  ;;  %v2889_v15 = vmul.f32 %v6184_v1, %v8492_v20  ;;  %10267 = vst [vmem:[#allocation23_spill] sm:$0xff] %v8673_v53 }
 0x306   :  { %v6188_v35 = vpop.eup %6187  ;;  %6207 = vpow2.f32 %v4600_v52  ;;  %5190 = vmatprep.subr.bf16.mxu0 %v5189_v61  ;;  %5160 = vmatpush1.bf16.msra.mxu1 %v5159_v51  ;;  %v10269_v61 = vld [vmem:[#allocation37_spill] sm:$0xff] }
 0x307   :  { %v6190_v10 = vpop.eup %6189  ;;  %v2902_v17 = vmul.f32 %v6188_v35, %v8506_v57  ;;  %6209 = vpow2.f32 %v4602_v16  ;;  %5192 = vmatpush1.bf16.msra.mxu0 %v5191_v54 }
 0x308   :  { %v6192_v50 = vpop.eup %6191  ;;  %v8667_v52 = vmul.f32 %v6190_v10, %v8514_v40  ;;  %6211 = vpow2.f32 %v4613_v2  ;;  %v8677_v40 = vpop.f32.mrb[127].mxu1  ;;  %v10270_v10 = vld [vmem:[#allocation39_spill] sm:$0xff] }
 0x309   :  { %v6194_v51 = vpop.eup %6193  ;;  %v5163_v57 = vpack.c.bf16 %v2902_v17, %v2888_v9  ;;  %v2903_v62 = vmul.f32 %v6192_v50, %v8519_v12  ;;  %6213 = vpow2.f32 %v4615_v48  ;;  %10268 = vst [vmem:[#allocation10_spill] sm:$0xff] %v8677_v40  ;;  %v8681_v48 = vadd.f32 %v10269_v61, %v8368_v7  ;;  %v8687_v17 = vpop.f32.mrb[128].mxu1 }
 0x30a   :  { %v6196_v59 = vpop.eup %6195  ;;  %v2233_v54 = vadd.f32 1.0, %v6194_v51  ;;  %6215 = vpow2.f32 %v4614_v58  ;;  %v8685_v9 = vadd.f32 %v10270_v10, %v8375_v31  ;;  %10271 = vst [vmem:[#allocation24_spill] sm:$0xff] %v8687_v17  ;;  %v10272_v51 = vld [vmem:[#allocation40_spill] sm:$0xff]  ;;  %v10277_v10 = vld [vmem:[#allocation42_spill] sm:$0xff] }
 0x30b   :  { %v6198_v41 = vpop.eup %6197  ;;  %v2244_v6 = vadd.f32 1.0, %v6196_v59  ;;  %6217 = vpow2.f32 %v4616_v36  ;;  %v5161_v16 = vpack.c.bf16 %v2903_v62, %v2889_v15  ;;  %v8691_v15 = vadd.f32 %v10272_v51, %v8436_v21  ;;  %v8693_v62 = vpop.f32.mrb[129].mxu1 }
 0x30c   :  { %v6200_v39 = vpop.eup %6199  ;;  %6219 = vrcp.f32 %v2233_v54  ;;  %v2246_v20 = vadd.f32 1.0, %v6198_v41  ;;  %10273 = vst [vmem:[#allocation25_spill] sm:$0xff] %v8693_v62  ;;  %v8695_v54 = vpop.f32.mrb[130].mxu1 }
 0x30d   :  { %v6202_v24 = vpop.eup %6201  ;;  %6221 = vrcp.f32 %v2244_v6  ;;  %v2245_v12 = vadd.f32 1.0, %v6200_v39  ;;  %5162 = vmatprep.subr.bf16.mxu1 %v5161_v16  ;;  %10274 = vst [vmem:[#allocation8_spill] sm:$0xff] %v8695_v54  ;;  %v4627_v16 = vmul.f32 -1.442695, %v8681_v48  ;;  %v8698_v39 = vpop.f32.mrb[131].mxu1 }
 0x30e   :  { %v6204_v1 = vpop.eup %6203  ;;  %6223 = vrcp.f32 %v2246_v20  ;;  %v2247_v2 = vadd.f32 1.0, %v6202_v24  ;;  %5164 = vmatpush1.bf16.msra.mxu1 %v5163_v57  ;;  %10275 = vst [vmem:[#allocation26_spill] sm:$0xff] %v8698_v39 }
 0x30f   :  { %v6206_v35 = vpop.eup %6205  ;;  %6225 = vrcp.f32 %v2245_v12  ;;  %v2258_v58 = vadd.f32 1.0, %v6204_v1  ;;  %v4629_v12 = vmul.f32 -1.442695, %v8685_v9  ;;  %v10276_v1 = vld [vmem:[#allocation41_spill] sm:$0xff] }
 0x310   :  { %v6208_v36 = vpop.eup %6207  ;;  %6227 = vrcp.f32 %v2247_v2  ;;  %v2260_v50 = vadd.f32 1.0, %v6206_v35  ;;  %v8703_v2 = vadd.f32 %v10276_v1, %v8445_v33 }
 0x311   :  { %v6210_v59 = vpop.eup %6209  ;;  %6229 = vrcp.f32 %v2258_v58  ;;  %v2259_v57 = vadd.f32 1.0, %v6208_v36  ;;  %v4628_v58 = vmul.f32 -1.442695, %v8691_v15  ;;  %v8708_v36 = vadd.f32 %v10277_v10, %v8368_v7  ;;  %v10281_v10 = vld [vmem:[#allocation19_spill] sm:$0xff] }
 0x312   :  { %v6212_v41 = vpop.eup %6211  ;;  %6231 = vrcp.f32 %v2260_v50  ;;  %v2261_v6 = vadd.f32 1.0, %v6210_v59  ;;  %v10278_v59 = vld [vmem:[#allocation43_spill] sm:$0xff]  ;;  %v8724_v54 = vadd.f32 %v10281_v10, %v8368_v7 }
 0x313   :  { %v6214_v20 = vpop.eup %6213  ;;  %6233 = vrcp.f32 %v2259_v57  ;;  %v2272_v24 = vadd.f32 1.0, %v6212_v41  ;;  %v8712_v57 = vadd.f32 %v10278_v59, %v8375_v31  ;;  %v10279_v41 = vld [vmem:[#allocation44_spill] sm:$0xff]  ;;  %v4641_v10 = vmul.f32 -1.442695, %v8708_v36 }
 0x314   :  { %v6216_v61 = vpop.eup %6215  ;;  %6235 = vrcp.f32 %v2261_v6  ;;  %v2274_v35 = vadd.f32 1.0, %v6214_v20  ;;  %v8716_v1 = vadd.f32 %v10279_v41, %v8436_v21  ;;  %v10280_v20 = vld [vmem:[#allocation20_spill] sm:$0xff]  ;;  %v10282_v41 = vld [vmem:[#allocation45_spill] sm:$0xff] }
 0x315   :  { %v6218_v50 = vpop.eup %6217  ;;  %6237 = vrcp.f32 %v2272_v24  ;;  %v2273_v51 = vadd.f32 1.0, %v6216_v61  ;;  %v8720_v39 = vadd.f32 %v10280_v20, %v8445_v33  ;;  %v2891_v61 = vmul.f32 %v8654_v19, %v8499_v25 }
 0x316   :  { %v6220_v29 = vpop.eup %6219  ;;  %6239 = vrcp.f32 %v2274_v35  ;;  %v2275_v6 = vadd.f32 1.0, %v6218_v50  ;;  %v8731_v62 = vadd.f32 %v10282_v41, %v8375_v31  ;;  %v8733_v35 = vpop.f32.mrb[132].mxu1  ;;  %v4630_v20 = vmul.f32 -1.442695, %v8703_v2 }
 0x317   :  { %v6222_v24 = vpop.eup %6221  ;;  %v2905_v59 = vmul.f32 %v6220_v29, %v8568_v45  ;;  %6241 = vrcp.f32 %v2273_v51  ;;  %10283 = vst [vmem:[#allocation71_spill] sm:$0xff] %v8733_v35  ;;  %v8737_v17 = vpop.f32.mrb[133].mxu1  ;;  %v4643_v25 = vmul.f32 -1.442695, %v8712_v57  ;;  %v10285_v45 = vld [vmem:[#allocation28_spill] sm:$0xff] }
 0x318   :  { %v6224_v50 = vpop.eup %6223  ;;  %6243 = vrcp.f32 %v2275_v6  ;;  %10284 = vst [vmem:[#allocation72_spill] sm:$0xff] %v8737_v17  ;;  %v8742_v19 = vadd.f32 %v10285_v45, %v8436_v21  ;;  %v8744_v51 = vpop.f32.mrb[134].mxu1  ;;  %v4642_v6 = vmul.f32 -1.442695, %v8716_v1  ;;  %v4644_v35 = vmul.f32 -1.442695, %v8720_v39 }
 0x319   :  { %v6226_v40 = vpop.eup %6225  ;;  %6245 = vpow2.f32 %v4627_v16  ;;  %v5193_v29 = vpack.c.bf16 %v2905_v59, %v2891_v61  ;;  %10286 = vst [vmem:[#allocation17_spill] sm:$0xff] %v8744_v51  ;;  %v8748_v53 = vpop.f32.mrb[135].mxu1  ;;  %v4655_v16 = vmul.f32 -1.442695, %v8724_v54  ;;  %v4657_v32 = vmul.f32 -1.442695, %v8731_v62 }
 0x31a   :  { %v6228_v41 = vpop.eup %6227  ;;  %6247 = vpow2.f32 %v4629_v12  ;;  %10287 = vst [vmem:[#allocation73_spill] sm:$0xff] %v8748_v53  ;;  %v10288_v45 = vld [vmem:[#allocation27_spill] sm:$0xff]  ;;  %v2916_v12 = vmul.f32 %v6222_v24, %v8572_v44  ;;  %v10289_v51 = vld [vmem:[#allocation46_spill] sm:$0xff]  ;;  %v2918_v23 = vmul.f32 %v6224_v50, %v8578_v55 }
 0x31b   :  { %v6230_v17 = vpop.eup %6229  ;;  %6249 = vpow2.f32 %v4628_v58  ;;  %v8754_v56 = vadd.f32 %v10288_v45, %v8445_v33  ;;  %5194 = vmatprep.subr.bf16.mxu0 %v5193_v29  ;;  %v8760_v53 = vadd.f32 %v10289_v51, %v8368_v7  ;;  %v10290_v58 = vpack.c.bf16 %v8667_v52, %v8664_v26 }
 0x31c   :  { %v6232_v61 = vpop.eup %6231  ;;  %v2930_v59 = vmul.f32 %v6230_v17, %v8592_v8  ;;  %6251 = vpow2.f32 %v4630_v20  ;;  %v4656_v29 = vmul.f32 -1.442695, %v8742_v19  ;;  %v2917_v8 = vmul.f32 %v6226_v40, %v8582_v47 }
 0x31d   :  { %5196 = vmatpush1.bf16.msra.mxu0 %v10290_v58  ;;  %v6234_v30 = vpop.eup %6233  ;;  %v2932_v45 = vmul.f32 %v6232_v61, %v8598_v22  ;;  %6253 = vpow2.f32 %v4641_v10  ;;  %v2919_v26 = vmul.f32 %v6228_v41, %v8588_v13  ;;  %v4658_v22 = vmul.f32 -1.442695, %v8754_v56 }
 0x31e   :  { %v6236_v44 = vpop.eup %6235  ;;  %v5167_v17 = vpack.c.bf16 %v2930_v59, %v2916_v12  ;;  %v2931_v24 = vmul.f32 %v6234_v30, %v8602_v28  ;;  %6255 = vpow2.f32 %v4643_v25  ;;  %v4669_v47 = vmul.f32 -1.442695, %v8760_v53  ;;  %v10291_v12 = vld [vmem:[#allocation49_spill] sm:$0xff] }
 0x31f   :  { %v8770_v20 = vpop.eup %6237  ;;  %v5199_v52 = vpack.c.bf16 %v2932_v45, %v2918_v23  ;;  %v2933_v51 = vmul.f32 %v6236_v44, %v8614_v60  ;;  %6257 = vpow2.f32 %v4642_v6  ;;  %v8784_v59 = vadd.f32 %v10291_v12, %v8375_v31 }
 0x320   :  { %v8774_v55 = vpop.eup %6239  ;;  %6259 = vpow2.f32 %v4644_v35  ;;  %v5165_v50 = vpack.c.bf16 %v2931_v24, %v2917_v8  ;;  %v10293_v8 = vld [vmem:[#allocation51_spill] sm:$0xff] }
 0x321   :  { %v8777_v10 = vpop.eup %6241  ;;  %6261 = vpow2.f32 %v4655_v16  ;;  %v5197_v28 = vpack.c.bf16 %v2933_v51, %v2919_v26 }
 0x322   :  { %v8780_v30 = vpop.eup %6243  ;;  %6263 = vpow2.f32 %v4657_v32  ;;  %5166 = vmatprep.subr.bf16.mxu1 %v5165_v50 }
 0x323   :  { %v6246_v13 = vpop.eup %6245  ;;  %6265 = vpow2.f32 %v4656_v29  ;;  %5198 = vmatprep.subr.bf16.mxu0 %v5197_v28  ;;  %5168 = vmatpush1.bf16.msra.mxu1 %v5167_v17  ;;  %v10292_v29 = vld [vmem:[#allocation50_spill] sm:$0xff]  ;;  %v8792_v17 = vadd.f32 %v10293_v8, %v8445_v33 }
 0x324   :  { %v6248_v60 = vpop.eup %6247  ;;  %v2286_v23 = vadd.f32 1.0, %v6246_v13  ;;  %6267 = vpow2.f32 %v4658_v22  ;;  %5200 = vmatpush1.bf16.msra.mxu0 %v5199_v52  ;;  %v8788_v44 = vadd.f32 %v10292_v29, %v8436_v21  ;;  %v10294_v52 = vld [vmem:[#allocation48_spill] sm:$0xff]  ;;  %v10295_v22 = vld [vmem:[#allocation47_spill] sm:$0xff] }
 0x325   :  { %v6250_v40 = vpop.eup %6249  ;;  %v2288_v35 = vadd.f32 1.0, %v6248_v60  ;;  %6269 = vpow2.f32 %v4669_v47  ;;  %v8796_v51 = vadd.f32 %v10294_v52, %v8368_v7  ;;  %v8800_v50 = vadd.f32 %v10295_v22, %v8375_v31  ;;  %v10296_v13 = vld [vmem:[#allocation15_spill] sm:$0xff] }
 0x326   :  { %v6252_v25 = vpop.eup %6251  ;;  %6271 = vrcp.f32 %v2286_v23  ;;  %v2287_v41 = vadd.f32 1.0, %v6250_v40  ;;  %v8804_v60 = vadd.f32 %v10296_v13, %v8436_v21  ;;  %v10299_v13 = vld [vmem:[#allocation57_spill] sm:$0xff] }
 0x327   :  { %v6254_v6 = vpop.eup %6253  ;;  %6273 = vrcp.f32 %v2288_v35  ;;  %v2289_v16 = vadd.f32 1.0, %v6252_v25  ;;  %v4671_v35 = vmul.f32 -1.442695, %v8784_v59  ;;  %v4683_v12 = vmul.f32 -1.442695, %v8796_v51 }
 0x328   :  { %v6256_v61 = vpop.eup %6255  ;;  %6275 = vrcp.f32 %v2287_v41  ;;  %v2300_v32 = vadd.f32 1.0, %v6254_v6  ;;  %v4670_v6 = vmul.f32 -1.442695, %v8788_v44  ;;  %v4684_v8 = vmul.f32 -1.442695, %v8804_v60 }
 0x329   :  { %v6258_v58 = vpop.eup %6257  ;;  %6277 = vrcp.f32 %v2289_v16  ;;  %v2302_v45 = vadd.f32 1.0, %v6256_v61  ;;  %v4672_v16 = vmul.f32 -1.442695, %v8792_v17 }
 0x32a   :  { %v6260_v24 = vpop.eup %6259  ;;  %6279 = vrcp.f32 %v2300_v32  ;;  %v2301_v26 = vadd.f32 1.0, %v6258_v58  ;;  %v4685_v58 = vmul.f32 -1.442695, %v8800_v50 }
 0x32b   :  { %v6262_v47 = vpop.eup %6261  ;;  %6281 = vrcp.f32 %v2302_v45  ;;  %v2303_v28 = vadd.f32 1.0, %v6260_v24  ;;  %v10297_v24 = vld [vmem:[#allocation22_spill] sm:$0xff] }
 0x32c   :  { %v6264_v23 = vpop.eup %6263  ;;  %6283 = vrcp.f32 %v2301_v26  ;;  %v2314_v40 = vadd.f32 1.0, %v6262_v47  ;;  %v8814_v26 = vadd.f32 %v10297_v24, %v8445_v33  ;;  %v10298_v47 = vld [vmem:[#allocation58_spill] sm:$0xff] }
 0x32d   :  { %v6266_v25 = vpop.eup %6265  ;;  %6285 = vrcp.f32 %v2303_v28  ;;  %v2316_v41 = vadd.f32 1.0, %v6264_v23  ;;  %v8818_v28 = vadd.f32 %v10298_v47, %v8368_v7  ;;  %v8822_v23 = vadd.f32 %v10299_v13, %v8375_v31  ;;  %v10301_v13 = vld [vmem:[#allocation7_spill] sm:$0xff] }
 0x32e   :  { %v6268_v61 = vpop.eup %6267  ;;  %6287 = vrcp.f32 %v2314_v40  ;;  %v2315_v32 = vadd.f32 1.0, %v6266_v25  ;;  %v2944_v25 = vmul.f32 %v8770_v20, %v8620_v49  ;;  %v8836_v18 = vadd.f32 %v10301_v13, %v8445_v33 }
 0x32f   :  { %v6270_v45 = vpop.eup %6269  ;;  %6289 = vrcp.f32 %v2316_v41  ;;  %v2317_v29 = vadd.f32 1.0, %v6268_v61  ;;  %v10300_v61 = vld [vmem:[#allocation21_spill] sm:$0xff]  ;;  %v2945_v49 = vmul.f32 %v8777_v10, %v8636_v4 }
 0x330   :  { %v6272_v52 = vpop.eup %6271  ;;  %6291 = vrcp.f32 %v2315_v32  ;;  %v2328_v22 = vadd.f32 1.0, %v6270_v45  ;;  %v8829_v24 = vadd.f32 %v10300_v61, %v8436_v21  ;;  %v2946_v45 = vmul.f32 %v8774_v55, %v8627_v42 }
 0x331   :  { %v6274_v40 = vpop.eup %6273  ;;  %v2958_v41 = vmul.f32 %v6272_v52, %v8681_v48  ;;  %6293 = vrcp.f32 %v2317_v29  ;;  %v2947_v52 = vmul.f32 %v8780_v30, %v8651_v63 }
 0x332   :  { %v6276_v32 = vpop.eup %6275  ;;  %v2960_v47 = vmul.f32 %v6274_v40, %v8685_v9  ;;  %6295 = vrcp.f32 %v2328_v22  ;;  %v4686_v22 = vmul.f32 -1.442695, %v8814_v26  ;;  %v10302_v40 = vld [vmem:[#allocation52_spill] sm:$0xff] }
 0x333   :  { %v6278_v0 = vpop.eup %6277  ;;  %v5171_v48 = vpack.c.bf16 %v2958_v41, %v2944_v25  ;;  %v2959_v20 = vmul.f32 %v6276_v32, %v8691_v15  ;;  %6297 = vpow2.f32 %v4671_v35  ;;  %v8847_v61 = vadd.f32 %v10302_v40, %v8368_v7  ;;  %v10303_v35 = vld [vmem:[#allocation53_spill] sm:$0xff] }
 0x334   :  { %v6280_v29 = vpop.eup %6279  ;;  %v5203_v42 = vpack.c.bf16 %v2960_v47, %v2946_v45  ;;  %v2961_v9 = vmul.f32 %v6278_v0, %v8703_v2  ;;  %6299 = vpow2.f32 %v4670_v6  ;;  %v4697_v15 = vmul.f32 -1.442695, %v8818_v28 }
 0x335   :  { %v6282_v55 = vpop.eup %6281  ;;  %6301 = vpow2.f32 %v4672_v16  ;;  %v5169_v4 = vpack.c.bf16 %v2959_v20, %v2945_v49  ;;  %v8852_v63 = vadd.f32 %v10303_v35, %v8375_v31  ;;  %v4699_v2 = vmul.f32 -1.442695, %v8822_v23 }
 0x336   :  { %v6284_v10 = vpop.eup %6283  ;;  %6303 = vpow2.f32 %v4683_v12  ;;  %v5201_v30 = vpack.c.bf16 %v2961_v9, %v2947_v52  ;;  %v4698_v16 = vmul.f32 -1.442695, %v8829_v24  ;;  %v4700_v25 = vmul.f32 -1.442695, %v8836_v18 }
 0x337   :  { %v6286_v0 = vpop.eup %6285  ;;  %6305 = vpow2.f32 %v4685_v58  ;;  %5170 = vmatprep.subr.bf16.mxu1 %v5169_v4  ;;  %v2972_v41 = vmul.f32 %v6280_v29, %v8708_v36  ;;  %v4711_v45 = vmul.f32 -1.442695, %v8847_v61  ;;  %v2974_v47 = vmul.f32 %v6282_v55, %v8712_v57 }
 0x338   :  { %v6288_v6 = vpop.eup %6287  ;;  %6307 = vpow2.f32 %v4684_v8  ;;  %5202 = vmatprep.subr.bf16.mxu0 %v5201_v30  ;;  %5172 = vmatpush1.bf16.msra.mxu1 %v5171_v48  ;;  %v4713_v13 = vmul.f32 -1.442695, %v8852_v63  ;;  %v2973_v48 = vmul.f32 %v6284_v10, %v8716_v1  ;;  %v2975_v29 = vmul.f32 %v6286_v0, %v8720_v39  ;;  %v10304_v10 = vld [vmem:[#allocation54_spill] sm:$0xff] }
 0x339   :  { %v6290_v12 = vpop.eup %6289  ;;  %v2986_v32 = vmul.f32 %v6288_v6, %v8724_v54  ;;  %6309 = vpow2.f32 %v4686_v22  ;;  %5204 = vmatpush1.bf16.msra.mxu0 %v5203_v42 }
 0x33a   :  { %v6292_v58 = vpop.eup %6291  ;;  %v2988_v8 = vmul.f32 %v6290_v12, %v8731_v62  ;;  %6311 = vpow2.f32 %v4697_v15  ;;  %v8871_v15 = vadd.f32 %v10304_v10, %v8436_v21  ;;  %v6518_v10 = vld [vmem:[%s9905_s4 + $0x8] sm:$0x3f] }
 0x33b   :  { %v6294_v49 = vpop.eup %6293  ;;  %v5175_v20 = vpack.c.bf16 %v2986_v32, %v2972_v41  ;;  %v2987_v36 = vmul.f32 %v6292_v58, %v8742_v19  ;;  %6313 = vpow2.f32 %v4699_v2  ;;  %v10305_v32 = vld [vmem:[#allocation55_spill] sm:$0xff] }
 0x33c   :  { %v8865_v54 = vpop.eup %6295  ;;  %v5207_v52 = vpack.c.bf16 %v2988_v8, %v2974_v47  ;;  %v2989_v42 = vmul.f32 %v6294_v49, %v8754_v56  ;;  %6315 = vpow2.f32 %v4698_v16  ;;  %v4712_v41 = vmul.f32 -1.442695, %v8871_v15  ;;  %v10306_v8 = vld [vmem:[#allocation56_spill] sm:$0xff]  ;;  %v10307_v49 = vld [vmem:[#allocation59_spill] sm:$0xff] }
 0x33d   :  { %v6298_v57 = vpop.eup %6297  ;;  %6317 = vpow2.f32 %v4700_v25  ;;  %v5173_v62 = vpack.c.bf16 %v2987_v36, %v2973_v48  ;;  %v8884_v48 = vadd.f32 %v10307_v49, %v8375_v31 }
 0x33e   :  { %v6300_v9 = vpop.eup %6299  ;;  %v2330_v55 = vadd.f32 1.0, %v6298_v57  ;;  %6319 = vpow2.f32 %v4711_v45  ;;  %v5205_v22 = vpack.c.bf16 %v2989_v42, %v2975_v29  ;;  %v8876_v45 = vadd.f32 %v10305_v32, %v8445_v33  ;;  %v10308_v29 = vld [vmem:[#allocation60_spill] sm:$0xff]  ;;  %v10309_v42 = vld [vmem:[#allocation61_spill] sm:$0xff] }
 0x33f   :  { %v6302_v1 = vpop.eup %6301  ;;  %v2329_v40 = vadd.f32 1.0, %v6300_v9  ;;  %6321 = vpow2.f32 %v4713_v13  ;;  %5174 = vmatprep.subr.bf16.mxu1 %v5173_v62  ;;  %v8880_v13 = vadd.f32 %v10306_v8, %v8368_v7  ;;  %v8892_v57 = vadd.f32 %v10309_v42, %v8445_v33 }
 0x340   :  { %v6304_v19 = vpop.eup %6303  ;;  %6323 = vrcp.f32 %v2330_v55  ;;  %v2331_v4 = vadd.f32 1.0, %v6302_v1  ;;  %5206 = vmatprep.subr.bf16.mxu0 %v5205_v22  ;;  %5176 = vmatpush1.bf16.msra.mxu1 %v5175_v20  ;;  %v10310_v55 = vld [vmem:[#allocation62_spill] sm:$0xff]  ;;  %v10311_v1 = vld [vmem:[#allocation63_spill] sm:$0xff] }
 0x341   :  { %v6306_v39 = vpop.eup %6305  ;;  %6325 = vrcp.f32 %v2329_v40  ;;  %v2342_v56 = vadd.f32 1.0, %v6304_v19  ;;  %5208 = vmatpush1.bf16.msra.mxu0 %v5207_v52  ;;  %v8888_v52 = vadd.f32 %v10308_v29, %v8436_v21  ;;  %v8896_v22 = vadd.f32 %v10310_v55, %v8368_v7  ;;  %v10316_v29 = vld [vmem:[#allocation13_spill] sm:$0xff] }
 0x342   :  { %v6308_v35 = vpop.eup %6307  ;;  %6327 = vrcp.f32 %v2331_v4  ;;  %v2344_v30 = vadd.f32 1.0, %v6306_v39  ;;  %v8900_v40 = vadd.f32 %v10311_v1, %v8375_v31  ;;  %v10312_v39 = vld [vmem:[#allocation64_spill] sm:$0xff]  ;;  %v4714_v31 = vmul.f32 -1.442695, %v8876_v45 }
 0x343   :  { %v6310_v0 = vpop.eup %6309  ;;  %6329 = vrcp.f32 %v2342_v56  ;;  %v2343_v2 = vadd.f32 1.0, %v6308_v35  ;;  %v8904_v56 = vadd.f32 %v10312_v39, %v8436_v21  ;;  %v10313_v35 = vld [vmem:[#allocation3_spill] sm:$0xff]  ;;  %v4725_v21 = vmul.f32 -1.442695, %v8880_v13 }
 0x344   :  { %v6312_v6 = vpop.eup %6311  ;;  %6331 = vrcp.f32 %v2344_v30  ;;  %v2345_v16 = vadd.f32 1.0, %v6310_v0  ;;  %v10314_v30 = vsub.s32 4, %v10313_v35  ;;  %v4726_v32 = vmul.f32 -1.442695, %v8888_v52 }
 0x345   :  { %v6314_v25 = vpop.eup %6313  ;;  %6333 = vrcp.f32 %v2343_v2  ;;  %v2356_v12 = vadd.f32 1.0, %v6312_v6  ;;  %v10315_v6 = vsub.s32 5, %v10313_v35  ;;  %v4739_v8 = vmul.f32 -1.442695, %v8896_v22  ;;  %v10319_v35 = vld [vmem:[#allocation9_spill] sm:$0xff] }
 0x346   :  { %v6316_v58 = vpop.eup %6315  ;;  %6335 = vrcp.f32 %v2345_v16  ;;  %v2358_v47 = vadd.f32 1.0, %v6314_v25  ;;  %v8911_v0 = vrot.slane %v6518_v10, %v10314_v30  ;;  %v4741_v49 = vmul.f32 -1.442695, %v8900_v40 }
 0x347   :  { %v6318_v20 = vpop.eup %6317  ;;  %6337 = vrcp.f32 %v2356_v12  ;;  %v2357_v36 = vadd.f32 1.0, %v6316_v58  ;;  %v8916_v16 = vrot.slane %v6518_v10, %v10315_v6  ;;  %v4727_v12 = vmul.f32 -1.442695, %v8884_v48 }
 0x348   :  { %v6320_v62 = vpop.eup %6319  ;;  %6339 = vrcp.f32 %v2358_v47  ;;  %v2359_v9 = vadd.f32 1.0, %v6318_v20  ;;  %v4728_v47 = vmul.f32 -1.442695, %v8892_v57  ;;  %v8927_v42 = vadd.f32 %v10316_v29, %v8445_v33 }
 0x349   :  { %v6322_v19 = vpop.eup %6321  ;;  %6341 = vrcp.f32 %v2357_v36  ;;  %v2370_v4 = vadd.f32 1.0, %v6320_v62  ;;  %v4740_v36 = vmul.f32 -1.442695, %v8904_v56  ;;  %v10317_v62 = vld [vmem:[#allocation65_spill] sm:$0xff]  ;;  %v3000_v1 = vmul.f32 %v8865_v54, %v8760_v53 }
 0x34a   :  { %v6324_v7 = vpop.eup %6323  ;;  %6343 = vrcp.f32 %v2359_v9  ;;  %v2372_v2 = vadd.f32 1.0, %v6322_v19  ;;  %v8931_v9 = vadd.f32 %v10317_v62, %v8911_v0  ;;  %v8944_v30 = vadd.f32 %v10319_v35, %v8911_v0 }
 0x34b   :  { %v6326_v25 = vpop.eup %6325  ;;  %6345 = vrcp.f32 %v2370_v4  ;;  %v10318_v4 = vld [vmem:[#allocation5_spill] sm:$0xff]  ;;  %v3002_v10 = vmul.f32 %v6324_v7, %v8784_v59  ;;  %v4742_v7 = vmul.f32 -1.442695, %v8927_v42 }
 0x34c   :  { %v6328_v58 = vpop.eup %6327  ;;  %6347 = vrcp.f32 %v2372_v2  ;;  %v3001_v53 = vmul.f32 %v6326_v25, %v8788_v44  ;;  %v4533_v44 = vmul.f32 -1.442695, %v8931_v9 }
 0x34d   :  { %v6330_v20 = vpop.eup %6329  ;;  %6349 = vpow2.f32 %v4712_v41  ;;  %v8938_v41 = vadd.f32 %v10318_v4, %v8916_v16  ;;  %v3003_v6 = vmul.f32 %v6328_v58, %v8792_v17 }
 0x34e   :  { %v6332_v55 = vpop.eup %6331  ;;  %v3014_v19 = vmul.f32 %v6330_v20, %v8796_v51  ;;  %6351 = vpow2.f32 %v4714_v31 }
 0x34f   :  { %v6334_v39 = vpop.eup %6333  ;;  %v3016_v33 = vmul.f32 %v6332_v55, %v8800_v50  ;;  %6353 = vpow2.f32 %v4725_v21  ;;  %v4534_v17 = vmul.f32 -1.442695, %v8938_v41 }
 0x350   :  { %v6336_v2 = vpop.eup %6335  ;;  %v5179_v54 = vpack.c.bf16 %v3014_v19, %v3000_v1  ;;  %v3015_v51 = vmul.f32 %v6334_v39, %v8804_v60  ;;  %6355 = vpow2.f32 %v4727_v12 }
 0x351   :  { %v6338_v31 = vpop.eup %6337  ;;  %v5211_v20 = vpack.c.bf16 %v3016_v33, %v3002_v10  ;;  %v3017_v59 = vmul.f32 %v6336_v2, %v8814_v26  ;;  %6357 = vpow2.f32 %v4726_v32  ;;  %v4547_v26 = vmul.f32 -1.442695, %v8944_v30 }
 0x352   :  { %v6340_v50 = vpop.eup %6339  ;;  %6359 = vpow2.f32 %v4728_v47  ;;  %v5177_v21 = vpack.c.bf16 %v3015_v51, %v3001_v53  ;;  %v8959_v58 = vmul.f32 %v6338_v31, %v8818_v28  ;;  %v10320_v53 = vld [vmem:[#allocation16_spill] sm:$0xff] }
 0x353   :  { %v8951_v29 = vpop.eup %6341  ;;  %6361 = vpow2.f32 %v4739_v8  ;;  %v5209_v25 = vpack.c.bf16 %v3017_v59, %v3003_v6  ;;  %v8964_v8 = vpop.f32.mrb[104].mxu0  ;;  %v8967_v62 = vmul.f32 %v6340_v50, %v8822_v23  ;;  %v8984_v6 = vadd.f32 %v8521_v37, %v8911_v0 }
 0x354   :  { %v8954_v60 = vpop.eup %6343  ;;  %6363 = vpow2.f32 %v4741_v49  ;;  %5178 = vmatprep.subr.bf16.mxu1 %v5177_v21  ;;  %v8972_v55 = vpop.f32.mrb[105].mxu0 }
 0x355   :  { %v6346_v12 = vpop.eup %6345  ;;  %6365 = vpow2.f32 %v4740_v36  ;;  %5210 = vmatprep.subr.bf16.mxu0 %v5209_v25  ;;  %5180 = vmatpush1.bf16.msra.mxu1 %v5179_v54  ;;  %v8980_v54 = vadd.f32 %v10320_v53, %v8916_v16 }
 0x356   :  { %v6348_v32 = vpop.eup %6347  ;;  %v8962_v47 = vmul.f32 %v6346_v12, %v8847_v61  ;;  %6367 = vpow2.f32 %v4742_v7  ;;  %5212 = vmatpush1.bf16.msra.mxu0 %v5211_v20  ;;  %v8988_v20 = vadd.f32 %v8525_v5, %v8916_v16  ;;  %v8992_v7 = vadd.f32 %v8532_v14, %v8911_v0 }
 0x357   :  { %v6350_v49 = vpop.eup %6349  ;;  %v8970_v36 = vmul.f32 %v6348_v32, %v8852_v63  ;;  %6369 = vpow2.f32 %v4533_v44  ;;  %v4548_v37 = vmul.f32 -1.442695, %v8980_v54  ;;  %v4561_v5 = vmul.f32 -1.442695, %v8984_v6 }
 0x358   :  { %v6352_v1 = vpop.eup %6351  ;;  %v5183_v28 = vpack.c.bf16 %v8962_v47, %v8959_v58  ;;  %v2371_v61 = vadd.f32 1.0, %v6350_v49  ;;  %6371 = vpow2.f32 %v4534_v17  ;;  %v4562_v32 = vmul.f32 -1.442695, %v8988_v20 }
 0x359   :  { %v6354_v19 = vpop.eup %6353  ;;  %v5215_v4 = vpack.c.bf16 %v8970_v36, %v8967_v62  ;;  %v2373_v39 = vadd.f32 1.0, %v6352_v1  ;;  %6373 = vpow2.f32 %v4547_v26  ;;  %v4575_v14 = vmul.f32 -1.442695, %v8992_v7  ;;  %v3678_v62 = vld [vmem:[%s9906_s5 + $0x80] sm:$0xff] }
 0x35a   :  { %v6356_v23 = vpop.eup %6355  ;;  %6375 = vrcp.f32 %v2371_v61  ;;  %v2384_v10 = vadd.f32 1.0, %v6354_v19  ;;  %v9000_v61 = vadd.f32 %v8537_v3, %v8916_v16  ;;  %v9016_v3 = vadd.f32 %v8556_v46, %v8916_v16 }
 0x35b   :  { %v6358_v63 = vpop.eup %6357  ;;  %6377 = vrcp.f32 %v2373_v39  ;;  %v2386_v33 = vadd.f32 1.0, %v6356_v23  ;;  %v9004_v23 = vadd.f32 %v8550_v43, %v8911_v0  ;;  %v3029_v43 = vmul.f32 %v8951_v29, %v8829_v24 }
 0x35c   :  { %v6360_v35 = vpop.eup %6359  ;;  %6379 = vrcp.f32 %v2384_v10  ;;  %v2385_v2 = vadd.f32 1.0, %v6358_v63  ;;  %v9008_v10 = vadd.f32 %v8552_v38, %v8916_v16  ;;  %v9023_v38 = vadd.f32 %v8574_v27, %v8911_v0 }
 0x35d   :  { %v6362_v51 = vpop.eup %6361  ;;  %6381 = vrcp.f32 %v2386_v33  ;;  %v2387_v31 = vadd.f32 1.0, %v6360_v35  ;;  %v9012_v35 = vadd.f32 %v8554_v34, %v8911_v0  ;;  %v3031_v34 = vmul.f32 %v8954_v60, %v8836_v18 }
 0x35e   :  { %v6364_v59 = vpop.eup %6363  ;;  %6383 = vrcp.f32 %v2385_v2  ;;  %v2398_v50 = vadd.f32 1.0, %v6362_v51  ;;  %v9030_v46 = vadd.f32 %v8584_v11, %v8916_v16  ;;  %v4589_v18 = vmul.f32 -1.442695, %v9004_v23 }
 0x35f   :  { %v6366_v21 = vpop.eup %6365  ;;  %6385 = vrcp.f32 %v2387_v31  ;;  %v2400_v44 = vadd.f32 1.0, %v6364_v59 }
 0x360   :  { %v6368_v25 = vpop.eup %6367  ;;  %6387 = vrcp.f32 %v2398_v50  ;;  %v2399_v17 = vadd.f32 1.0, %v6366_v21 }
 0x361   :  { %v6370_v12 = vpop.eup %6369  ;;  %6389 = vrcp.f32 %v2400_v44  ;;  %v2401_v26 = vadd.f32 1.0, %v6368_v25  ;;  %v4590_v44 = vmul.f32 -1.442695, %v9008_v10  ;;  %v4603_v25 = vmul.f32 -1.442695, %v9012_v35 }
 0x362   :  { %v6372_v49 = vpop.eup %6371  ;;  %6391 = vrcp.f32 %v2399_v17  ;;  %v2192_v1 = vadd.f32 1.0, %v6370_v12  ;;  %v4617_v12 = vmul.f32 -1.442695, %v9023_v38 }
 0x363   :  { %v6374_v19 = vpop.eup %6373  ;;  %6393 = vrcp.f32 %v2401_v26  ;;  %v2193_v39 = vadd.f32 1.0, %v6372_v49  ;;  %v4618_v26 = vmul.f32 -1.442695, %v9030_v46 }
 0x364   :  { %v6376_v63 = vpop.eup %6375  ;;  %6395 = vrcp.f32 %v2192_v1  ;;  %v2206_v33 = vadd.f32 1.0, %v6374_v19  ;;  %v10322_v1 = vld [vmem:[#allocation66_spill] sm:$0xff] }
 0x365   :  { %v6378_v2 = vpop.eup %6377  ;;  %v3043_v53 = vmul.f32 %v6376_v63, %v8871_v15  ;;  %6397 = vrcp.f32 %v2193_v39  ;;  %v4576_v15 = vmul.f32 -1.442695, %v9000_v61 }
 0x366   :  { %v6380_v51 = vpop.eup %6379  ;;  %v3045_v31 = vmul.f32 %v6378_v2, %v8876_v45  ;;  %6399 = vrcp.f32 %v2206_v33  ;;  %v9032_v59 = vpop.f32.mrb[106].mxu0  ;;  %v10321_v45 = vld [vmem:[#allocation18_spill] sm:$0xff] }
 0x367   :  { %v6382_v24 = vpop.eup %6381  ;;  %6401 = vpow2.f32 %v4548_v37  ;;  %v5181_v29 = vpack.c.bf16 %v3043_v53, %v3029_v43  ;;  %v9035_v27 = vpop.f32.mrb[107].mxu0  ;;  %v9040_v21 = vadd.f32 %v10321_v45, %v8911_v0  ;;  %v4604_v37 = vmul.f32 -1.442695, %v9016_v3  ;;  %v3662_v43 = vld [vmem:[%s9906_s5] sm:$0xff]  ;;  %v3663_v53 = vld [vmem:[%s9906_s5 + $0x8] sm:$0xff] }
 0x368   :  { %v6384_v50 = vpop.eup %6383  ;;  %6403 = vpow2.f32 %v4561_v5  ;;  %v5213_v60 = vpack.c.bf16 %v3045_v31, %v3031_v34  ;;  %v3058_v47 = vmul.f32 %v6382_v24, %v8884_v48  ;;  %v3679_v48 = vld [vmem:[%s9906_s5 + $0x88] sm:$0xff] }
 0x369   :  { %v6386_v11 = vpop.eup %6385  ;;  %6405 = vpow2.f32 %v4562_v32  ;;  %5182 = vmatprep.subr.bf16.mxu1 %v5181_v29  ;;  %v3056_v32 = vmul.f32 %v6380_v51, %v8880_v13  ;;  %v4631_v19 = vmul.f32 -1.442695, %v9040_v21  ;;  %v5253_v34 = vpack.c.bf16 %v3679_v48, %v3678_v62  ;;  %v3681_v29 = vld [vmem:[%s9906_s5 + $0x98] sm:$0xff] }
 0x36a   :  { %v6388_v17 = vpop.eup %6387  ;;  %6407 = vpow2.f32 %v4575_v14  ;;  %5214 = vmatprep.subr.bf16.mxu0 %v5213_v60  ;;  %5184 = vmatpush1.bf16.msra.mxu1 %v5183_v28  ;;  %v9057_v14 = vadd.f32 %v10322_v1, %v8916_v16  ;;  %v10328_v62 = vmov 0.0  }
 0x36b   :  { %v6390_v5 = vpop.eup %6389  ;;  %v3070_v49 = vmul.f32 %v6388_v17, %v8896_v22  ;;  %6409 = vpow2.f32 %v4576_v15  ;;  %5216 = vmatpush1.bf16.msra.mxu0 %v5215_v4  ;;  %v3057_v22 = vmul.f32 %v6384_v50, %v8888_v52  ;;  %v3680_v15 = vld [vmem:[%s9906_s5 + $0x90] sm:$0xff] }
 0x36c   :  { %v6392_v58 = vpop.eup %6391  ;;  %v3072_v28 = vmul.f32 %v6390_v5, %v8900_v40  ;;  %6411 = vpow2.f32 %v4589_v18  ;;  %v3059_v40 = vmul.f32 %v6386_v11, %v8892_v57  ;;  %v5257_v5 = vpack.c.bf16 %v3681_v29, %v3680_v15  ;;  %v10329_v15 = vld [vmem:[#allocation70_spill] sm:$0xff] }
 0x36d   :  { %v6394_v13 = vpop.eup %6393  ;;  %v5187_v39 = vpack.c.bf16 %v3070_v49, %v3056_v32  ;;  %v3071_v63 = vmul.f32 %v6392_v58, %v8904_v56  ;;  %6413 = vpow2.f32 %v4590_v44  ;;  %v4632_v56 = vmul.f32 -1.442695, %v9057_v14  ;;  %v3664_v32 = vld [vmem:[%s9906_s5 + $0x10] sm:$0xff]  ;;  %v3665_v49 = vld [vmem:[%s9906_s5 + $0x18] sm:$0xff] }
 0x36e   :  { %v6396_v36 = vpop.eup %6395  ;;  %v5219_v4 = vpack.c.bf16 %v3072_v28, %v3058_v47  ;;  %v3073_v33 = vmul.f32 %v6394_v13, %v8927_v42  ;;  %6415 = vpow2.f32 %v4603_v25  ;;  %v3649_v25 = vmul.f32 0.015625, %v8972_v55  ;;  %v10327_v28 = vld [vmem:[#allocation69_spill] sm:$0xff]  ;;  %v3682_v13 = vld [vmem:[%s9906_s5 + $0xa0] sm:$0xff] }
 0x36f   :  { %v9072_v52 = vpop.eup %6397  ;;  %6417 = vpow2.f32 %v4604_v37  ;;  %v5185_v2 = vpack.c.bf16 %v3071_v63, %v3057_v22  ;;  %v9082_v31 = vmul.f32 %v6396_v36, %v8931_v9  ;;  %v10323_v9 = vld [vmem:[#allocation67_spill] sm:$0xff]  ;;  %v10325_v58 = vmov 1.0   ;;  %v3683_v22 = vld [vmem:[%s9906_s5 + $0xa8] sm:$0xff] }
 0x370   :  { %v6400_v51 = vpop.eup %6399  ;;  %6419 = vpow2.f32 %v4617_v12  ;;  %v5217_v57 = vpack.c.bf16 %v3073_v33, %v3059_v40  ;;  %v9095_v60 = vadd.f32 %v10323_v9, %v8911_v0  ;;  %v10324_v12 = vld [vmem:[#allocation68_spill] sm:$0xff]  ;;  %v9144_v29 = vadd.f32 %v10329_v15, %v8916_v16 }
 0x371   :  { %v6402_v42 = vpop.eup %6401  ;;  %v9085_v24 = vmul.f32 %v6400_v51, %v8944_v30  ;;  %6421 = vpow2.f32 %v4618_v26  ;;  %5186 = vmatprep.subr.bf16.mxu1 %v5185_v2  ;;  %v5255_v30 = vpack.c.bf16 %v3663_v53, %v3662_v43  ;;  %v9102_v26 = vadd.f32 %v10324_v12, %v8916_v16  ;;  %v3666_v53 = vld [vmem:[%s9906_s5 + $0x20] sm:$0xff]  ;;  %v3667_v51 = vld [vmem:[%s9906_s5 + $0x28] sm:$0xff] }
 0x372   :  { %v6404_v50 = vpop.eup %6403  ;;  %v2207_v18 = vadd.f32 1.0, %v6402_v42  ;;  %6423 = vpow2.f32 %v4631_v19  ;;  %5218 = vmatprep.subr.bf16.mxu0 %v5217_v57  ;;  %5188 = vmatpush1.bf16.msra.mxu1 %v5187_v39  ;;  %v9115_v19 = vadd.f32 %v10327_v28, %v8911_v0  ;;  %v9128_v40 = vmul.f32 -1.442695, %v9095_v60  ;;  %v10333_v28 = vld [vmem:[#allocation10_spill] sm:$0xff] }
 0x373   :  { %v6406_v45 = vpop.eup %6405  ;;  %v5223_v11 = vpack.c.bf16 %v9085_v24, %v9082_v31  ;;  %v2220_v44 = vadd.f32 1.0, %v6404_v50  ;;  %6425 = vpow2.f32 %v4632_v56  ;;  %5220 = vmatpush1.bf16.msra.mxu0 %v5219_v4  ;;  %v5259_v4 = vpack.c.bf16 %v3665_v49, %v3664_v32  ;;  %v3684_v50 = vld [vmem:[%s9906_s5 + $0xb0] sm:$0xff]  ;;  %v10338_v24 = vld [vmem:[#allocation71_spill] sm:$0xff] }
 0x374   :  { %v6408_v17 = vpop.eup %6407  ;;  %6427 = vrcp.f32 %v2207_v18  ;;  %v2221_v37 = vadd.f32 1.0, %v6406_v45  ;;  %5254 = vmatprep.subr.bf16.mxu0 %v5253_v34  ;;  %v9131_v2 = vmul.f32 -1.442695, %v9102_v26  ;;  %v5261_v43 = vpack.c.bf16 %v3683_v22, %v3682_v13  ;;  %v3685_v18 = vld [vmem:[%s9906_s5 + $0xb8] sm:$0xff] }
 0x375   :  { %v6410_v1 = vpop.eup %6409  ;;  %6429 = vrcp.f32 %v2220_v44  ;;  %v2234_v55 = vadd.f32 1.0, %v6408_v17  ;;  %4750 = vmatmul.mubr.msk.f32.vlgmr.msra.gmra.mrb[138].mxu1 %vm7890_vm4, %v10325_v58  ;;  %v9140_v42 = vmul.f32 -1.442695, %v9115_v19  ;;  %v10330_v45 = vld [vmem:[#allocation6_spill] sm:$0xff]  ;;  %v5263_v49 = vpack.c.bf16 %v3667_v51, %v3666_v53 }
 0x376   :  { %v6412_v39 = vpop.eup %6411  ;;  %6431 = vrcp.f32 %v2221_v37  ;;  %v2235_v63 = vadd.f32 1.0, %v6410_v1  ;;  %4751 = vmatmul.mubr.msk.f32.vlgmr.msra.gmra.mrb[110].mxu0 %vm7890_vm4, %v10325_v58  ;;  %3596 = vmatprep.mubr.f32.mxu1 %v10328_v62  ;;  %v9154_v44 = vadd.f32 %v10330_v45, %v8911_v0  ;;  %v9166_v13 = vadd.f32 %v10333_v28, %v8916_v16  ;;  %v3689_v28 = vld [vmem:[%s9906_s5 + $0xd8] sm:$0xff] }
 0x377   :  { %v6414_v48 = vpop.eup %6413  ;;  %6433 = vrcp.f32 %v2234_v55  ;;  %v2248_v36 = vadd.f32 1.0, %v6412_v39  ;;  %5256 = vmatpush3.bf16.msra.mxu0 %v5255_v30  ;;  %3957 = vmatprep.mubr.f32.mxu0 %v3649_v25  ;;  %v10331_v25 = vld [vmem:[#allocation14_spill] sm:$0xff]  ;;  %v5265_v22 = vpack.c.bf16 %v3685_v18, %v3684_v50  ;;  %v3668_v39 = vld [vmem:[%s9906_s5 + $0x30] sm:$0xff]  ;;  %v2865_v50 = vmul.f32 %v9072_v52, %v8938_v41  ;;  %v3671_v41 = vld [vmem:[%s9906_s5 + $0x48] sm:$0xff] }
 0x378   :  { %v6416_v33 = vpop.eup %6415  ;;  %6435 = vrcp.f32 %v2235_v63  ;;  %v2249_v56 = vadd.f32 1.0, %v6414_v48  ;;  %5258 = vmatprep.subr.bf16.mxu0 %v5257_v5  ;;  %v9158_v17 = vadd.f32 %v10331_v25, %v8916_v16  ;;  %v10332_v5 = vld [vmem:[#allocation23_spill] sm:$0xff]  ;;  %v3669_v63 = vld [vmem:[%s9906_s5 + $0x38] sm:$0xff]  ;;  %v4688_v25 = vmul.f32 -1.442695, %v9166_v13 }
 0x379   :  { %v6418_v57 = vpop.eup %6417  ;;  %6437 = vrcp.f32 %v2248_v36  ;;  %v2262_v34 = vadd.f32 1.0, %v6416_v33  ;;  %v9162_v32 = vadd.f32 %v10332_v5, %v8911_v0  ;;  %v4660_v36 = vmul.f32 -1.442695, %v9144_v29 }
 0x37a   :  { %v6420_v9 = vpop.eup %6419  ;;  %6439 = vrcp.f32 %v2249_v56  ;;  %v2263_v30 = vadd.f32 1.0, %v6418_v57  ;;  %v3686_v56 = vld [vmem:[%s9906_s5 + $0xc0] sm:$0xff]  ;;  %v4673_v57 = vmul.f32 -1.442695, %v9154_v44 }
 0x37b   :  { %v6422_v37 = vpop.eup %6421  ;;  %6441 = vrcp.f32 %v2262_v34  ;;  %v2276_v12 = vadd.f32 1.0, %v6420_v9  ;;  %5260 = vmatpush3.bf16.msra.mxu0 %v5259_v4  ;;  %v10334_v4 = vld [vmem:[#allocation24_spill] sm:$0xff]  ;;  %v4674_v34 = vmul.f32 -1.442695, %v9158_v17  ;;  %v5267_v9 = vpack.c.bf16 %v3669_v63, %v3668_v39 }
 0x37c   :  { %v6424_v1 = vpop.eup %6423  ;;  %6443 = vrcp.f32 %v2263_v30  ;;  %v2277_v55 = vadd.f32 1.0, %v6422_v37  ;;  %5262 = vmatprep.subr.bf16.mxu0 %v5261_v43  ;;  %v9177_v33 = vadd.f32 %v10334_v4, %v8911_v0  ;;  %v3687_v43 = vld [vmem:[%s9906_s5 + $0xc8] sm:$0xff]  ;;  %v4687_v45 = vmul.f32 -1.442695, %v9162_v32 }
 0x37d   :  { %v6426_v62 = vpop.eup %6425  ;;  %6445 = vrcp.f32 %v2276_v12  ;;  %v2290_v48 = vadd.f32 1.0, %v6424_v1  ;;  %v5269_v37 = vpack.c.bf16 %v3687_v43, %v3686_v56  ;;  %v3670_v12 = vld [vmem:[%s9906_s5 + $0x40] sm:$0xff]  ;;  %v10336_v63 = vld [vmem:[#allocation8_spill] sm:$0xff] }
 0x37e   :  { %v6428_v53 = vpop.eup %6427  ;;  %6447 = vrcp.f32 %v2277_v55  ;;  %v2291_v51 = vadd.f32 1.0, %v6426_v62  ;;  %v4701_v5 = vmul.f32 -1.442695, %v9177_v33  ;;  %v3688_v55 = vld [vmem:[%s9906_s5 + $0xd0] sm:$0xff]  ;;  %v9215_v62 = vadd.f32 %v10336_v63, %v8911_v0 }
 0x37f   :  { %v6430_v15 = vpop.eup %6429  ;;  %v2879_v18 = vmul.f32 %v6428_v53, %v8980_v54  ;;  %6449 = vrcp.f32 %v2290_v48  ;;  %5264 = vmatpush3.bf16.msra.mxu0 %v5263_v49  ;;  %v10335_v49 = vld [vmem:[#allocation25_spill] sm:$0xff]  ;;  %v5271_v43 = vpack.c.bf16 %v3671_v41, %v3670_v12 }
 0x380   :  { %v6432_v30 = vpop.eup %6431  ;;  %6451 = vrcp.f32 %v2291_v51  ;;  %5266 = vmatprep.subr.bf16.mxu0 %v5265_v22  ;;  %v9202_v1 = vadd.f32 %v10335_v49, %v8916_v16  ;;  %v2892_v39 = vmul.f32 %v6430_v15, %v8984_v6  ;;  %v3690_v15 = vld [vmem:[%s9906_s5 + $0xe0] sm:$0xff] }
 0x381   :  { %v6434_v54 = vpop.eup %6433  ;;  %6453 = vpow2.f32 %v9128_v40  ;;  %v5221_v52 = vpack.c.bf16 %v2879_v18, %v2865_v50  ;;  %v2893_v4 = vmul.f32 %v6432_v30, %v8988_v20  ;;  %v5273_v20 = vpack.c.bf16 %v3689_v28, %v3688_v55  ;;  %v3691_v50 = vld [vmem:[%s9906_s5 + $0xe8] sm:$0xff]  ;;  %v3693_v28 = vld [vmem:[%s9906_s5 + $0xf8] sm:$0xff] }
 0x382   :  { %v6436_v22 = vpop.eup %6435  ;;  %v2906_v40 = vmul.f32 %v6434_v54, %v8992_v7  ;;  %6455 = vpow2.f32 %v9131_v2  ;;  %v10337_v7 = vld [vmem:[#allocation26_spill] sm:$0xff]  ;;  %v4702_v31 = vmul.f32 -1.442695, %v9202_v1  ;;  %v4715_v30 = vmul.f32 -1.442695, %v9215_v62 }
 0x383   :  { %v6438_v48 = vpop.eup %6437  ;;  %v2907_v56 = vmul.f32 %v6436_v22, %v9000_v61  ;;  %6457 = vpow2.f32 %v9140_v42  ;;  %5222 = vmatprep.subr.bf16.mxu1 %v5221_v52  ;;  %5268 = vmatpush3.bf16.msra.mxu0 %v5267_v9  ;;  %v9225_v2 = vadd.f32 %v10337_v7, %v8916_v16  ;;  %v3672_v61 = vld [vmem:[%s9906_s5 + $0x50] sm:$0xff]  ;;  %v3673_v42 = vld [vmem:[%s9906_s5 + $0x58] sm:$0xff] }
 0x384   :  { %v6440_v53 = vpop.eup %6439  ;;  %v5227_v6 = vpack.c.bf16 %v2906_v40, %v2892_v39  ;;  %6459 = vpow2.f32 %v4660_v36  ;;  %5224 = vmatpush1.bf16.msra.mxu1 %v5223_v11  ;;  %5270 = vmatprep.subr.bf16.mxu0 %v5269_v37  ;;  %v9236_v11 = vadd.f32 %v10338_v24, %v8911_v0  ;;  %v2920_v9 = vmul.f32 %v6438_v48, %v9004_v23 }
 0x385   :  { %v6442_v51 = vpop.eup %6441  ;;  %6461 = vpow2.f32 %v4673_v57  ;;  %v5225_v36 = vpack.c.bf16 %v2907_v56, %v2893_v4  ;;  %v2921_v12 = vmul.f32 %v6440_v53, %v9008_v10  ;;  %v5275_v54 = vpack.c.bf16 %v3673_v42, %v3672_v61  ;;  %v3675_v10 = vld [vmem:[%s9906_s5 + $0x68] sm:$0xff] }
 0x386   :  { %v6444_v18 = vpop.eup %6443  ;;  %v2934_v57 = vmul.f32 %v6442_v51, %v9012_v35  ;;  %6463 = vpow2.f32 %v4674_v34  ;;  %v4716_v23 = vmul.f32 -1.442695, %v9225_v2  ;;  %v5277_v35 = vpack.c.bf16 %v3691_v50, %v3690_v15  ;;  %v3674_v34 = vld [vmem:[%s9906_s5 + $0x60] sm:$0xff]  ;;  %v3743_v61 = vld [vmem:[%s9906_s5 + $0x288] sm:$0xff] }
 0x387   :  { %v6446_v37 = vpop.eup %6445  ;;  %v2935_v41 = vmul.f32 %v6444_v18, %v9016_v3  ;;  %6465 = vpow2.f32 %v4687_v45  ;;  %5226 = vmatprep.subr.bf16.mxu1 %v5225_v36  ;;  %5272 = vmatpush3.bf16.msra.mxu0 %v5271_v43  ;;  %v4729_v55 = vmul.f32 -1.442695, %v9236_v11  ;;  %v5279_v4 = vpack.c.bf16 %v3675_v10, %v3674_v34  ;;  %v10339_v34 = vld [vmem:[#allocation72_spill] sm:$0xff] }
 0x388   :  { %v6448_v52 = vpop.eup %6447  ;;  %v5231_v49 = vpack.c.bf16 %v2934_v57, %v2920_v9  ;;  %6467 = vpow2.f32 %v4688_v25  ;;  %5228 = vmatpush1.bf16.msra.mxu1 %v5227_v6  ;;  %5274 = vmatprep.subr.bf16.mxu0 %v5273_v20  ;;  %v3692_v25 = vld [vmem:[%s9906_s5 + $0xf0] sm:$0xff]  ;;  %v2948_v39 = vmul.f32 %v6446_v37, %v9023_v38  ;;  %v3742_v20 = vld [vmem:[%s9906_s5 + $0x280] sm:$0xff]  ;;  %v3727_v57 = vld [vmem:[%s9906_s5 + $0x208] sm:$0xff]  ;;  %v9294_v10 = vadd.f32 %v10339_v34, %v8916_v16 }
 0x389   :  { %v6450_v3 = vpop.eup %6449  ;;  %6469 = vpow2.f32 %v4701_v5  ;;  %v5229_v45 = vpack.c.bf16 %v2935_v41, %v2921_v12  ;;  %v2949_v5 = vmul.f32 %v6448_v52, %v9030_v46  ;;  %v5281_v6 = vpack.c.bf16 %v3693_v28, %v3692_v25  ;;  %v3676_v38 = vld [vmem:[%s9906_s5 + $0x70] sm:$0xff]  ;;  %v3677_v46 = vld [vmem:[%s9906_s5 + $0x78] sm:$0xff]  ;;  %v3726_v9 = vld [vmem:[%s9906_s5 + $0x200] sm:$0xff] }
 0x38a   :  { %v6452_v22 = vpop.eup %6451  ;;  %v2962_v40 = vmul.f32 %v6450_v3, %v9040_v21  ;;  %6471 = vpow2.f32 %v4702_v31  ;;  %v5283_v24 = vpack.c.bf16 %v3677_v46, %v3676_v38  ;;  %v5317_v18 = vpack.c.bf16 %v3743_v61, %v3742_v20  ;;  %v3744_v12 = vld [vmem:[%s9906_s5 + $0x290] sm:$0xff]  ;;  %v3745_v41 = vld [vmem:[%s9906_s5 + $0x298] sm:$0xff]  ;;  %v3731_v20 = vld [vmem:[%s9906_s5 + $0x228] sm:$0xff] }
 0x38b   :  { %v6454_v63 = vpop.eup %6453  ;;  %v2963_v48 = vmul.f32 %v6452_v22, %v9057_v14  ;;  %6473 = vpow2.f32 %v4715_v30  ;;  %5230 = vmatprep.subr.bf16.mxu1 %v5229_v45  ;;  %5276 = vmatpush3.bf16.msra.mxu0 %v5275_v54  ;;  %v5319_v3 = vpack.c.bf16 %v3727_v57, %v3726_v9  ;;  %v10340_v25 = vld [vmem:[#allocation17_spill] sm:$0xff]  ;;  %v5321_v22 = vpack.c.bf16 %v3745_v41, %v3744_v12 }
 0x38c   :  { %v6456_v56 = vpop.eup %6455  ;;  %v5235_v43 = vpack.c.bf16 %v2962_v40, %v2948_v39  ;;  %v2304_v53 = vadd.f32 1.0, %v6454_v63  ;;  %6475 = vpow2.f32 %v4716_v23  ;;  %5232 = vmatpush1.bf16.msra.mxu1 %v5231_v49  ;;  %5278 = vmatprep.subr.bf16.mxu0 %v5277_v35  ;;  %v3648_v49 = vmul.f32 0.015625, %v8964_v8  ;;  %v3728_v8 = vld [vmem:[%s9906_s5 + $0x210] sm:$0xff]  ;;  %v3729_v39 = vld [vmem:[%s9906_s5 + $0x218] sm:$0xff] }
 0x38d   :  { %v6458_v21 = vpop.eup %6457  ;;  %v2305_v14 = vadd.f32 1.0, %v6456_v56  ;;  %6477 = vpow2.f32 %v4729_v55  ;;  %v5233_v7 = vpack.c.bf16 %v2963_v48, %v2949_v5  ;;  %v9298_v28 = vadd.f32 %v10340_v25, %v8911_v0  ;;  %v10341_v5 = vld [vmem:[#allocation73_spill] sm:$0xff]  ;;  %v3746_v0 = vld [vmem:[%s9906_s5 + $0x2a0] sm:$0xff] }
 0x38e   :  { %v6460_v42 = vpop.eup %6459  ;;  %6479 = vrcp.f32 %v2304_v53  ;;  %v2318_v51 = vadd.f32 1.0, %v6458_v21  ;;  %v9308_v48 = vadd.f32 %v10341_v5, %v8916_v16  ;;  %v4730_v38 = vmul.f32 -1.442695, %v9294_v10  ;;  %v3732_v12 = vld [vmem:[%s9906_s5 + $0x230] sm:$0xff] }
 0x38f   :  { %v6462_v36 = vpop.eup %6461  ;;  %6481 = vrcp.f32 %v2305_v14  ;;  %v2319_v31 = vadd.f32 1.0, %v6460_v42  ;;  %5234 = vmatprep.subr.bf16.mxu1 %v5233_v7  ;;  %5280 = vmatpush3.bf16.msra.mxu0 %v5279_v4  ;;  %v3747_v4 = vld [vmem:[%s9906_s5 + $0x2a8] sm:$0xff]  ;;  %v5323_v16 = vpack.c.bf16 %v3729_v39, %v3728_v8  ;;  %v4743_v21 = vmul.f32 -1.442695, %v9298_v28  ;;  %v3730_v7 = vld [vmem:[%s9906_s5 + $0x220] sm:$0xff] }
 0x390   :  { %v6464_v15 = vpop.eup %6463  ;;  %6483 = vrcp.f32 %v2318_v51  ;;  %v2332_v50 = vadd.f32 1.0, %v6462_v36  ;;  %5236 = vmatpush1.bf16.msra.mxu1 %v5235_v43  ;;  %5282 = vmatprep.subr.bf16.mxu0 %v5281_v6  ;;  %v5325_v14 = vpack.c.bf16 %v3747_v4, %v3746_v0  ;;  %v4744_v42 = vmul.f32 -1.442695, %v9308_v48  ;;  %v3748_v51 = vld [vmem:[%s9906_s5 + $0x2b0] sm:$0xff]  ;;  %v3749_v36 = vld [vmem:[%s9906_s5 + $0x2b8] sm:$0xff] }
 0x391   :  { %v6466_v30 = vpop.eup %6465  ;;  %6485 = vrcp.f32 %v2319_v31  ;;  %v2333_v37 = vadd.f32 1.0, %v6464_v15 }
 0x392   :  { %v6468_v54 = vpop.eup %6467  ;;  %6487 = vrcp.f32 %v2332_v50  ;;  %v2346_v52 = vadd.f32 1.0, %v6466_v30 }
 0x393   :  { %v6470_v23 = vpop.eup %6469  ;;  %6489 = vrcp.f32 %v2333_v37  ;;  %v2347_v35 = vadd.f32 1.0, %v6468_v54  ;;  %5284 = vmatpush3.bf16.msra.mxu0 %v5283_v24  ;;  %v5329_v37 = vpack.c.bf16 %v3749_v36, %v3748_v51  ;;  %v3738_v36 = vld [vmem:[%s9906_s5 + $0x260] sm:$0xff] }
 0x394   :  { %v6472_v45 = vpop.eup %6471  ;;  %6491 = vrcp.f32 %v2346_v52  ;;  %v2360_v55 = vadd.f32 1.0, %v6470_v23  ;;  %5318 = vmatprep.subr.bf16.mxu0 %v5317_v18  ;;  %v5327_v18 = vpack.c.bf16 %v3731_v20, %v3730_v7 }
 0x395   :  { %v6474_v40 = vpop.eup %6473  ;;  %6493 = vrcp.f32 %v2347_v35  ;;  %v2361_v63 = vadd.f32 1.0, %v6472_v45 }
 0x396   :  { %v6476_v56 = vpop.eup %6475  ;;  %6495 = vrcp.f32 %v2360_v55  ;;  %v2374_v43 = vadd.f32 1.0, %v6474_v40  ;;  %3958 = vmatmul.mubr.f32.vlgmr.msra.gmra.mrb[112].mxu0 %v3648_v49 }
 0x397   :  { %v9316_v53 = vpop.eup %6477  ;;  %6497 = vrcp.f32 %v2361_v63  ;;  %v2375_v6 = vadd.f32 1.0, %v6476_v56  ;;  %5320 = vmatpush3.bf16.msra.mxu0 %v5319_v3 }
 0x398   :  { %v6480_v46 = vpop.eup %6479  ;;  %6499 = vrcp.f32 %v2374_v43  ;;  %5322 = vmatprep.subr.bf16.mxu0 %v5321_v22  ;;  %v3734_v22 = vld [vmem:[%s9906_s5 + $0x240] sm:$0xff]  ;;  %v2388_v4 = vadd.f32 1.0, %v9316_v53 }
 0x399   :  { %v6482_v61 = vpop.eup %6481  ;;  %6501 = vrcp.f32 %v2375_v6  ;;  %v2976_v15 = vmul.f32 %v6480_v46, %v9095_v60  ;;  %v3733_v60 = vld [vmem:[%s9906_s5 + $0x238] sm:$0xff] }
 0x39a   :  { %v6484_v31 = vpop.eup %6483  ;;  %6503 = vpow2.f32 %v4730_v38  ;;  %v2977_v57 = vmul.f32 %v6482_v61, %v9102_v26  ;;  %v3750_v26 = vld [vmem:[%s9906_s5 + $0x2c0] sm:$0xff]  ;;  %v5331_v34 = vpack.c.bf16 %v3733_v60, %v3732_v12 }
 0x39b   :  { %v6486_v24 = vpop.eup %6485  ;;  %v2990_v50 = vmul.f32 %v6484_v31, %v9115_v19  ;;  %5324 = vmatpush3.bf16.msra.mxu0 %v5323_v16  ;;  %6505 = vpow2.f32 %v4743_v21  ;;  %v3736_v16 = vld [vmem:[%s9906_s5 + $0x250] sm:$0xff]  ;;  %v3739_v31 = vld [vmem:[%s9906_s5 + $0x268] sm:$0xff] }
 0x39c   :  { %v6488_v9 = vpop.eup %6487  ;;  %v2991_v30 = vmul.f32 %v6486_v24, %v9144_v29  ;;  %5326 = vmatprep.subr.bf16.mxu0 %v5325_v14  ;;  %6507 = vpow2.f32 %v4744_v42  ;;  %v3751_v29 = vld [vmem:[%s9906_s5 + $0x2c8] sm:$0xff]  ;;  %v3756_v24 = vld [vmem:[%s9906_s5 + $0x2f0] sm:$0xff] }
 0x39d   :  { %v6490_v19 = vpop.eup %6489  ;;  %v5239_v41 = vpack.c.bf16 %v2990_v50, %v2976_v15  ;;  %v3004_v23 = vmul.f32 %v6488_v9, %v9154_v44  ;;  %v5333_v25 = vpack.c.bf16 %v3751_v29, %v3750_v26  ;;  %v3735_v44 = vld [vmem:[%s9906_s5 + $0x248] sm:$0xff]  ;;  %6509 = vrcp.f32 %v2388_v4  ;;  %v3757_v15 = vld [vmem:[%s9906_s5 + $0x2f8] sm:$0xff]  ;;  %v3740_v9 = vld [vmem:[%s9906_s5 + $0x270] sm:$0xff] }
 0x39e   :  { %v6492_v54 = vpop.eup %6491  ;;  %v5237_v52 = vpack.c.bf16 %v2991_v30, %v2977_v57  ;;  %v3005_v45 = vmul.f32 %v6490_v19, %v9158_v17  ;;  %v3752_v17 = vld [vmem:[%s9906_s5 + $0x2d0] sm:$0xff]  ;;  %v5335_v56 = vpack.c.bf16 %v3735_v44, %v3734_v22  ;;  %v5343_v50 = vpack.c.bf16 %v3739_v31, %v3738_v36  ;;  %v3741_v57 = vld [vmem:[%s9906_s5 + $0x278] sm:$0xff]  ;;  %v3806_v30 = vld [vmem:[%s9906_s5 + $0x480] sm:$0xff] }
 0x39f   :  { %v6494_v49 = vpop.eup %6493  ;;  %v3018_v35 = vmul.f32 %v6492_v54, %v9162_v32  ;;  %5328 = vmatpush3.bf16.msra.mxu0 %v5327_v18  ;;  %v5345_v18 = vpack.c.bf16 %v3757_v15, %v3756_v24  ;;  %v5347_v12 = vpack.c.bf16 %v3741_v57, %v3740_v9  ;;  %v3651_v22 = vmul.f32 0.015625, %v9035_v27  ;;  %v3700_v4 = vld [vmem:[%s9906_s5 + $0x130] sm:$0xff]  ;;  %v3793_v9 = vld [vmem:[%s9906_s5 + $0x418] sm:$0xff] }
 0x3a0   :  { %v6496_v3 = vpop.eup %6495  ;;  %v3019_v55 = vmul.f32 %v6494_v49, %v9166_v13  ;;  %5238 = vmatprep.subr.bf16.mxu1 %v5237_v52  ;;  %5330 = vmatprep.subr.bf16.mxu0 %v5329_v37  ;;  %v3753_v13 = vld [vmem:[%s9906_s5 + $0x2d8] sm:$0xff]  ;;  %v3807_v37 = vld [vmem:[%s9906_s5 + $0x488] sm:$0xff]  ;;  %v3710_v49 = vld [vmem:[%s9906_s5 + $0x180] sm:$0xff] }
 0x3a1   :  { %v6498_v8 = vpop.eup %6497  ;;  %v5243_v32 = vpack.c.bf16 %v3018_v35, %v3004_v23  ;;  %5240 = vmatpush1.bf16.msra.mxu1 %v5239_v41  ;;  %v3032_v5 = vmul.f32 %v6496_v3, %v9177_v33  ;;  %v5337_v38 = vpack.c.bf16 %v3753_v13, %v3752_v17  ;;  %v3737_v33 = vld [vmem:[%s9906_s5 + $0x258] sm:$0xff]  ;;  %v5381_v60 = vpack.c.bf16 %v3807_v37, %v3806_v30  ;;  %v3711_v23 = vld [vmem:[%s9906_s5 + $0x188] sm:$0xff]  ;;  %v3714_v17 = vld [vmem:[%s9906_s5 + $0x1a0] sm:$0xff] }
 0x3a2   :  { %v6500_v39 = vpop.eup %6499  ;;  %v5241_v40 = vpack.c.bf16 %v3019_v55, %v3005_v45  ;;  %v3033_v43 = vmul.f32 %v6498_v8, %v9202_v1  ;;  %v3754_v1 = vld [vmem:[%s9906_s5 + $0x2e0] sm:$0xff]  ;;  %v5339_v61 = vpack.c.bf16 %v3737_v33, %v3736_v16  ;;  %v5285_v55 = vpack.c.bf16 %v3711_v23, %v3710_v49  ;;  %v3696_v8 = vld [vmem:[%s9906_s5 + $0x110] sm:$0xff]  ;;  %v3715_v13 = vld [vmem:[%s9906_s5 + $0x1a8] sm:$0xff] }
 0x3a3   :  { %v6502_v63 = vpop.eup %6501  ;;  %v3046_v0 = vmul.f32 %v6500_v39, %v9215_v62  ;;  %5332 = vmatpush3.bf16.msra.mxu0 %v5331_v34  ;;  %v5293_v39 = vpack.c.bf16 %v3715_v13, %v3714_v17  ;;  %v3702_v16 = vld [vmem:[%s9906_s5 + $0x140] sm:$0xff]  ;;  %v3704_v15 = vld [vmem:[%s9906_s5 + $0x150] sm:$0xff]  ;;  %v3705_v30 = vld [vmem:[%s9906_s5 + $0x158] sm:$0xff] }
 0x3a4   :  { %v3047_v6 = vmul.f32 %v6502_v63, %v9225_v2  ;;  %5242 = vmatprep.subr.bf16.mxu1 %v5241_v40  ;;  %5334 = vmatprep.subr.bf16.mxu0 %v5333_v25  ;;  %v6504_v62 = vpop.eup %6503  ;;  %v3755_v2 = vld [vmem:[%s9906_s5 + $0x2e8] sm:$0xff]  ;;  %v3712_v25 = vld [vmem:[%s9906_s5 + $0x190] sm:$0xff]  ;;  %v3698_v40 = vld [vmem:[%s9906_s5 + $0x120] sm:$0xff] }
 0x3a5   :  { %v5247_v46 = vpack.c.bf16 %v3046_v0, %v3032_v5  ;;  %5244 = vmatpush1.bf16.msra.mxu1 %v5243_v32  ;;  %v6506_v53 = vpop.eup %6505  ;;  %v2389_v21 = vadd.f32 1.0, %v6504_v62  ;;  %v5341_v51 = vpack.c.bf16 %v3755_v2, %v3754_v1  ;;  %v3697_v32 = vld [vmem:[%s9906_s5 + $0x118] sm:$0xff]  ;;  %v3699_v63 = vld [vmem:[%s9906_s5 + $0x128] sm:$0xff]  ;;  %v3716_v5 = vld [vmem:[%s9906_s5 + $0x1b0] sm:$0xff] }
 0x3a6   :  { %v5245_v14 = vpack.c.bf16 %v3047_v6, %v3033_v43  ;;  %v6508_v7 = vpop.eup %6507  ;;  %v2402_v20 = vadd.f32 1.0, %v6506_v53  ;;  %v5291_v27 = vpack.c.bf16 %v3697_v32, %v3696_v8  ;;  %v5295_v47 = vpack.c.bf16 %v3699_v63, %v3698_v40  ;;  %v3718_v43 = vld [vmem:[%s9906_s5 + $0x1c0] sm:$0xff]  ;;  %v3719_v6 = vld [vmem:[%s9906_s5 + $0x1c8] sm:$0xff]  ;;  %v3808_v53 = vld [vmem:[%s9906_s5 + $0x490] sm:$0xff] }
 0x3a7   :  { %5336 = vmatpush3.bf16.msra.mxu0 %v5335_v56  ;;  %6511 = vrcp.f32 %v2389_v21  ;;  %v2403_v42 = vadd.f32 1.0, %v6508_v7  ;;  %v6510_v19 = vpop.eup %6509  ;;  %v3701_v56 = vld [vmem:[%s9906_s5 + $0x138] sm:$0xff]  ;;  %v3790_v33 = vld [vmem:[%s9906_s5 + $0x400] sm:$0xff]  ;;  %v3791_v62 = vld [vmem:[%s9906_s5 + $0x408] sm:$0xff] }
 0x3a8   :  { %5246 = vmatprep.subr.bf16.mxu1 %v5245_v14  ;;  %5338 = vmatprep.subr.bf16.mxu0 %v5337_v38  ;;  %6513 = vrcp.f32 %v2402_v20  ;;  %v3060_v54 = vmul.f32 %v6510_v19, %v9236_v11  ;;  %v3694_v11 = vld [vmem:[%s9906_s5 + $0x100] sm:$0xff]  ;;  %v5299_v38 = vpack.c.bf16 %v3701_v56, %v3700_v4  ;;  %v3703_v1 = vld [vmem:[%s9906_s5 + $0x148] sm:$0xff]  ;;  %v3809_v21 = vld [vmem:[%s9906_s5 + $0x498] sm:$0xff]  ;;  %v5383_v31 = vpack.c.bf16 %v3791_v62, %v3790_v33 }
 0x3a9   :  { %5248 = vmatpush1.bf16.msra.mxu1 %v5247_v46  ;;  %6515 = vrcp.f32 %v2403_v42  ;;  %v5301_v46 = vpack.c.bf16 %v3719_v6, %v3718_v43  ;;  %v3720_v14 = vld [vmem:[%s9906_s5 + $0x1d0] sm:$0xff]  ;;  %v3721_v7 = vld [vmem:[%s9906_s5 + $0x1d8] sm:$0xff]  ;;  %v5303_v24 = vpack.c.bf16 %v3703_v1, %v3702_v16  ;;  %v3810_v37 = vld [vmem:[%s9906_s5 + $0x4a0] sm:$0xff]  ;;  %v3650_v16 = vmul.f32 0.015625, %v9032_v59 }
 0x3aa   :  { %v5305_v57 = vpack.c.bf16 %v3721_v7, %v3720_v14  ;;  %v3723_v19 = vld [vmem:[%s9906_s5 + $0x1e8] sm:$0xff]  ;;  %v3709_v8 = vld [vmem:[%s9906_s5 + $0x178] sm:$0xff]  ;;  %v3814_v32 = vld [vmem:[%s9906_s5 + $0x4c0] sm:$0xff] }
 0x3ab   :  { %5340 = vmatpush3.bf16.msra.mxu0 %v5339_v61  ;;  %v3795_v49 = vld [vmem:[%s9906_s5 + $0x428] sm:$0xff]  ;;  %v3774_v13 = vld [vmem:[%s9906_s5 + $0x380] sm:$0xff]  ;;  %v3776_v56 = vld [vmem:[%s9906_s5 + $0x390] sm:$0xff] }
 0x3ac   :  { %5342 = vmatprep.subr.bf16.mxu0 %v5341_v51  ;;  %v3815_v17 = vld [vmem:[%s9906_s5 + $0x4c8] sm:$0xff]  ;;  %v3777_v43 = vld [vmem:[%s9906_s5 + $0x398] sm:$0xff]  ;;  %v3816_v6 = vld [vmem:[%s9906_s5 + $0x4d0] sm:$0xff] }
 0x3ad   :  { %v5397_v63 = vpack.c.bf16 %v3815_v17, %v3814_v32  ;;  %v3759_v4 = vld [vmem:[%s9906_s5 + $0x308] sm:$0xff]  ;;  %v5353_v59 = vpack.c.bf16 %v3777_v43, %v3776_v56  ;;  %v3818_v7 = vld [vmem:[%s9906_s5 + $0x4e0] sm:$0xff]  ;;  %v3768_v17 = vld [vmem:[%s9906_s5 + $0x350] sm:$0xff] }
 0x3ae   :  { %v3772_v43 = vld [vmem:[%s9906_s5 + $0x370] sm:$0xff] }
 0x3af   :  { %5344 = vmatpush3.bf16.msra.mxu0 %v5343_v50  ;;  %v5385_v50 = vpack.c.bf16 %v3809_v21, %v3808_v53  ;;  %v3801_v53 = vld [vmem:[%s9906_s5 + $0x458] sm:$0xff] }
 0x3b0   :  { %5346 = vmatprep.subr.bf16.mxu0 %v5345_v18  ;;  %v3792_v18 = vld [vmem:[%s9906_s5 + $0x410] sm:$0xff]  ;;  %v3761_v21 = vld [vmem:[%s9906_s5 + $0x318] sm:$0xff] }
 0x3b1   :  { %v6512_v41 = vpop.eup %6511 }
 0x3b2   :  { %v6514_v26 = vpop.eup %6513  ;;  %v3061_v35 = vmul.f32 %v6512_v41, %v9294_v10  ;;  %v3713_v10 = vld [vmem:[%s9906_s5 + $0x198] sm:$0xff]  ;;  %v5387_v41 = vpack.c.bf16 %v3793_v9, %v3792_v18  ;;  %v3803_v18 = vld [vmem:[%s9906_s5 + $0x468] sm:$0xff] }
 0x3b3   :  { %5348 = vmatpush3.bf16.msra.mxu0 %v5347_v12  ;;  %v6516_v29 = vpop.eup %6515  ;;  %v3074_v52 = vmul.f32 %v6514_v26, %v9298_v28  ;;  %v3695_v28 = vld [vmem:[%s9906_s5 + $0x108] sm:$0xff]  ;;  %v5289_v44 = vpack.c.bf16 %v3713_v10, %v3712_v25  ;;  %v5307_v26 = vpack.c.bf16 %v3705_v30, %v3704_v15  ;;  %v3708_v25 = vld [vmem:[%s9906_s5 + $0x170] sm:$0xff] }
 0x3b4   :  { %5382 = vmatprep.subr.bf16.mxu0 %v5381_v60  ;;  %v3075_v34 = vmul.f32 %v6516_v29, %v9308_v48  ;;  %v5287_v48 = vpack.c.bf16 %v3695_v28, %v3694_v11  ;;  %v3811_v12 = vld [vmem:[%s9906_s5 + $0x4a8] sm:$0xff]  ;;  %v3722_v60 = vld [vmem:[%s9906_s5 + $0x1e0] sm:$0xff]  ;;  %v5315_v40 = vpack.c.bf16 %v3709_v8, %v3708_v25  ;;  %v3820_v30 = vld [vmem:[%s9906_s5 + $0x4f0] sm:$0xff] }
 0x3b5   :  { %v5251_v3 = vpack.c.bf16 %v3074_v52, %v3060_v54  ;;  %v3706_v29 = vld [vmem:[%s9906_s5 + $0x160] sm:$0xff]  ;;  %v5389_v54 = vpack.c.bf16 %v3811_v12, %v3810_v37  ;;  %v5309_v23 = vpack.c.bf16 %v3723_v19, %v3722_v60  ;;  %v3821_v37 = vld [vmem:[%s9906_s5 + $0x4f8] sm:$0xff]  ;;  %v3780_v12 = vld [vmem:[%s9906_s5 + $0x3b0] sm:$0xff] }
 0x3b6   :  { %v5249_v45 = vpack.c.bf16 %v3075_v34, %v3061_v35  ;;  %v3794_v52 = vld [vmem:[%s9906_s5 + $0x420] sm:$0xff]  ;;  %v3707_v35 = vld [vmem:[%s9906_s5 + $0x168] sm:$0xff]  ;;  %v3812_v34 = vld [vmem:[%s9906_s5 + $0x4b0] sm:$0xff] }
 0x3b7   :  { %v5391_v11 = vpack.c.bf16 %v3795_v49, %v3794_v52  ;;  %v5311_v28 = vpack.c.bf16 %v3707_v35, %v3706_v29  ;;  %v3781_v60 = vld [vmem:[%s9906_s5 + $0x3b8] sm:$0xff]  ;;  %v5409_v29 = vpack.c.bf16 %v3821_v37, %v3820_v30  ;;  %v3870_v35 = vld [vmem:[%s9906_s5 + $0x680] sm:$0xff] }
 0x3b8   :  { %5250 = vmatprep.subr.bf16.mxu1 %v5249_v45  ;;  %v3724_v45 = vld [vmem:[%s9906_s5 + $0x1f0] sm:$0xff]  ;;  %v3805_v52 = vld [vmem:[%s9906_s5 + $0x478] sm:$0xff]  ;;  %v5361_v49 = vpack.c.bf16 %v3781_v60, %v3780_v12  ;;  %v3846_v37 = vld [vmem:[%s9906_s5 + $0x5c0] sm:$0xff] }
 0x3b9   :  { %5252 = vmatpush1.bf16.msra.mxu1 %v5251_v3  ;;  %v3813_v3 = vld [vmem:[%s9906_s5 + $0x4b8] sm:$0xff]  ;;  %v3847_v12 = vld [vmem:[%s9906_s5 + $0x5c8] sm:$0xff] }
 0x3ba   :  { %5286 = vmatprep.subr.bf16.mxu1 %v5285_v55  ;;  %v3725_v55 = vld [vmem:[%s9906_s5 + $0x1f8] sm:$0xff]  ;;  %v5393_v10 = vpack.c.bf16 %v3813_v3, %v3812_v34  ;;  %v3871_v34 = vld [vmem:[%s9906_s5 + $0x688] sm:$0xff]  ;;  %v3782_v3 = vld [vmem:[%s9906_s5 + $0x3c0] sm:$0xff] }
 0x3bb   :  { %v3829_v30 = vld [vmem:[%s9906_s5 + $0x538] sm:$0xff] }
 0x3bc   :  { %4752 = vmatmul.mubr.msk.f32.vlgmr.msra.gmra.mrb[140].mxu1 %vm7890_vm4, %v10325_v58  ;;  %v3717_v58 = vld [vmem:[%s9906_s5 + $0x1b8] sm:$0xff] }
 0x3bd   :  { %5288 = vmatpush3.bf16.msra.mxu1 %v5287_v48  ;;  %4027 = vmatprep.mubr.f32.mxu1 %v3651_v22  ;;  %v5297_v0 = vpack.c.bf16 %v3717_v58, %v3716_v5  ;;  %v3796_v48 = vld [vmem:[%s9906_s5 + $0x430] sm:$0xff]  ;;  %v3797_v22 = vld [vmem:[%s9906_s5 + $0x438] sm:$0xff]  ;;  %v3798_v5 = vld [vmem:[%s9906_s5 + $0x440] sm:$0xff] }
 0x3be   :  { %5290 = vmatprep.subr.bf16.mxu1 %v5289_v44  ;;  %v5313_v44 = vpack.c.bf16 %v3725_v55, %v3724_v45  ;;  %v3799_v58 = vld [vmem:[%s9906_s5 + $0x448] sm:$0xff] }
 0x3bf   :  { %v5399_v33 = vpack.c.bf16 %v3799_v58, %v3798_v5  ;;  %v3783_v45 = vld [vmem:[%s9906_s5 + $0x3c8] sm:$0xff]  ;;  %v3770_v5 = vld [vmem:[%s9906_s5 + $0x360] sm:$0xff] }
 0x3c0   :  { %v5365_v25 = vpack.c.bf16 %v3783_v45, %v3782_v3  ;;  %v3771_v58 = vld [vmem:[%s9906_s5 + $0x368] sm:$0xff] }
 0x3c1   :  { %5292 = vmatpush3.bf16.msra.mxu1 %v5291_v27  ;;  %v3775_v27 = vld [vmem:[%s9906_s5 + $0x388] sm:$0xff] }
 0x3c2   :  { %5294 = vmatprep.subr.bf16.mxu1 %v5293_v39  ;;  %v5395_v39 = vpack.c.bf16 %v3797_v22, %v3796_v48  ;;  %v3767_v48 = vld [vmem:[%s9906_s5 + $0x348] sm:$0xff]  ;;  %v3784_v22 = vld [vmem:[%s9906_s5 + $0x3d0] sm:$0xff] }
 0x3c3   :  { %v3851_v3 = vld [vmem:[%s9906_s5 + $0x5e8] sm:$0xff] }
 0x3c5   :  { %5296 = vmatpush3.bf16.msra.mxu1 %v5295_v47  ;;  %v5349_v47 = vpack.c.bf16 %v3775_v27, %v3774_v13  ;;  %v3769_v13 = vld [vmem:[%s9906_s5 + $0x358] sm:$0xff]  ;;  %v3786_v27 = vld [vmem:[%s9906_s5 + $0x3e0] sm:$0xff] }
 0x3c6   :  { %5298 = vmatprep.subr.bf16.mxu1 %v5297_v0  ;;  %v3758_v0 = vld [vmem:[%s9906_s5 + $0x300] sm:$0xff] }
 0x3c7   :  { %v3314_v2 = vpop.f32.mrb[136].mxu1  ;;  %v5351_v62 = vpack.c.bf16 %v3759_v4, %v3758_v0  ;;  %v3789_v0 = vld [vmem:[%s9906_s5 + $0x3f8] sm:$0xff]  ;;  %v5375_v4 = vpack.c.bf16 %v3771_v58, %v3770_v5 }
 0x3c8   :  { %v3652_v20 = vmul.f32 0.015625, %v3314_v2  ;;  %v3316_v61 = vpop.f32.mrb[137].mxu1  ;;  %v9492_v42 = vpop.f32.mrb[108].mxu0  ;;  %v3800_v2 = vld [vmem:[%s9906_s5 + $0x450] sm:$0xff] }
 0x3c9   :  { %v3653_v51 = vmul.f32 0.015625, %v3316_v61  ;;  %v9494_v36 = vpop.f32.mrb[109].mxu0  ;;  %5300 = vmatpush3.bf16.msra.mxu1 %v5299_v38  ;;  %v3817_v38 = vld [vmem:[%s9906_s5 + $0x4d8] sm:$0xff]  ;;  %v3778_v61 = vld [vmem:[%s9906_s5 + $0x3a0] sm:$0xff] }
 0x3ca   :  { %5302 = vmatprep.subr.bf16.mxu1 %v5301_v46  ;;  %v3760_v46 = vld [vmem:[%s9906_s5 + $0x310] sm:$0xff]  ;;  %v3655_v1 = vmul.f32 0.015625, %v9494_v36  ;;  %v5401_v14 = vpack.c.bf16 %v3817_v38, %v3816_v6  ;;  %v5403_v36 = vpack.c.bf16 %v3801_v53, %v3800_v2  ;;  %v3773_v6 = vld [vmem:[%s9906_s5 + $0x378] sm:$0xff]  ;;  %v3838_v38 = vld [vmem:[%s9906_s5 + $0x580] sm:$0xff] }
 0x3cb   :  { %4097 = vmatprep.mubr.f32.mxu0 %v3653_v51  ;;  %v3779_v51 = vld [vmem:[%s9906_s5 + $0x3a8] sm:$0xff]  ;;  %v3840_v2 = vld [vmem:[%s9906_s5 + $0x590] sm:$0xff]  ;;  %v3841_v53 = vld [vmem:[%s9906_s5 + $0x598] sm:$0xff] }
 0x3cc   :  { %4098 = vmatmul.mubr.f32.vlgmr.msra.gmra.mrb[114].mxu0 %v3652_v20  ;;  %v3819_v20 = vld [vmem:[%s9906_s5 + $0x4e8] sm:$0xff]  ;;  %v5357_v9 = vpack.c.bf16 %v3779_v51, %v3778_v61  ;;  %v3842_v61 = vld [vmem:[%s9906_s5 + $0x5a0] sm:$0xff] }
 0x3cd   :  { %5384 = vmatpush3.bf16.msra.mxu0 %v5383_v31  ;;  %5304 = vmatpush3.bf16.msra.mxu1 %v5303_v24  ;;  %v5355_v31 = vpack.c.bf16 %v3761_v21, %v3760_v46  ;;  %v3762_v24 = vld [vmem:[%s9906_s5 + $0x320] sm:$0xff]  ;;  %v5405_v15 = vpack.c.bf16 %v3819_v20, %v3818_v7  ;;  %v3824_v7 = vld [vmem:[%s9906_s5 + $0x510] sm:$0xff]  ;;  %v3825_v20 = vld [vmem:[%s9906_s5 + $0x518] sm:$0xff] }
 0x3ce   :  { %5386 = vmatprep.subr.bf16.mxu0 %v5385_v50  ;;  %5306 = vmatprep.subr.bf16.mxu1 %v5305_v57  ;;  %v3802_v50 = vld [vmem:[%s9906_s5 + $0x460] sm:$0xff]  ;;  %v3763_v57 = vld [vmem:[%s9906_s5 + $0x328] sm:$0xff]  ;;  %v5419_v51 = vpack.c.bf16 %v3825_v20, %v3824_v7  ;;  %v3860_v20 = vld [vmem:[%s9906_s5 + $0x630] sm:$0xff] }
 0x3cf   :  { %v5407_v19 = vpack.c.bf16 %v3803_v18, %v3802_v50  ;;  %v3822_v46 = vld [vmem:[%s9906_s5 + $0x500] sm:$0xff]  ;;  %v3845_v50 = vld [vmem:[%s9906_s5 + $0x5b8] sm:$0xff] }
 0x3d1   :  { %5388 = vmatpush3.bf16.msra.mxu0 %v5387_v41  ;;  %5308 = vmatpush3.bf16.msra.mxu1 %v5307_v26  ;;  %v5359_v41 = vpack.c.bf16 %v3763_v57, %v3762_v24  ;;  %v3764_v26 = vld [vmem:[%s9906_s5 + $0x330] sm:$0xff]  ;;  %v3827_v24 = vld [vmem:[%s9906_s5 + $0x528] sm:$0xff] }
 0x3d2   :  { %5390 = vmatprep.subr.bf16.mxu0 %v5389_v54  ;;  %5310 = vmatprep.subr.bf16.mxu1 %v5309_v23  ;;  %v3804_v54 = vld [vmem:[%s9906_s5 + $0x470] sm:$0xff]  ;;  %v3765_v23 = vld [vmem:[%s9906_s5 + $0x338] sm:$0xff] }
 0x3d3   :  { %v5411_v55 = vpack.c.bf16 %v3805_v52, %v3804_v54  ;;  %v3828_v57 = vld [vmem:[%s9906_s5 + $0x530] sm:$0xff]  ;;  %v3849_v54 = vld [vmem:[%s9906_s5 + $0x5d8] sm:$0xff] }
 0x3d4   :  { %v5427_v60 = vpack.c.bf16 %v3829_v30, %v3828_v57  ;;  %v3864_v30 = vld [vmem:[%s9906_s5 + $0x650] sm:$0xff] }
 0x3d5   :  { %5392 = vmatpush3.bf16.msra.mxu0 %v5391_v11  ;;  %5312 = vmatpush3.bf16.msra.mxu1 %v5311_v28  ;;  %v5363_v11 = vpack.c.bf16 %v3765_v23, %v3764_v26  ;;  %v5445_v28 = vpack.c.bf16 %v3871_v34, %v3870_v35  ;;  %v3831_v26 = vld [vmem:[%s9906_s5 + $0x548] sm:$0xff]  ;;  %v3832_v23 = vld [vmem:[%s9906_s5 + $0x550] sm:$0xff]  ;;  %v3833_v35 = vld [vmem:[%s9906_s5 + $0x558] sm:$0xff] }
 0x3d6   :  { %5394 = vmatprep.subr.bf16.mxu0 %v5393_v10  ;;  %5314 = vmatprep.subr.bf16.mxu1 %v5313_v44  ;;  %v3766_v10 = vld [vmem:[%s9906_s5 + $0x340] sm:$0xff]  ;;  %v3785_v44 = vld [vmem:[%s9906_s5 + $0x3d8] sm:$0xff]  ;;  %v5435_v45 = vpack.c.bf16 %v3833_v35, %v3832_v23  ;;  %v3868_v35 = vld [vmem:[%s9906_s5 + $0x670] sm:$0xff] }
 0x3d7   :  { %v5367_v8 = vpack.c.bf16 %v3767_v48, %v3766_v10  ;;  %v5369_v32 = vpack.c.bf16 %v3785_v44, %v3784_v22  ;;  %v3850_v34 = vld [vmem:[%s9906_s5 + $0x5e0] sm:$0xff]  ;;  %v3853_v10 = vld [vmem:[%s9906_s5 + $0x5f8] sm:$0xff]  ;;  %v3836_v44 = vld [vmem:[%s9906_s5 + $0x570] sm:$0xff] }
 0x3d9   :  { %5396 = vmatpush3.bf16.msra.mxu0 %v5395_v39  ;;  %5316 = vmatpush3.bf16.msra.mxu1 %v5315_v40  ;;  %v3787_v39 = vld [vmem:[%s9906_s5 + $0x3e8] sm:$0xff]  ;;  %v5371_v40 = vpack.c.bf16 %v3769_v13, %v3768_v17  ;;  %v3854_v17 = vld [vmem:[%s9906_s5 + $0x600] sm:$0xff] }
 0x3da   :  { %5398 = vmatprep.subr.bf16.mxu0 %v5397_v63  ;;  %5350 = vmatprep.subr.bf16.mxu1 %v5349_v47  ;;  %v5373_v63 = vpack.c.bf16 %v3787_v39, %v3786_v27  ;;  %v3788_v47 = vld [vmem:[%s9906_s5 + $0x3f0] sm:$0xff]  ;;  %v3855_v13 = vld [vmem:[%s9906_s5 + $0x608] sm:$0xff] }
 0x3db   :  { %v5377_v56 = vpack.c.bf16 %v3789_v0, %v3788_v47  ;;  %v3872_v39 = vld [vmem:[%s9906_s5 + $0x690] sm:$0xff] }
 0x3dc   :  { %4028 = vmatmul.mubr.f32.vlgmr.msra.gmra.mrb[142].mxu1 %v3650_v16  ;;  %v3839_v16 = vld [vmem:[%s9906_s5 + $0x588] sm:$0xff] }
 0x3dd   :  { %5400 = vmatpush3.bf16.msra.mxu0 %v5399_v33  ;;  %5352 = vmatpush3.bf16.msra.mxu1 %v5351_v62  ;;  %v5379_v33 = vpack.c.bf16 %v3773_v6, %v3772_v43  ;;  %v5413_v62 = vpack.c.bf16 %v3839_v16, %v3838_v38  ;;  %v3856_v38 = vld [vmem:[%s9906_s5 + $0x610] sm:$0xff]  ;;  %v3857_v16 = vld [vmem:[%s9906_s5 + $0x618] sm:$0xff] }
 0x3de   :  { %4167 = vmatprep.mubr.f32.mxu1 %v3655_v1  ;;  %5354 = vmatprep.subr.bf16.mxu1 %v5353_v59  ;;  %v3823_v1 = vld [vmem:[%s9906_s5 + $0x508] sm:$0xff]  ;;  %v3654_v59 = vmul.f32 0.015625, %v9492_v42 }
 0x3df   :  { %5402 = vmatprep.subr.bf16.mxu0 %v5401_v14  ;;  %v5415_v21 = vpack.c.bf16 %v3823_v1, %v3822_v46  ;;  %v5417_v14 = vpack.c.bf16 %v3841_v53, %v3840_v2  ;;  %v3843_v42 = vld [vmem:[%s9906_s5 + $0x5a8] sm:$0xff]  ;;  %v5451_v46 = vpack.c.bf16 %v3857_v16, %v3856_v38  ;;  %v3858_v2 = vld [vmem:[%s9906_s5 + $0x620] sm:$0xff] }
 0x3e0   :  { %v3859_v53 = vld [vmem:[%s9906_s5 + $0x628] sm:$0xff] }
 0x3e1   :  { %5404 = vmatpush3.bf16.msra.mxu0 %v5403_v36  ;;  %5356 = vmatpush3.bf16.msra.mxu1 %v5355_v31  ;;  %v5421_v36 = vpack.c.bf16 %v3843_v42, %v3842_v61  ;;  %v3826_v31 = vld [vmem:[%s9906_s5 + $0x520] sm:$0xff]  ;;  %v3861_v61 = vld [vmem:[%s9906_s5 + $0x638] sm:$0xff] }
 0x3e2   :  { %5406 = vmatprep.subr.bf16.mxu0 %v5405_v15  ;;  %5358 = vmatprep.subr.bf16.mxu1 %v5357_v9  ;;  %v3844_v15 = vld [vmem:[%s9906_s5 + $0x5b0] sm:$0xff]  ;;  %v5423_v18 = vpack.c.bf16 %v3827_v24, %v3826_v31  ;;  %v3878_v42 = vld [vmem:[%s9906_s5 + $0x6c0] sm:$0xff] }
 0x3e3   :  { %v5425_v9 = vpack.c.bf16 %v3845_v50, %v3844_v15  ;;  %v3862_v24 = vld [vmem:[%s9906_s5 + $0x640] sm:$0xff]  ;;  %v3863_v15 = vld [vmem:[%s9906_s5 + $0x648] sm:$0xff]  ;;  %v3880_v50 = vld [vmem:[%s9906_s5 + $0x6d0] sm:$0xff] }
 0x3e5   :  { %5408 = vmatpush3.bf16.msra.mxu0 %v5407_v19  ;;  %5360 = vmatpush3.bf16.msra.mxu1 %v5359_v41  ;;  %v5429_v19 = vpack.c.bf16 %v3847_v12, %v3846_v37  ;;  %v3830_v41 = vld [vmem:[%s9906_s5 + $0x540] sm:$0xff]  ;;  %v3865_v37 = vld [vmem:[%s9906_s5 + $0x658] sm:$0xff] }
 0x3e6   :  { %5410 = vmatprep.subr.bf16.mxu0 %v5409_v29  ;;  %5362 = vmatprep.subr.bf16.mxu1 %v5361_v49  ;;  %v3848_v29 = vld [vmem:[%s9906_s5 + $0x5d0] sm:$0xff]  ;;  %v5431_v52 = vpack.c.bf16 %v3831_v26, %v3830_v41  ;;  %v3882_v12 = vld [vmem:[%s9906_s5 + $0x6e0] sm:$0xff] }
 0x3e7   :  { %v5433_v49 = vpack.c.bf16 %v3849_v54, %v3848_v29  ;;  %v3866_v26 = vld [vmem:[%s9906_s5 + $0x660] sm:$0xff]  ;;  %v3867_v29 = vld [vmem:[%s9906_s5 + $0x668] sm:$0xff]  ;;  %v3884_v54 = vld [vmem:[%s9906_s5 + $0x6f0] sm:$0xff] }
 0x3e9   :  { %5412 = vmatpush3.bf16.msra.mxu0 %v5411_v55  ;;  %5364 = vmatpush3.bf16.msra.mxu1 %v5363_v11  ;;  %v5437_v55 = vpack.c.bf16 %v3851_v3, %v3850_v34  ;;  %v3834_v11 = vld [vmem:[%s9906_s5 + $0x560] sm:$0xff]  ;;  %v3869_v34 = vld [vmem:[%s9906_s5 + $0x678] sm:$0xff] }
 0x3ea   :  { %5446 = vmatprep.subr.bf16.mxu0 %v5445_v28  ;;  %5366 = vmatprep.subr.bf16.mxu1 %v5365_v25  ;;  %v3835_v28 = vld [vmem:[%s9906_s5 + $0x568] sm:$0xff]  ;;  %v3852_v25 = vld [vmem:[%s9906_s5 + $0x5f0] sm:$0xff]  ;;  %v5475_v3 = vpack.c.bf16 %v3869_v34, %v3868_v35 }
 0x3eb   :  { %v5439_v48 = vpack.c.bf16 %v3835_v28, %v3834_v11  ;;  %v5441_v22 = vpack.c.bf16 %v3853_v10, %v3852_v25 }
 0x3ed   :  { %5368 = vmatpush3.bf16.msra.mxu1 %v5367_v8  ;;  %v3837_v8 = vld [vmem:[%s9906_s5 + $0x578] sm:$0xff] }
 0x3ee   :  { %5370 = vmatprep.subr.bf16.mxu1 %v5369_v32  ;;  %v5443_v32 = vpack.c.bf16 %v3837_v8, %v3836_v44 }
 0x3f1   :  { %5372 = vmatpush3.bf16.msra.mxu1 %v5371_v40  ;;  %v3873_v40 = vld [vmem:[%s9906_s5 + $0x698] sm:$0xff] }
 0x3f2   :  { %5374 = vmatprep.subr.bf16.mxu1 %v5373_v63  ;;  %v5449_v6 = vpack.c.bf16 %v3873_v40, %v3872_v39 }
 0x3f5   :  { %5376 = vmatpush3.bf16.msra.mxu1 %v5375_v4 }
 0x3f6   :  { %5378 = vmatprep.subr.bf16.mxu1 %v5377_v56  ;;  %v5447_v56 = vpack.c.bf16 %v3855_v13, %v3854_v17 }
 0x3f9   :  { %5380 = vmatpush3.bf16.msra.mxu1 %v5379_v33  ;;  %v3874_v33 = vld [vmem:[%s9906_s5 + $0x6a0] sm:$0xff] }
 0x3fa   :  { %5414 = vmatprep.subr.bf16.mxu1 %v5413_v62  ;;  %v3875_v62 = vld [vmem:[%s9906_s5 + $0x6a8] sm:$0xff] }
 0x3fb   :  { %v5453_v1 = vpack.c.bf16 %v3875_v62, %v3874_v33 }
 0x3fc   :  { %4168 = vmatmul.mubr.f32.vlgmr.msra.gmra.mrb[144].mxu1 %v3654_v59  ;;  %v3876_v59 = vld [vmem:[%s9906_s5 + $0x6b0] sm:$0xff] }
 0x3fd   :  { %5416 = vmatpush3.bf16.msra.mxu1 %v5415_v21  ;;  %v3877_v21 = vld [vmem:[%s9906_s5 + $0x6b8] sm:$0xff] }
 0x3fe   :  { %5418 = vmatprep.subr.bf16.mxu1 %v5417_v14  ;;  %v5455_v14 = vpack.c.bf16 %v3859_v53, %v3858_v2  ;;  %v5457_v7 = vpack.c.bf16 %v3877_v21, %v3876_v59 }
 0x401   :  { %5420 = vmatpush3.bf16.msra.mxu1 %v5419_v51  ;;  %v3879_v51 = vld [vmem:[%s9906_s5 + $0x6c8] sm:$0xff] }
 0x402   :  { %5422 = vmatprep.subr.bf16.mxu1 %v5421_v36  ;;  %v5459_v36 = vpack.c.bf16 %v3861_v61, %v3860_v20  ;;  %v5461_v31 = vpack.c.bf16 %v3879_v51, %v3878_v42 }
 0x405   :  { %5424 = vmatpush3.bf16.msra.mxu1 %v5423_v18  ;;  %v3881_v18 = vld [vmem:[%s9906_s5 + $0x6d8] sm:$0xff] }
 0x406   :  { %5426 = vmatprep.subr.bf16.mxu1 %v5425_v9  ;;  %v5463_v9 = vpack.c.bf16 %v3863_v15, %v3862_v24  ;;  %v5465_v57 = vpack.c.bf16 %v3881_v18, %v3880_v50 }
 0x409   :  { %5428 = vmatpush3.bf16.msra.mxu1 %v5427_v60  ;;  %v3883_v60 = vld [vmem:[%s9906_s5 + $0x6e8] sm:$0xff] }
 0x40a   :  { %5430 = vmatprep.subr.bf16.mxu1 %v5429_v19  ;;  %v5467_v19 = vpack.c.bf16 %v3865_v37, %v3864_v30  ;;  %v5469_v41 = vpack.c.bf16 %v3883_v60, %v3882_v12 }
 0x40d   :  { %5432 = vmatpush3.bf16.msra.mxu1 %v5431_v52  ;;  %v3885_v52 = vld [vmem:[%s9906_s5 + $0x6f8] sm:$0xff] }
 0x40e   :  { %5434 = vmatprep.subr.bf16.mxu1 %v5433_v49  ;;  %v5471_v49 = vpack.c.bf16 %v3867_v29, %v3866_v26  ;;  %v5473_v23 = vpack.c.bf16 %v3885_v52, %v3884_v54 }
 0x411   :  { %5436 = vmatpush3.bf16.msra.mxu1 %v5435_v45 }
 0x412   :  { %5438 = vmatprep.subr.bf16.mxu1 %v5437_v55 }
 0x415   :  { %5440 = vmatpush3.bf16.msra.mxu1 %v5439_v48 }
 0x416   :  { %5442 = vmatprep.subr.bf16.mxu1 %v5441_v22 }
 0x419   :  { %5444 = vmatpush3.bf16.msra.mxu1 %v5443_v32  ;;  %v4753_v32 = vld [vmem:[%s9907_s6] ss:$0 sm:$0xff] }
 0x448   :  { %v3456_v27 = vpop.f32.mrb[138].mxu1 }
 0x449   :  { %v3656_v63 = vmul.f32 0.015625, %v3456_v27  ;;  %v3458_v5 = vpop.f32.mrb[139].mxu1  ;;  %v3527_v58 = vpop.f32.mrb[110].mxu0 }
 0x44a   :  { %v3657_v47 = vmul.f32 0.015625, %v3458_v5  ;;  %v3658_v0 = vmul.f32 0.015625, %v3527_v58  ;;  %v3529_v4 = vpop.f32.mrb[111].mxu0 }
 0x44b   :  { %v3659_v43 = vmul.f32 0.015625, %v3529_v4 }
 0x44c   :  { %4237 = vmatprep.mubr.f32.mxu0 %v3657_v47 }
 0x44d   :  { %4238 = vmatmul.mubr.f32.vlgmr.msra.gmra.mrb[116].mxu0 %v3656_v63  ;;  %4307 = vmatprep.mubr.f32.mxu1 %v3659_v43 }
 0x44e   :  { %4308 = vmatmul.mubr.f32.vlgmr.msra.gmra.mrb[146].mxu1 %v3658_v0  ;;  %5448 = vmatpush3.bf16.msra.mxu0 %v5447_v56 }
 0x44f   :  { %5450 = vmatprep.subr.bf16.mxu0 %v5449_v6 }
 0x452   :  { %5452 = vmatpush3.bf16.msra.mxu0 %v5451_v46 }
 0x453   :  { %5454 = vmatprep.subr.bf16.mxu0 %v5453_v1 }
 0x456   :  { %5456 = vmatpush3.bf16.msra.mxu0 %v5455_v14 }
 0x457   :  { %5458 = vmatprep.subr.bf16.mxu0 %v5457_v7 }
 0x45a   :  { %5460 = vmatpush3.bf16.msra.mxu0 %v5459_v36 }
 0x45b   :  { %5462 = vmatprep.subr.bf16.mxu0 %v5461_v31 }
 0x45e   :  { %5464 = vmatpush3.bf16.msra.mxu0 %v5463_v9 }
 0x45f   :  { %5466 = vmatprep.subr.bf16.mxu0 %v5465_v57 }
 0x462   :  { %5468 = vmatpush3.bf16.msra.mxu0 %v5467_v19 }
 0x463   :  { %5470 = vmatprep.subr.bf16.mxu0 %v5469_v41 }
 0x466   :  { %5472 = vmatpush3.bf16.msra.mxu0 %v5471_v49 }
 0x467   :  { %5474 = vmatprep.subr.bf16.mxu0 %v5473_v23 }
 0x469   :  { %v4796_v45 = vpop.f32.mrb[112].mxu0 }
 0x46a   :  { %5476 = vmatpush3.bf16.msra.mxu0 %v5475_v3  ;;  %v4797_v55 = vpop.f32.mrb[113].mxu0 }
 0x46b   :  { %v4798_v11 = vadd.f32 %v4797_v55, %v4796_v45 }
 0x46d   :  { %v3960_v17 = vadd.f32 %v4798_v11, %v4753_v32 }
 0x48f   :  { %v3598_v28 = vpop.f32.mrb[140].mxu1 }
 0x490   :  { %v3600_v25 = vpop.f32.mrb[141].mxu1  ;;  %v3660_v48 = vmul.f32 0.015625, %v3598_v28 }
 0x491   :  { %v3661_v10 = vmul.f32 0.015625, %v3600_v25 }
 0x493   :  { %4377 = vmatprep.mubr.f32.mxu0 %v3661_v10 }
 0x494   :  { %4378 = vmatmul.mubr.f32.vlgmr.msra.gmra.mrb[118].mxu0 %v3660_v48 }
 0x49f   :  { %v4866_v22 = vpop.f32.mrb[114].mxu0 }
 0x4a0   :  { %v4867_v44 = vpop.f32.mrb[115].mxu0 }
 0x4a1   :  { %v4868_v8 = vadd.f32 %v4867_v44, %v4866_v22 }
 0x4af   :  { %v4831_v13 = vpop.f32.mrb[142].mxu1 }
 0x4b0   :  { %v4832_v27 = vpop.f32.mrb[143].mxu1 }
 0x4b1   :  { %v4833_v39 = vadd.f32 %v4832_v27, %v4831_v13 }
 0x4b3   :  { %v4030_v40 = vadd.f32 %v4833_v39, %v3960_v17 }
 0x4b5   :  { %v4100_v63 = vadd.f32 %v4868_v8, %v4030_v40 }
 0x4cf   :  { %v4901_v5 = vpop.f32.mrb[144].mxu1 }
 0x4d0   :  { %v4902_v58 = vpop.f32.mrb[145].mxu1 }
 0x4d1   :  { %v4903_v47 = vadd.f32 %v4902_v58, %v4901_v5 }
 0x4d3   :  { %v4170_v0 = vadd.f32 %v4903_v47, %v4100_v63 }
 0x520   :  { %v4936_v4 = vpop.f32.mrb[116].mxu0 }
 0x521   :  { %v4937_v56 = vpop.f32.mrb[117].mxu0  ;;  %v4971_v43 = vpop.f32.mrb[146].mxu1 }
 0x522   :  { %v4938_v6 = vadd.f32 %v4937_v56, %v4936_v4  ;;  %v4972_v38 = vpop.f32.mrb[147].mxu1 }
 0x523   :  { %v4973_v16 = vadd.f32 %v4972_v38, %v4971_v43 }
 0x524   :  { %v4240_v33 = vadd.f32 %v4938_v6, %v4170_v0 }
 0x526   :  { %v4310_v62 = vadd.f32 %v4973_v16, %v4240_v33 }
 0x567   :  { %v5006_v46 = vpop.f32.mrb[118].mxu0 }
 0x568   :  { %v5007_v1 = vpop.f32.mrb[119].mxu0 }
 0x569   :  { %v5008_v2 = vadd.f32 %v5007_v1, %v5006_v46 }
 0x56b   :  { %v4380_v53 = vadd.f32 %v5008_v2, %v4310_v62 }
 0x56d   :  { %4383 = vst [vmem:[%s9908_s7] sm:$0xff] %v4380_v53 }

</bundles_post_ra>
